<compile_context>
chip_gen: v7x
topology: tpu7x:2x2x1
jax: 0.10.0
libtpu: 0.0.40
codegen_flags: <defaults>
</compile_context>

<pallas_src>
import numpy as np

import jax
import jax.numpy as jnp
from jax.experimental import pallas as pl
from jax.experimental.pallas import tpu as pltpu

# ----------------------------- hyper-params ---------------------------------
IMAGE_SIZE = 16
NC = 3
NGF = 8
NZ = 16
BATCH = 2
K = 4  # every conv / deconv in the module uses a 4x4 kernel

F0 = NC * IMAGE_SIZE * IMAGE_SIZE   # 768  : network input / output width
F1 = NGF * 8 * 8                    # 512  : after encoder conv0 / before last deconv
F2 = NGF * 2 * 4 * 4                # 256  : after encoder conv1 / after decoder deconv0
FH = 2 * NZ                         # 32   : fused mu|logvar head width


# ===================== trace-time dense-operator packing =====================
# Per-sample activation layout everywhere: CHW-flat row vector,
#   a[n, c*H*W + h*W + w] = x[n, c, h, w]
# so the (BATCH, features) activation is a free reshape of NCHW.

def _dense_conv(H, W, Cin, Cout, k, s, p, w_pt):
    """nn.Conv2d -> dense (Cin*H*W, Cout*OH*OW) operator. w_pt: (Cout,Cin,k,k)."""
    OH = (H + 2 * p - k) // s + 1
    OW = (W + 2 * p - k) // s + 1
    M = np.zeros((Cin * H * W, Cout * OH * OW), np.float32)
    for co in range(Cout):
        for ci in range(Cin):
            for kh in range(k):
                for kw in range(k):
                    wv = float(w_pt[co, ci, kh, kw])
                    for oh in range(OH):
                        ih = oh * s + kh - p
                        if not (0 <= ih < H):
                            continue
                        for ow in range(OW):
                            iw = ow * s + kw - p
                            if not (0 <= iw < W):
                                continue
                            M[ci * H * W + ih * W + iw,
                              co * OH * OW + oh * OW + ow] += wv
    return M


def _dense_deconv(H, W, Cin, Cout, k, s, p, w_pt):
    """nn.ConvTranspose2d -> dense (Cin*H*W, Cout*OH*OW) operator.
    w_pt: (Cin, Cout, k, k).  out[oh=ih*s-p+kh, ow=iw*s-p+kw] += in*w."""
    OH = (H - 1) * s - 2 * p + k
    OW = (W - 1) * s - 2 * p + k
    M = np.zeros((Cin * H * W, Cout * OH * OW), np.float32)
    for ci in range(Cin):
        for co in range(Cout):
            for kh in range(k):
                for kw in range(k):
                    wv = float(w_pt[ci, co, kh, kw])
                    for ih in range(H):
                        oh = ih * s - p + kh
                        if not (0 <= oh < OH):
                            continue
                        for iw in range(W):
                            ow = iw * s - p + kw
                            if not (0 <= ow < OW):
                                continue
                            M[ci * H * W + ih * W + iw,
                              co * OH * OW + oh * OW + ow] += wv
    return M


def _bn_fold_mats(C, HW):
    """CHW-flat lane<->channel folds.
    P: (C*HW, C) sums the HW lanes of each channel; T: (C, C*HW) tiles a
    per-channel value back across its HW lanes."""
    P = np.kron(np.eye(C, dtype=np.float32), np.ones((HW, 1), np.float32))
    T = np.kron(np.eye(C, dtype=np.float32), np.ones((1, HW), np.float32))
    return P, T


# ============================== fused kernel ==================================
def _netg_kernel(x_ref, eps_ref,
                 we0_ref, we1_ref, wh_ref, wd0_ref, wd1_ref, wd2_ref,
                 p16_ref, t16_ref, p8_ref, t8_ref, vec_ref,
                 out_ref):
    f32 = jnp.float32
    bf16 = jnp.bfloat16

    def mmb(a, w_ref):
        # bf16 MXU matmul, f32 accumulation.
        return jnp.dot(a.astype(bf16), w_ref[...], preferred_element_type=f32)

    def lrelu(x):
        return jnp.where(x >= 0.0, x, 0.2 * x)

    def bn_lrelu(a, gamma, beta, p_ref, t_ref, count):
        # Training-mode batch stats (biased variance), single-pass, all in f32.
        s1 = jnp.sum(a, axis=0, keepdims=True)                 # (1, F)
        s2 = jnp.sum(a * a, axis=0, keepdims=True)             # (1, F)
        s12 = jnp.concatenate([s1, s2], axis=0)                # (2, F)
        c12 = jnp.dot(s12, p_ref[...], preferred_element_type=f32)   # (2, C)
        inv_n = 1.0 / count
        mean = c12[0:1, :] * inv_n
        var = c12[1:2, :] * inv_n - mean * mean
        inv_std = jax.lax.rsqrt(var + 1e-5)
        scale = gamma * inv_std                                # (1, C)
        shift = beta - mean * scale                            # (1, C)
        st = jnp.concatenate([scale, shift], axis=0)           # (2, C)
        stf = jnp.dot(st, t_ref[...], preferred_element_type=f32)    # (2, F)
        return lrelu(a * stf[0:1, :] + stf[1:2, :])

    # packed per-channel scalars, one row per group of the (8, 128) buffer
    g1 = vec_ref[0:1, 0:16]
    b1 = vec_ref[1:2, 0:16]
    g2 = vec_ref[2:3, 0:16]
    b2 = vec_ref[3:4, 0:16]
    g3 = vec_ref[4:5, 0:8]
    b3 = vec_ref[5:6, 0:8]
    head_b = vec_ref[6:7, 0:32]

    # ------------------------------ encoder ----------------------------------
    h0 = lrelu(mmb(x_ref[...], we0_ref))                       # (2, 512)
    h1 = bn_lrelu(mmb(h0, we1_ref), g1, b1, p16_ref, t16_ref, 32.0)   # (2, 256)

    # --------------------------- heads + sampler -----------------------------
    hm = mmb(h1, wh_ref) + head_b                              # (2, 32) = [mu | logvar]
    mu = hm[:, 0:NZ]
    lv = hm[:, NZ:2 * NZ]
    z = mu + eps_ref[...] * jnp.exp(0.5 * lv)                  # (2, 16)

    # ------------------------------ decoder ----------------------------------
    d0 = bn_lrelu(mmb(z, wd0_ref), g2, b2, p16_ref, t16_ref, 32.0)    # (2, 256)
    d1 = bn_lrelu(mmb(d0, wd1_ref), g3, b3, p8_ref, t8_ref, 128.0)    # (2, 512)
    d2 = mmb(d1, wd2_ref)                                      # (2, 768)
    out_ref[...] = jnp.tanh(d2)


# ============================ parameters & packing ============================
def init_params(key):
    ks = jax.random.split(key, 11)
    nrm = lambda k_, shape: 0.02 * jax.random.normal(k_, shape, jnp.float32)
    return {
        # encoder
        "e_conv0_w": nrm(ks[0], (NGF, NC, K, K)),             # Conv2d(nc,ngf,4,2,1,bias=False)
        "e_conv1_w": nrm(ks[1], (NGF * 2, NGF, K, K)),        # Conv2d(ngf,2ngf,4,2,1,bias=False)
        "e_bn1_g": 1.0 + 0.1 * jax.random.normal(ks[2], (NGF * 2,), jnp.float32),
        "e_bn1_b": 0.1 * jax.random.normal(ks[3], (NGF * 2,), jnp.float32),
        "mu_w": nrm(ks[4], (NZ, NGF * 2, K, K)),              # conv1 head (bias=True)
        "mu_b": nrm(ks[5], (NZ,)),
        "lv_w": nrm(ks[6], (NZ, NGF * 2, K, K)),              # conv2 head (bias=True)
        "lv_b": nrm(ks[7], (NZ,)),
        # decoder
        "d_convt0_w": nrm(ks[8], (NZ, NGF * 2, K, K)),        # ConvT(nz,2ngf,4,1,0,bias=False)
        "d_bn0_g": jnp.ones((NGF * 2,), jnp.float32),
        "d_bn0_b": jnp.zeros((NGF * 2,), jnp.float32),
        "d_convt1_w": nrm(ks[9], (NGF * 2, NGF, K, K)),       # ConvT(2ngf,ngf,4,2,1,bias=False)
        "d_bn1_g": jnp.ones((NGF,), jnp.float32),
        "d_bn1_b": jnp.zeros((NGF,), jnp.float32),
        "d_convt2_w": nrm(ks[10], (NGF, NC, K, K)),           # ConvT(ngf,nc,4,2,1,bias=False)
    }


def pack_operands(params):
    """Pre-pack every layer into one dense matmul operand (bf16) plus f32
    BN fold matrices and a single (8, 128) buffer of per-channel scalars."""
    w = {n: np.asarray(v, np.float32) for n, v in params.items()}

    we0 = _dense_conv(16, 16, NC, NGF, K, 2, 1, w["e_conv0_w"])          # (768, 512)
    we1 = _dense_conv(8, 8, NGF, NGF * 2, K, 2, 1, w["e_conv1_w"])       # (512, 256)
    wmu = _dense_conv(4, 4, NGF * 2, NZ, K, 1, 0, w["mu_w"])             # (256, 16)
    wlv = _dense_conv(4, 4, NGF * 2, NZ, K, 1, 0, w["lv_w"])             # (256, 16)
    wh = np.concatenate([wmu, wlv], axis=1)                              # (256, 32)
    wd0 = _dense_deconv(1, 1, NZ, NGF * 2, K, 1, 0, w["d_convt0_w"])     # (16, 256)
    wd1 = _dense_deconv(4, 4, NGF * 2, NGF, K, 2, 1, w["d_convt1_w"])    # (256, 512)
    wd2 = _dense_deconv(8, 8, NGF, NC, K, 2, 1, w["d_convt2_w"])         # (512, 768)

    p16, t16 = _bn_fold_mats(NGF * 2, 16)   # 16 channels x 16 spatial
    p8, t8 = _bn_fold_mats(NGF, 64)         # 8 channels x 64 spatial

    vec = np.zeros((8, 128), np.float32)
    vec[0, :16] = w["e_bn1_g"]
    vec[1, :16] = w["e_bn1_b"]
    vec[2, :16] = w["d_bn0_g"]
    vec[3, :16] = w["d_bn0_b"]
    vec[4, :8] = w["d_bn1_g"]
    vec[5, :8] = w["d_bn1_b"]
    vec[6, :16] = w["mu_b"]
    vec[6, 16:32] = w["lv_b"]

    bf = lambda a: jnp.asarray(a, jnp.bfloat16)
    f32 = lambda a: jnp.asarray(a, jnp.float32)
    return [bf(we0), bf(we1), bf(wh), bf(wd0), bf(wd1), bf(wd2),
            f32(p16), f32(t16), f32(p8), f32(t8), f32(vec)]


# =============================== forward pass =================================
def netG_forward(packed, x_nchw, eps):
    x2 = x_nchw.reshape(BATCH, F0)                            # free reshape, lane-dense
    vmem = pl.BlockSpec(memory_space=pltpu.MemorySpace.VMEM)
    n_in = 2 + len(packed)

    layer_dims = [(F0, F1), (F1, F2), (F2, FH), (NZ, F2), (F2, F1), (F1, F0)]
    bn_dims = [(F2, 16), (16, F2), (F2, 16), (16, F2), (F1, 8), (8, F1)]
    flops = sum(2 * BATCH * k_ * n_ for k_, n_ in layer_dims)
    flops += sum(2 * 2 * k_ * n_ for k_, n_ in bn_dims)
    transcendentals = BATCH * NZ + (16 + 16 + 8) + BATCH * F0        # exp + rsqrt + tanh
    bytes_accessed = int(sum(int(np.prod(a.shape)) * a.dtype.itemsize for a in packed)
                         + (BATCH * F0 + BATCH * NZ + BATCH * F0) * 4)

    out2 = pl.pallas_call(
        _netg_kernel,
        out_shape=jax.ShapeDtypeStruct((BATCH, F0), jnp.float32),
        in_specs=[vmem] * n_in,
        out_specs=vmem,
        cost_estimate=pl.CostEstimate(flops=flops,
                                      transcendentals=transcendentals,
                                      bytes_accessed=bytes_accessed),
    )(x2, eps, *packed)
    return out2.reshape(BATCH, NC, IMAGE_SIZE, IMAGE_SIZE)    # free reshape


# ===================== pure-JAX reference (correctness check) ================
def reference_forward(params, x_nchw, eps):
    P = jax.lax.Precision.HIGHEST

    def conv(x, w, stride, pad):
        return jax.lax.conv_general_dilated(
            x, w, window_strides=(stride, stride),
            padding=((pad, pad), (pad, pad)),
            dimension_numbers=("NCHW", "OIHW", "NCHW"), precision=P)

    def deconv(x, w_t, stride, pad):
        k = w_t.shape[2]
        w = jnp.transpose(w_t, (1, 0, 2, 3))[:, :, ::-1, ::-1]
        return jax.lax.conv_general_dilated(
            x, w, window_strides=(1, 1),
            padding=((k - 1 - pad,) * 2, (k - 1 - pad,) * 2),
            lhs_dilation=(stride, stride),
            dimension_numbers=("NCHW", "OIHW", "NCHW"), precision=P)

    def bn_lrelu(x, g, b):
        mean = jnp.mean(x, axis=(0, 2, 3), keepdims=True)
        var = jnp.mean((x - mean) ** 2, axis=(0, 2, 3), keepdims=True)
        y = (x - mean) * jax.lax.rsqrt(var + 1e-5)
        y = y * g.reshape(1, -1, 1, 1) + b.reshape(1, -1, 1, 1)
        return jnp.where(y >= 0, y, 0.2 * y)

    def lrelu(x):
        return jnp.where(x >= 0, x, 0.2 * x)

    h = lrelu(conv(x_nchw, params["e_conv0_w"], 2, 1))
    h = bn_lrelu(conv(h, params["e_conv1_w"], 2, 1),
                 params["e_bn1_g"], params["e_bn1_b"])
    mu = conv(h, params["mu_w"], 1, 0) + params["mu_b"].reshape(1, -1, 1, 1)
    lv = conv(h, params["lv_w"], 1, 0) + params["lv_b"].reshape(1, -1, 1, 1)
    z = mu + eps.reshape(BATCH, NZ, 1, 1) * jnp.exp(0.5 * lv)
    d = bn_lrelu(deconv(z, params["d_convt0_w"], 1, 0),
                 params["d_bn0_g"], params["d_bn0_b"])
    d = bn_lrelu(deconv(d, params["d_convt1_w"], 2, 1),
                 params["d_bn1_g"], params["d_bn1_b"])
    d = jnp.tanh(deconv(d, params["d_convt2_w"], 2, 1))
    return d


# ==================================== main ====================================
if __name__ == "__main__":
    key = jax.random.PRNGKey(0)
    k_param, k_input, k_noise = jax.random.split(key, 3)
    params = init_params(k_param)
    packed = pack_operands(params)

    x = jax.random.normal(k_input, (BATCH, NC, IMAGE_SIZE, IMAGE_SIZE), jnp.float32)
    eps = jax.random.normal(k_noise, (BATCH, NZ), jnp.float32)

    fwd = jax.jit(netG_forward)
    out = jax.block_until_ready(fwd(packed, x, eps))

    assert out.shape == (BATCH, NC, IMAGE_SIZE, IMAGE_SIZE), out.shape
    assert out.dtype == jnp.float32
    assert bool(jnp.all(jnp.isfinite(out)))

    # Numerical check against a plain-JAX (f32, HIGHEST precision) reference.
    # The kernel runs its layer matmuls on the bf16 MXU path (f32 accumulate),
    # so the budget is slightly wider than a pure-f32 comparison.
    ref = reference_forward(params, x, eps)
    max_err = float(jnp.max(jnp.abs(out - ref)))
    mean_err = float(jnp.mean(jnp.abs(out - ref)))
    assert max_err < 4e-2, f"max abs error vs reference: {max_err}"
    assert mean_err < 1e-2, f"mean abs error vs reference: {mean_err}"

    print("KERNEL_OK")
</pallas_src>

<mosaic_0001>
module attributes {stable_mosaic.version = 11 : i64} {
  func.func @_netg_kernel(%arg0: memref<2x768xf32, #tpu.memory_space<vmem>>, %arg1: memref<2x16xf32, #tpu.memory_space<vmem>>, %arg2: memref<768x512xbf16, #tpu.memory_space<vmem>>, %arg3: memref<512x256xbf16, #tpu.memory_space<vmem>>, %arg4: memref<256x32xbf16, #tpu.memory_space<vmem>>, %arg5: memref<16x256xbf16, #tpu.memory_space<vmem>>, %arg6: memref<256x512xbf16, #tpu.memory_space<vmem>>, %arg7: memref<512x768xbf16, #tpu.memory_space<vmem>>, %arg8: memref<256x16xf32, #tpu.memory_space<vmem>>, %arg9: memref<16x256xf32, #tpu.memory_space<vmem>>, %arg10: memref<512x8xf32, #tpu.memory_space<vmem>>, %arg11: memref<8x512xf32, #tpu.memory_space<vmem>>, %arg12: memref<8x128xf32, #tpu.memory_space<vmem>>, %arg13: memref<2x768xf32, #tpu.memory_space<vmem>>) attributes {dimension_semantics = [], scalar_prefetch = 0 : i64, scratch_operands = 0 : i64, tpu.core_type = #tpu.core_type<tc>} {
    %c0 = arith.constant 0 : index
    %c0_0 = arith.constant 0 : index
    %0 = vector.load %arg12[%c0, %c0_0] : memref<8x128xf32, #tpu.memory_space<vmem>>, vector<1x16xf32>
    %c1 = arith.constant 1 : index
    %c0_1 = arith.constant 0 : index
    %1 = vector.load %arg12[%c1, %c0_1] : memref<8x128xf32, #tpu.memory_space<vmem>>, vector<1x16xf32>
    %c2 = arith.constant 2 : index
    %c0_2 = arith.constant 0 : index
    %2 = vector.load %arg12[%c2, %c0_2] : memref<8x128xf32, #tpu.memory_space<vmem>>, vector<1x16xf32>
    %c3 = arith.constant 3 : index
    %c0_3 = arith.constant 0 : index
    %3 = vector.load %arg12[%c3, %c0_3] : memref<8x128xf32, #tpu.memory_space<vmem>>, vector<1x16xf32>
    %c4 = arith.constant 4 : index
    %c0_4 = arith.constant 0 : index
    %4 = vector.load %arg12[%c4, %c0_4] : memref<8x128xf32, #tpu.memory_space<vmem>>, vector<1x8xf32>
    %c5 = arith.constant 5 : index
    %c0_5 = arith.constant 0 : index
    %5 = vector.load %arg12[%c5, %c0_5] : memref<8x128xf32, #tpu.memory_space<vmem>>, vector<1x8xf32>
    %c6 = arith.constant 6 : index
    %c0_6 = arith.constant 0 : index
    %6 = vector.load %arg12[%c6, %c0_6] : memref<8x128xf32, #tpu.memory_space<vmem>>, vector<1x32xf32>
    %c0_7 = arith.constant 0 : index
    %c0_8 = arith.constant 0 : index
    %7 = vector.load %arg0[%c0_7, %c0_8] : memref<2x768xf32, #tpu.memory_space<vmem>>, vector<2x768xf32>
    %8 = arith.truncf %7 : vector<2x768xf32> to vector<2x768xbf16>
    %c0_9 = arith.constant 0 : index
    %c0_10 = arith.constant 0 : index
    %9 = vector.load %arg2[%c0_9, %c0_10] : memref<768x512xbf16, #tpu.memory_space<vmem>>, vector<768x512xbf16>
    %cst = arith.constant dense<0.000000e+00> : vector<2x512xf32>
    %10 = tpu.matmul %8, %9, %cst {dimension_numbers = #tpu.dot_dimension_numbers<[1], [0], [0], [1], [0, 0, 1, 1], [], []>} : vector<2x768xbf16>, vector<768x512xbf16>, vector<2x512xf32> -> vector<2x512xf32>
    %cst_11 = arith.constant 0.000000e+00 : f32
    %11 = vector.broadcast %cst_11 : f32 to vector<2x512xf32>
    %12 = arith.cmpf oge, %10, %11 : vector<2x512xf32>
    %cst_12 = arith.constant 2.000000e-01 : f32
    %13 = vector.broadcast %cst_12 : f32 to vector<2x512xf32>
    %14 = arith.mulf %13, %10 : vector<2x512xf32>
    %15 = arith.select %12, %10, %14 : vector<2x512xi1>, vector<2x512xf32>
    %16 = arith.truncf %15 : vector<2x512xf32> to vector<2x512xbf16>
    %c0_13 = arith.constant 0 : index
    %c0_14 = arith.constant 0 : index
    %17 = vector.load %arg3[%c0_13, %c0_14] : memref<512x256xbf16, #tpu.memory_space<vmem>>, vector<512x256xbf16>
    %cst_15 = arith.constant dense<0.000000e+00> : vector<2x256xf32>
    %18 = tpu.matmul %16, %17, %cst_15 {dimension_numbers = #tpu.dot_dimension_numbers<[1], [0], [0], [1], [0, 0, 1, 1], [], []>} : vector<2x512xbf16>, vector<512x256xbf16>, vector<2x256xf32> -> vector<2x256xf32>
    %cst_16 = arith.constant dense<0.000000e+00> : vector<256xf32>
    %19 = vector.multi_reduction <add>, %18, %cst_16 [0] : vector<2x256xf32> to vector<256xf32>
    %20 = vector.shape_cast %19 : vector<256xf32> to vector<1x256xf32>
    %21 = arith.mulf %18, %18 : vector<2x256xf32>
    %cst_17 = arith.constant dense<0.000000e+00> : vector<256xf32>
    %22 = vector.multi_reduction <add>, %21, %cst_17 [0] : vector<2x256xf32> to vector<256xf32>
    %23 = vector.shape_cast %22 : vector<256xf32> to vector<1x256xf32>
    %24 = tpu.concatenate %20, %23 in 0 : vector<1x256xf32>, vector<1x256xf32> -> vector<2x256xf32>
    %c0_18 = arith.constant 0 : index
    %c0_19 = arith.constant 0 : index
    %25 = vector.load %arg8[%c0_18, %c0_19] : memref<256x16xf32, #tpu.memory_space<vmem>>, vector<256x16xf32>
    %cst_20 = arith.constant dense<0.000000e+00> : vector<2x16xf32>
    %26 = tpu.matmul %24, %25, %cst_20 {dimension_numbers = #tpu.dot_dimension_numbers<[1], [0], [0], [1], [0, 0, 1, 1], [], []>} : vector<2x256xf32>, vector<256x16xf32>, vector<2x16xf32> -> vector<2x16xf32>
    %27 = vector.extract_strided_slice %26 {offsets = [0, 0], sizes = [1, 16], strides = [1, 1]} : vector<2x16xf32> to vector<1x16xf32>
    %cst_21 = arith.constant 3.125000e-02 : f32
    %28 = vector.broadcast %cst_21 : f32 to vector<1x16xf32>
    %29 = arith.mulf %27, %28 : vector<1x16xf32>
    %30 = vector.extract_strided_slice %26 {offsets = [1, 0], sizes = [1, 16], strides = [1, 1]} : vector<2x16xf32> to vector<1x16xf32>
    %cst_22 = arith.constant 3.125000e-02 : f32
    %31 = vector.broadcast %cst_22 : f32 to vector<1x16xf32>
    %32 = arith.mulf %30, %31 : vector<1x16xf32>
    %33 = arith.mulf %29, %29 : vector<1x16xf32>
    %34 = arith.subf %32, %33 : vector<1x16xf32>
    %cst_23 = arith.constant 9.99999974E-6 : f32
    %35 = vector.broadcast %cst_23 : f32 to vector<1x16xf32>
    %36 = arith.addf %34, %35 : vector<1x16xf32>
    %37 = math.rsqrt %36 : vector<1x16xf32>
    %38 = arith.mulf %0, %37 : vector<1x16xf32>
    %39 = arith.mulf %29, %38 : vector<1x16xf32>
    %40 = arith.subf %1, %39 : vector<1x16xf32>
    %41 = tpu.concatenate %38, %40 in 0 : vector<1x16xf32>, vector<1x16xf32> -> vector<2x16xf32>
    %c0_24 = arith.constant 0 : index
    %c0_25 = arith.constant 0 : index
    %42 = vector.load %arg9[%c0_24, %c0_25] : memref<16x256xf32, #tpu.memory_space<vmem>>, vector<16x256xf32>
    %cst_26 = arith.constant dense<0.000000e+00> : vector<2x256xf32>
    %43 = tpu.matmul %41, %42, %cst_26 {dimension_numbers = #tpu.dot_dimension_numbers<[1], [0], [0], [1], [0, 0, 1, 1], [], []>} : vector<2x16xf32>, vector<16x256xf32>, vector<2x256xf32> -> vector<2x256xf32>
    %44 = vector.extract_strided_slice %43 {offsets = [0, 0], sizes = [1, 256], strides = [1, 1]} : vector<2x256xf32> to vector<1x256xf32>
    %45 = vector.broadcast %44 : vector<1x256xf32> to vector<2x256xf32>
    %46 = arith.mulf %18, %45 : vector<2x256xf32>
    %47 = vector.extract_strided_slice %43 {offsets = [1, 0], sizes = [1, 256], strides = [1, 1]} : vector<2x256xf32> to vector<1x256xf32>
    %48 = vector.broadcast %47 : vector<1x256xf32> to vector<2x256xf32>
    %49 = arith.addf %46, %48 : vector<2x256xf32>
    %cst_27 = arith.constant 0.000000e+00 : f32
    %50 = vector.broadcast %cst_27 : f32 to vector<2x256xf32>
    %51 = arith.cmpf oge, %49, %50 : vector<2x256xf32>
    %cst_28 = arith.constant 2.000000e-01 : f32
    %52 = vector.broadcast %cst_28 : f32 to vector<2x256xf32>
    %53 = arith.mulf %52, %49 : vector<2x256xf32>
    %54 = arith.select %51, %49, %53 : vector<2x256xi1>, vector<2x256xf32>
    %55 = arith.truncf %54 : vector<2x256xf32> to vector<2x256xbf16>
    %c0_29 = arith.constant 0 : index
    %c0_30 = arith.constant 0 : index
    %56 = vector.load %arg4[%c0_29, %c0_30] : memref<256x32xbf16, #tpu.memory_space<vmem>>, vector<256x32xbf16>
    %cst_31 = arith.constant dense<0.000000e+00> : vector<2x32xf32>
    %57 = tpu.matmul %55, %56, %cst_31 {dimension_numbers = #tpu.dot_dimension_numbers<[1], [0], [0], [1], [0, 0, 1, 1], [], []>} : vector<2x256xbf16>, vector<256x32xbf16>, vector<2x32xf32> -> vector<2x32xf32>
    %58 = vector.broadcast %6 : vector<1x32xf32> to vector<2x32xf32>
    %59 = arith.addf %57, %58 : vector<2x32xf32>
    %60 = vector.extract_strided_slice %59 {offsets = [0, 0], sizes = [2, 16], strides = [1, 1]} : vector<2x32xf32> to vector<2x16xf32>
    %61 = vector.extract_strided_slice %59 {offsets = [0, 16], sizes = [2, 16], strides = [1, 1]} : vector<2x32xf32> to vector<2x16xf32>
    %c0_32 = arith.constant 0 : index
    %c0_33 = arith.constant 0 : index
    %62 = vector.load %arg1[%c0_32, %c0_33] : memref<2x16xf32, #tpu.memory_space<vmem>>, vector<2x16xf32>
    %cst_34 = arith.constant 5.000000e-01 : f32
    %63 = vector.broadcast %cst_34 : f32 to vector<2x16xf32>
    %64 = arith.mulf %63, %61 : vector<2x16xf32>
    %65 = math.exp %64 : vector<2x16xf32>
    %66 = arith.mulf %62, %65 : vector<2x16xf32>
    %67 = arith.addf %60, %66 : vector<2x16xf32>
    %68 = arith.truncf %67 : vector<2x16xf32> to vector<2x16xbf16>
    %c0_35 = arith.constant 0 : index
    %c0_36 = arith.constant 0 : index
    %69 = vector.load %arg5[%c0_35, %c0_36] : memref<16x256xbf16, #tpu.memory_space<vmem>>, vector<16x256xbf16>
    %cst_37 = arith.constant dense<0.000000e+00> : vector<2x256xf32>
    %70 = tpu.matmul %68, %69, %cst_37 {dimension_numbers = #tpu.dot_dimension_numbers<[1], [0], [0], [1], [0, 0, 1, 1], [], []>} : vector<2x16xbf16>, vector<16x256xbf16>, vector<2x256xf32> -> vector<2x256xf32>
    %cst_38 = arith.constant dense<0.000000e+00> : vector<256xf32>
    %71 = vector.multi_reduction <add>, %70, %cst_38 [0] : vector<2x256xf32> to vector<256xf32>
    %72 = vector.shape_cast %71 : vector<256xf32> to vector<1x256xf32>
    %73 = arith.mulf %70, %70 : vector<2x256xf32>
    %cst_39 = arith.constant dense<0.000000e+00> : vector<256xf32>
    %74 = vector.multi_reduction <add>, %73, %cst_39 [0] : vector<2x256xf32> to vector<256xf32>
    %75 = vector.shape_cast %74 : vector<256xf32> to vector<1x256xf32>
    %76 = tpu.concatenate %72, %75 in 0 : vector<1x256xf32>, vector<1x256xf32> -> vector<2x256xf32>
    %c0_40 = arith.constant 0 : index
    %c0_41 = arith.constant 0 : index
    %77 = vector.load %arg8[%c0_40, %c0_41] : memref<256x16xf32, #tpu.memory_space<vmem>>, vector<256x16xf32>
    %cst_42 = arith.constant dense<0.000000e+00> : vector<2x16xf32>
    %78 = tpu.matmul %76, %77, %cst_42 {dimension_numbers = #tpu.dot_dimension_numbers<[1], [0], [0], [1], [0, 0, 1, 1], [], []>} : vector<2x256xf32>, vector<256x16xf32>, vector<2x16xf32> -> vector<2x16xf32>
    %79 = vector.extract_strided_slice %78 {offsets = [0, 0], sizes = [1, 16], strides = [1, 1]} : vector<2x16xf32> to vector<1x16xf32>
    %cst_43 = arith.constant 3.125000e-02 : f32
    %80 = vector.broadcast %cst_43 : f32 to vector<1x16xf32>
    %81 = arith.mulf %79, %80 : vector<1x16xf32>
    %82 = vector.extract_strided_slice %78 {offsets = [1, 0], sizes = [1, 16], strides = [1, 1]} : vector<2x16xf32> to vector<1x16xf32>
    %cst_44 = arith.constant 3.125000e-02 : f32
    %83 = vector.broadcast %cst_44 : f32 to vector<1x16xf32>
    %84 = arith.mulf %82, %83 : vector<1x16xf32>
    %85 = arith.mulf %81, %81 : vector<1x16xf32>
    %86 = arith.subf %84, %85 : vector<1x16xf32>
    %cst_45 = arith.constant 9.99999974E-6 : f32
    %87 = vector.broadcast %cst_45 : f32 to vector<1x16xf32>
    %88 = arith.addf %86, %87 : vector<1x16xf32>
    %89 = math.rsqrt %88 : vector<1x16xf32>
    %90 = arith.mulf %2, %89 : vector<1x16xf32>
    %91 = arith.mulf %81, %90 : vector<1x16xf32>
    %92 = arith.subf %3, %91 : vector<1x16xf32>
    %93 = tpu.concatenate %90, %92 in 0 : vector<1x16xf32>, vector<1x16xf32> -> vector<2x16xf32>
    %c0_46 = arith.constant 0 : index
    %c0_47 = arith.constant 0 : index
    %94 = vector.load %arg9[%c0_46, %c0_47] : memref<16x256xf32, #tpu.memory_space<vmem>>, vector<16x256xf32>
    %cst_48 = arith.constant dense<0.000000e+00> : vector<2x256xf32>
    %95 = tpu.matmul %93, %94, %cst_48 {dimension_numbers = #tpu.dot_dimension_numbers<[1], [0], [0], [1], [0, 0, 1, 1], [], []>} : vector<2x16xf32>, vector<16x256xf32>, vector<2x256xf32> -> vector<2x256xf32>
    %96 = vector.extract_strided_slice %95 {offsets = [0, 0], sizes = [1, 256], strides = [1, 1]} : vector<2x256xf32> to vector<1x256xf32>
    %97 = vector.broadcast %96 : vector<1x256xf32> to vector<2x256xf32>
    %98 = arith.mulf %70, %97 : vector<2x256xf32>
    %99 = vector.extract_strided_slice %95 {offsets = [1, 0], sizes = [1, 256], strides = [1, 1]} : vector<2x256xf32> to vector<1x256xf32>
    %100 = vector.broadcast %99 : vector<1x256xf32> to vector<2x256xf32>
    %101 = arith.addf %98, %100 : vector<2x256xf32>
    %cst_49 = arith.constant 0.000000e+00 : f32
    %102 = vector.broadcast %cst_49 : f32 to vector<2x256xf32>
    %103 = arith.cmpf oge, %101, %102 : vector<2x256xf32>
    %cst_50 = arith.constant 2.000000e-01 : f32
    %104 = vector.broadcast %cst_50 : f32 to vector<2x256xf32>
    %105 = arith.mulf %104, %101 : vector<2x256xf32>
    %106 = arith.select %103, %101, %105 : vector<2x256xi1>, vector<2x256xf32>
    %107 = arith.truncf %106 : vector<2x256xf32> to vector<2x256xbf16>
    %c0_51 = arith.constant 0 : index
    %c0_52 = arith.constant 0 : index
    %108 = vector.load %arg6[%c0_51, %c0_52] : memref<256x512xbf16, #tpu.memory_space<vmem>>, vector<256x512xbf16>
    %cst_53 = arith.constant dense<0.000000e+00> : vector<2x512xf32>
    %109 = tpu.matmul %107, %108, %cst_53 {dimension_numbers = #tpu.dot_dimension_numbers<[1], [0], [0], [1], [0, 0, 1, 1], [], []>} : vector<2x256xbf16>, vector<256x512xbf16>, vector<2x512xf32> -> vector<2x512xf32>
    %cst_54 = arith.constant dense<0.000000e+00> : vector<512xf32>
    %110 = vector.multi_reduction <add>, %109, %cst_54 [0] : vector<2x512xf32> to vector<512xf32>
    %111 = vector.shape_cast %110 : vector<512xf32> to vector<1x512xf32>
    %112 = arith.mulf %109, %109 : vector<2x512xf32>
    %cst_55 = arith.constant dense<0.000000e+00> : vector<512xf32>
    %113 = vector.multi_reduction <add>, %112, %cst_55 [0] : vector<2x512xf32> to vector<512xf32>
    %114 = vector.shape_cast %113 : vector<512xf32> to vector<1x512xf32>
    %115 = tpu.concatenate %111, %114 in 0 : vector<1x512xf32>, vector<1x512xf32> -> vector<2x512xf32>
    %c0_56 = arith.constant 0 : index
    %c0_57 = arith.constant 0 : index
    %116 = vector.load %arg10[%c0_56, %c0_57] : memref<512x8xf32, #tpu.memory_space<vmem>>, vector<512x8xf32>
    %cst_58 = arith.constant dense<0.000000e+00> : vector<2x8xf32>
    %117 = tpu.matmul %115, %116, %cst_58 {dimension_numbers = #tpu.dot_dimension_numbers<[1], [0], [0], [1], [0, 0, 1, 1], [], []>} : vector<2x512xf32>, vector<512x8xf32>, vector<2x8xf32> -> vector<2x8xf32>
    %118 = vector.extract_strided_slice %117 {offsets = [0, 0], sizes = [1, 8], strides = [1, 1]} : vector<2x8xf32> to vector<1x8xf32>
    %cst_59 = arith.constant 7.812500e-03 : f32
    %119 = vector.broadcast %cst_59 : f32 to vector<1x8xf32>
    %120 = arith.mulf %118, %119 : vector<1x8xf32>
    %121 = vector.extract_strided_slice %117 {offsets = [1, 0], sizes = [1, 8], strides = [1, 1]} : vector<2x8xf32> to vector<1x8xf32>
    %cst_60 = arith.constant 7.812500e-03 : f32
    %122 = vector.broadcast %cst_60 : f32 to vector<1x8xf32>
    %123 = arith.mulf %121, %122 : vector<1x8xf32>
    %124 = arith.mulf %120, %120 : vector<1x8xf32>
    %125 = arith.subf %123, %124 : vector<1x8xf32>
    %cst_61 = arith.constant 9.99999974E-6 : f32
    %126 = vector.broadcast %cst_61 : f32 to vector<1x8xf32>
    %127 = arith.addf %125, %126 : vector<1x8xf32>
    %128 = math.rsqrt %127 : vector<1x8xf32>
    %129 = arith.mulf %4, %128 : vector<1x8xf32>
    %130 = arith.mulf %120, %129 : vector<1x8xf32>
    %131 = arith.subf %5, %130 : vector<1x8xf32>
    %132 = tpu.concatenate %129, %131 in 0 : vector<1x8xf32>, vector<1x8xf32> -> vector<2x8xf32>
    %c0_62 = arith.constant 0 : index
    %c0_63 = arith.constant 0 : index
    %133 = vector.load %arg11[%c0_62, %c0_63] : memref<8x512xf32, #tpu.memory_space<vmem>>, vector<8x512xf32>
    %cst_64 = arith.constant dense<0.000000e+00> : vector<2x512xf32>
    %134 = tpu.matmul %132, %133, %cst_64 {dimension_numbers = #tpu.dot_dimension_numbers<[1], [0], [0], [1], [0, 0, 1, 1], [], []>} : vector<2x8xf32>, vector<8x512xf32>, vector<2x512xf32> -> vector<2x512xf32>
    %135 = vector.extract_strided_slice %134 {offsets = [0, 0], sizes = [1, 512], strides = [1, 1]} : vector<2x512xf32> to vector<1x512xf32>
    %136 = vector.broadcast %135 : vector<1x512xf32> to vector<2x512xf32>
    %137 = arith.mulf %109, %136 : vector<2x512xf32>
    %138 = vector.extract_strided_slice %134 {offsets = [1, 0], sizes = [1, 512], strides = [1, 1]} : vector<2x512xf32> to vector<1x512xf32>
    %139 = vector.broadcast %138 : vector<1x512xf32> to vector<2x512xf32>
    %140 = arith.addf %137, %139 : vector<2x512xf32>
    %cst_65 = arith.constant 0.000000e+00 : f32
    %141 = vector.broadcast %cst_65 : f32 to vector<2x512xf32>
    %142 = arith.cmpf oge, %140, %141 : vector<2x512xf32>
    %cst_66 = arith.constant 2.000000e-01 : f32
    %143 = vector.broadcast %cst_66 : f32 to vector<2x512xf32>
    %144 = arith.mulf %143, %140 : vector<2x512xf32>
    %145 = arith.select %142, %140, %144 : vector<2x512xi1>, vector<2x512xf32>
    %146 = arith.truncf %145 : vector<2x512xf32> to vector<2x512xbf16>
    %c0_67 = arith.constant 0 : index
    %c0_68 = arith.constant 0 : index
    %147 = vector.load %arg7[%c0_67, %c0_68] : memref<512x768xbf16, #tpu.memory_space<vmem>>, vector<512x768xbf16>
    %cst_69 = arith.constant dense<0.000000e+00> : vector<2x768xf32>
    %148 = tpu.matmul %146, %147, %cst_69 {dimension_numbers = #tpu.dot_dimension_numbers<[1], [0], [0], [1], [0, 0, 1, 1], [], []>} : vector<2x512xbf16>, vector<512x768xbf16>, vector<2x768xf32> -> vector<2x768xf32>
    %149 = math.tanh %148 : vector<2x768xf32>
    %c0_70 = arith.constant 0 : index
    %c0_71 = arith.constant 0 : index
    %150 = vector.load %arg13[%c0_70, %c0_71] : memref<2x768xf32, #tpu.memory_space<vmem>>, vector<2x768xf32>
    tpu.vector_store %arg13[%c0_70, %c0_71], %149 {strides = array<i32>} : memref<2x768xf32, #tpu.memory_space<vmem>>, vector<2x768xf32>,
    return
  }
}

</mosaic_0001>

<bundles_post_ra>
// kernel: netG_forward.1
= control target key start
LH: loop header
LB: loop body
LE: loop exit
PB: predicated region body
PF: predicated region fallthrough
CT: control target
= control target key end

     0   :  { %18 = vsyncpa [#allocation3], 0  ;;  %s8045_s0 = inlined_call_operand.vmem [shape: f32[2,768], index: 0, kind: input, shape index: {}]   ;;  %s8046_s1 = inlined_call_operand.vmem [shape: f32[2,16], index: 1, kind: input, shape index: {}]   ;;  %s8047_s2 = inlined_call_operand.hbm [shape: bf16[768,512], index: 2, kind: input, shape index: {}]   ;;  %s8048_s3 = inlined_call_operand.vmem [shape: bf16[512,256], index: 3, kind: input, shape index: {}]   ;;  %s8049_s4 = inlined_call_operand.vmem [shape: bf16[256,32], index: 4, kind: input, shape index: {}]   ;;  %s8050_s5 = inlined_call_operand.hbm [shape: bf16[16,256], index: 5, kind: input, shape index: {}]   ;;  %s8051_s6 = inlined_call_operand.vmem [shape: bf16[256,512], index: 6, kind: input, shape index: {}]   ;;  %s8052_s7 = inlined_call_operand.hbm [shape: bf16[512,768], index: 7, kind: input, shape index: {}]   ;;  %s8053_s8 = inlined_call_operand.vmem [shape: f32[256,16], index: 8, kind: input, shape index: {}]   ;;  %s8054_s9 = inlined_call_operand.vmem [shape: f32[16,256], index: 9, kind: input, shape index: {}]   ;;  %s8055_s10 = inlined_call_operand.vmem [shape: f32[512,8], index: 10, kind: input, shape index: {}]   ;;  %s8056_s11 = inlined_call_operand.vmem [shape: f32[8,512], index: 11, kind: input, shape index: {}]   ;;  %s8057_s12 = inlined_call_operand.vmem [shape: f32[8,128], index: 12, kind: input, shape index: {}]   ;;  %s8058_s13 = inlined_call_operand.vmem [shape: f32[2,768], index: 13, kind: output, shape index: {}]  }
   0x1   :  { %19 = vsyncpa [#allocation5], 0  ;;  %s6896_s25 = smov [#allocation4]   ;;  %s6826_s29 = scalar_lea.hbm %s8050_s5, 256 }
   0x2   :  { %s45_s26 = sshll.u32 %s6896_s25, 4  ;;  %p6827_p0 = scmp.ne.s32.totalorder %s8050_s5, %s6826_s29  ;;  %s46_s26 = int_to_ptr.vmem [resolvable:$true] %s45_s26 }
   0x3   :  { %p6830_p1 = scmp.lt.u32.totalorder %s6826_s29, %s8050_s5 }
   0x5   :  { %p6832_p2 = pnand %p6830_p1, %p6827_p0 }
   0x7   :  { %6835 = shalt.err (!%p6832_p2)
}
   0x8   :  { %s6836_s17 = scalar_lea.vmem %s46_s26, 256  ;;  %p6841_p4 = scmp.lt.s32.totalorder %s46_s26, %s46_s26 }
   0x9   :  { %p6837_p3 = scmp.ne.s32.totalorder %s46_s26, %s6836_s17  ;;  %p6842_p5 = scmp.lt.s32.totalorder %s6836_s17, %s6836_s17 }
   0xb   :  { %p6843_p6 = por %p6842_p5, %p6841_p4 }
   0xd   :  { %p6844_p7 = pnand %p6843_p6, %p6837_p3 }
   0xf   :  { %6847 = shalt.err (!%p6844_p7)
}
  0x10   :  { %s6897_s18 = smov 128   ;;  %s6898_s19 = smov 8  }
  0x11   :  { %51 = dma.hbm_to_vmem [thread:$0]  %s8050_s5, 256, %s46_s26, [#allocation5], %s6897_s18, %s6897_s18, %s6898_s19  }
  0x12   :  { %s6899_s22 = smov [#allocation2]   ;;  %s6848_s27 = scalar_lea.hbm %s8047_s2, 24576 }
  0x13   :  { %s29_s23 = sshll.u32 %s6899_s22, 4  ;;  %p6849_p8 = scmp.ne.s32.totalorder %s8047_s2, %s6848_s27  ;;  %s30_s23 = int_to_ptr.vmem [resolvable:$true] %s29_s23 }
  0x14   :  { %p6852_p9 = scmp.lt.u32.totalorder %s6848_s27, %s8047_s2 }
  0x16   :  { %p6854_p10 = pnand %p6852_p9, %p6849_p8 }
  0x18   :  { %6857 = shalt.err (!%p6854_p10)
}
  0x19   :  { %s6858_s15 = scalar_lea.vmem %s30_s23, 24576  ;;  %p6863_p12 = scmp.lt.s32.totalorder %s30_s23, %s30_s23 }
  0x1a   :  { %p6859_p11 = scmp.ne.s32.totalorder %s30_s23, %s6858_s15  ;;  %p6864_p13 = scmp.lt.s32.totalorder %s6858_s15, %s6858_s15 }
  0x1c   :  { %p6865_p0 = por %p6864_p13, %p6863_p12 }
  0x1e   :  { %p6866_p1 = pnand %p6865_p0, %p6859_p11 }
  0x20   :  { %6869 = shalt.err (!%p6866_p1)
}
  0x21   :  { %s6900_s5 = smov 256   ;;  %s6901_s26 = smov 16  }
  0x22   :  { %35 = dma.hbm_to_vmem [thread:$0]  %s8047_s2, 24576, %s30_s23, [#allocation3], %s6900_s5, %s6900_s5, %s6901_s26  }
  0x23   :  { %s6902_s18 = smov [#allocation6]   ;;  %s6870_s22 = scalar_lea.hbm %s8052_s7, 24576 }
  0x24   :  { %s59_s19 = sshll.u32 %s6902_s18, 4  ;;  %p6871_p2 = scmp.ne.s32.totalorder %s8052_s7, %s6870_s22  ;;  %s60_s19 = int_to_ptr.vmem [resolvable:$true] %s59_s19 }
  0x25   :  { %p6874_p3 = scmp.lt.u32.totalorder %s6870_s22, %s8052_s7 }
  0x27   :  { %p6876_p4 = pnand %p6874_p3, %p6871_p2 }
  0x29   :  { %6879 = shalt.err (!%p6876_p4)
}
  0x2a   :  { %s6880_s29 = scalar_lea.vmem %s60_s19, 24576  ;;  %p6885_p6 = scmp.lt.s32.totalorder %s60_s19, %s60_s19 }
  0x2b   :  { %p6881_p5 = scmp.ne.s32.totalorder %s60_s19, %s6880_s29  ;;  %p6886_p7 = scmp.lt.s32.totalorder %s6880_s29, %s6880_s29 }
  0x2d   :  { %p6887_p8 = por %p6886_p7, %p6885_p6 }
  0x2f   :  { %p6888_p9 = pnand %p6887_p8, %p6881_p5 }
  0x31   :  { %6891 = shalt.err (!%p6888_p9)
}
  0x32   :  { %s6903_s2 = smov 384   ;;  %s6904_s23 = smov 24  }
  0x33   :  { %65 = dma.hbm_to_vmem [thread:$0]  %s8052_s7, 24576, %s60_s19, [#allocation5], %s6903_s2, %s6903_s2, %s6904_s23  }
  0x34   :  { %6892 = dma.done.wait [#allocation3], 24576  }
  0x35   :  { %6893 = vsyncadd [#allocation3], 4294942720 }
  0x36   :  { %6894 = dma.done.wait [#allocation5], 24832  }
  0x37   :  { %6895 = vsyncadd [#allocation5], 4294942464  ;;  %v6018_v0 = vld [vmem:[#allocation2 + $0x4] ss:$16 sps:$4 sm:$0xff]   ;;  %v6020_v1 = vld [vmem:[#allocation2] ss:$16 sps:$4 sm:$0xff]   ;;  %v101_v10 = vlaneseq }
  0x38   :  { %1286 = vmatprep.subr.bf16.mxu0 %v6018_v0  ;;  %v6021_v2 = vld [vmem:[#allocation2 + $0x24] ss:$16 sps:$4 sm:$0xff]   ;;  %v6023_v3 = vld [vmem:[#allocation2 + $0x20] ss:$16 sps:$4 sm:$0xff]   ;;  %v6905_v8 = vmov 1983009808  }
  0x39   :  { %1287 = vmatpush1.bf16.msra.mxu0 %v6020_v1  ;;  %v6024_v4 = vld [vmem:[#allocation2 + $0x44] ss:$16 sps:$4 sm:$0xff]   ;;  %v6026_v5 = vld [vmem:[#allocation2 + $0x40] ss:$16 sps:$4 sm:$0xff]   ;;  %v99_v9 = vunpack.c.l.s4 %v6905_v8  ;;  %v7015_v14 = vshrl.u32 %v101_v10, 7  ;;  %vm2014_vm4 = vcmask 1041408  }
  0x3a   :  { %1288 = vmatprep.subr.bf16.mxu0 %v6021_v2  ;;  %v6027_v6 = vld [vmem:[#allocation2 + $0x64] ss:$16 sps:$4 sm:$0xff]   ;;  %v6029_v7 = vld [vmem:[#allocation2 + $0x60] ss:$16 sps:$4 sm:$0xff]   ;;  %v6066_v19 = vld [vmem:[#allocation2 + $0x20c] ss:$16 sps:$4 sm:$0xff]  }
  0x3b   :  { %v6030_v11 = vld [vmem:[#allocation2 + $0x84] ss:$16 sps:$4 sm:$0xff]   ;;  %v6032_v12 = vld [vmem:[#allocation2 + $0x80] ss:$16 sps:$4 sm:$0xff]   ;;  %v100_v13 = vunpack.c.0.s8 %v99_v9  ;;  %v6068_v20 = vld [vmem:[#allocation2 + $0x208] ss:$16 sps:$4 sm:$0xff]   ;;  %1450 = vmatprep.subr.bf16.mxu1 %v6066_v19 }
  0x3c   :  { %v6033_v15 = vld [vmem:[#allocation2 + $0xa4] ss:$16 sps:$4 sm:$0xff]   ;;  %v6035_v16 = vld [vmem:[#allocation2 + $0xa0] ss:$16 sps:$4 sm:$0xff]   ;;  %1451 = vmatpush1.bf16.msra.mxu1 %v6068_v20  ;;  %v6072_v27 = vld [vmem:[#allocation2 + $0x22c] ss:$16 sps:$4 sm:$0xff]  }
  0x3d   :  { %1289 = vmatpush1.bf16.msra.mxu0 %v6023_v3  ;;  %v7018_v17 = vsub.s32 %v100_v13, %v7015_v14  ;;  %v6036_v18 = vld [vmem:[#allocation2 + $0xc4] ss:$16 sps:$4 sm:$0xff]   ;;  %v6038_v22 = vld [vmem:[#allocation2 + $0xc0] ss:$16 sps:$4 sm:$0xff]   ;;  %v6074_v28 = vld [vmem:[#allocation2 + $0x228] ss:$16 sps:$4 sm:$0xff]   ;;  %1452 = vmatprep.subr.bf16.mxu1 %v6072_v27 }
  0x3e   :  { %1290 = vmatprep.subr.bf16.mxu0 %v6024_v4  ;;  %v93_v21 = vld [vmem:[%s8045_s0] sm:$0xff]  ;;  %v6078_v32 = vld [vmem:[#allocation2 + $0x24c] ss:$16 sps:$4 sm:$0xff]   ;;  %v6080_v35 = vld [vmem:[#allocation2 + $0x248] ss:$16 sps:$4 sm:$0xff]   ;;  %vm2045_vm5 = vcmask 1040384  }
  0x3f   :  { %v7024_v23 = vrot.slane %v93_v21, %v7018_v17  ;;  %v97_v24 = vcombine.high %v93_v21, %v93_v21  ;;  %v6039_v25 = vld [vmem:[#allocation2 + $0xe4] ss:$16 sps:$4 sm:$0xff]   ;;  %v6041_v30 = vld [vmem:[#allocation2 + $0xe0] ss:$16 sps:$4 sm:$0xff]   ;;  %v6084_v37 = vld [vmem:[#allocation2 + $0x26c] ss:$16 sps:$4 sm:$0xff]  }
  0x40   :  { %v6042_v34 = vld [vmem:[#allocation2 + $0x104] ss:$16 sps:$4 sm:$0xff]   ;;  %1453 = vmatpush1.bf16.msra.mxu1 %v6074_v28  ;;  %v6044_v38 = vld [vmem:[#allocation2 + $0x100] ss:$16 sps:$4 sm:$0xff]   ;;  %v6086_v40 = vld [vmem:[#allocation2 + $0x268] ss:$16 sps:$4 sm:$0xff]  }
  0x41   :  { %1291 = vmatpush1.bf16.msra.mxu0 %v6026_v5  ;;  %v112_v26 = vcombine.high %v7024_v23, %v7024_v23  ;;  %v7029_v29 = vrot.slane %v97_v24, %v7018_v17  ;;  %1454 = vmatprep.subr.bf16.mxu1 %v6078_v32  ;;  %v6045_v39 = vld [vmem:[#allocation2 + $0x124] ss:$16 sps:$4 sm:$0xff]   ;;  %v6090_v41 = vld [vmem:[#allocation2 + $0x28c] ss:$16 sps:$4 sm:$0xff]   ;;  %v6047_v42 = vld [vmem:[#allocation2 + $0x120] ss:$16 sps:$4 sm:$0xff]   ;;  %v7041_v5 = vpack.c.bf16 %v7024_v23, %v7024_v23 }
  0x42   :  { %1292 = vmatprep.subr.bf16.mxu0 %v6027_v6  ;;  %v6048_v43 = vld [vmem:[#allocation2 + $0x144] ss:$16 sps:$4 sm:$0xff]   ;;  %v6092_v44 = vld [vmem:[#allocation2 + $0x288] ss:$16 sps:$4 sm:$0xff]   ;;  %v6096_v45 = vld [vmem:[#allocation2 + $0x2ac] ss:$16 sps:$4 sm:$0xff]  }
  0x43   :  { %v7031_v31 = vpack.c.bf16 %v112_v26, %v112_v26  ;;  %v113_v33 = vcombine.high %v7029_v29, %v7029_v29  ;;  %v6050_v46 = vld [vmem:[#allocation2 + $0x140] ss:$16 sps:$4 sm:$0xff]   ;;  %v6051_v47 = vld [vmem:[#allocation2 + $0x164] ss:$16 sps:$4 sm:$0xff]   ;;  %v6098_v48 = vld [vmem:[#allocation2 + $0x2a8] ss:$16 sps:$4 sm:$0xff]  }
  0x44   :  { %1455 = vmatpush1.bf16.msra.mxu1 %v6080_v35  ;;  %v6102_v49 = vld [vmem:[#allocation2 + $0x2cc] ss:$16 sps:$4 sm:$0xff]   ;;  %v6053_v50 = vld [vmem:[#allocation2 + $0x160] ss:$16 sps:$4 sm:$0xff]   ;;  %v6054_v51 = vld [vmem:[#allocation2 + $0x184] ss:$16 sps:$4 sm:$0xff]  }
  0x45   :  { %1293 = vmatpush1.bf16.msra.mxu0 %v6029_v7  ;;  %1318 = vmatprep.mubr.bf16.mxu0 %v7031_v31  ;;  %v7036_v36 = vpack.c.bf16 %v113_v33, %v113_v33  ;;  %v6104_v52 = vld [vmem:[#allocation2 + $0x2c8] ss:$16 sps:$4 sm:$0xff]   ;;  %v6108_v53 = vld [vmem:[#allocation2 + $0x2ec] ss:$16 sps:$4 sm:$0xff]   ;;  %v6056_v54 = vld [vmem:[#allocation2 + $0x180] ss:$16 sps:$4 sm:$0xff]   ;;  %v7047_v33 = vpack.c.bf16 %v7029_v29, %v7029_v29 }
  0x46   :  { %1294 = vmatprep.subr.bf16.mxu0 %v6030_v11  ;;  %1456 = vmatprep.subr.bf16.mxu1 %v6084_v37  ;;  %v6057_v55 = vld [vmem:[#allocation2 + $0x1a4] ss:$16 sps:$4 sm:$0xff]   ;;  %v6110_v56 = vld [vmem:[#allocation2 + $0x2e8] ss:$16 sps:$4 sm:$0xff]   ;;  %v6114_v57 = vld [vmem:[#allocation2 + $0x30c] ss:$16 sps:$4 sm:$0xff]  }
  0x47   :  { %1482 = vmatprep.mubr.bf16.mxu1 %v7036_v36  ;;  %v6059_v58 = vld [vmem:[#allocation2 + $0x1a0] ss:$16 sps:$4 sm:$0xff]   ;;  %v6060_v59 = vld [vmem:[#allocation2 + $0x1c4] ss:$16 sps:$4 sm:$0xff]   ;;  %v6116_v60 = vld [vmem:[#allocation2 + $0x308] ss:$16 sps:$4 sm:$0xff]  }
  0x48   :  { %1457 = vmatpush1.bf16.msra.mxu1 %v6086_v40  ;;  %v6120_v61 = vld [vmem:[#allocation2 + $0x32c] ss:$16 sps:$4 sm:$0xff]   ;;  %v6062_v62 = vld [vmem:[#allocation2 + $0x1c0] ss:$16 sps:$4 sm:$0xff]   ;;  %v6063_v63 = vld [vmem:[#allocation2 + $0x1e4] ss:$16 sps:$4 sm:$0xff]  }
  0x49   :  { %1295 = vmatpush1.bf16.msra.mxu0 %v6032_v12  ;;  %1458 = vmatprep.subr.bf16.mxu1 %v6090_v41  ;;  %v6122_v0 = vld [vmem:[#allocation2 + $0x328] ss:$16 sps:$4 sm:$0xff]   ;;  %v6126_v1 = vld [vmem:[#allocation2 + $0x34c] ss:$16 sps:$4 sm:$0xff]   ;;  %v6065_v2 = vld [vmem:[#allocation2 + $0x1e0] ss:$16 sps:$4 sm:$0xff]  }
  0x4a   :  { %1296 = vmatprep.subr.bf16.mxu0 %v6033_v15  ;;  %v6071_v3 = vld [vmem:[#allocation2 + $0x204] ss:$16 sps:$4 sm:$0xff]   ;;  %v6128_v4 = vld [vmem:[#allocation2 + $0x348] ss:$16 sps:$4 sm:$0xff]   ;;  %v6132_v6 = vld [vmem:[#allocation2 + $0x36c] ss:$16 sps:$4 sm:$0xff]  }
  0x4b   :  { %v6069_v7 = vld [vmem:[#allocation2 + $0x200] ss:$16 sps:$4 sm:$0xff]   ;;  %v6077_v8 = vld [vmem:[#allocation2 + $0x224] ss:$16 sps:$4 sm:$0xff]   ;;  %v6134_v9 = vld [vmem:[#allocation2 + $0x368] ss:$16 sps:$4 sm:$0xff]  }
  0x4c   :  { %1459 = vmatpush1.bf16.msra.mxu1 %v6092_v44  ;;  %v6138_v10 = vld [vmem:[#allocation2 + $0x38c] ss:$16 sps:$4 sm:$0xff]   ;;  %v6075_v11 = vld [vmem:[#allocation2 + $0x220] ss:$16 sps:$4 sm:$0xff]   ;;  %v6083_v12 = vld [vmem:[#allocation2 + $0x244] ss:$16 sps:$4 sm:$0xff]  }
  0x4d   :  { %1297 = vmatpush1.bf16.msra.mxu0 %v6035_v16  ;;  %1460 = vmatprep.subr.bf16.mxu1 %v6096_v45  ;;  %v6140_v13 = vld [vmem:[#allocation2 + $0x388] ss:$16 sps:$4 sm:$0xff]   ;;  %v6144_v15 = vld [vmem:[#allocation2 + $0x3ac] ss:$16 sps:$4 sm:$0xff]   ;;  %v6081_v16 = vld [vmem:[#allocation2 + $0x240] ss:$16 sps:$4 sm:$0xff]  }
  0x4e   :  { %1298 = vmatprep.subr.bf16.mxu0 %v6036_v18  ;;  %v6089_v18 = vld [vmem:[#allocation2 + $0x264] ss:$16 sps:$4 sm:$0xff]   ;;  %v6146_v19 = vld [vmem:[#allocation2 + $0x3a8] ss:$16 sps:$4 sm:$0xff]   ;;  %v6150_v20 = vld [vmem:[#allocation2 + $0x3cc] ss:$16 sps:$4 sm:$0xff]  }
  0x4f   :  { %v6087_v21 = vld [vmem:[#allocation2 + $0x260] ss:$16 sps:$4 sm:$0xff]   ;;  %v6152_v23 = vld [vmem:[#allocation2 + $0x3c8] ss:$16 sps:$4 sm:$0xff]   ;;  %v6156_v24 = vld [vmem:[#allocation2 + $0x3ec] ss:$16 sps:$4 sm:$0xff]  }
  0x50   :  { %1461 = vmatpush1.bf16.msra.mxu1 %v6098_v48  ;;  %v6101_v26 = vld [vmem:[#allocation2 + $0x2a4] ss:$16 sps:$4 sm:$0xff]   ;;  %v6158_v27 = vld [vmem:[#allocation2 + $0x3e8] ss:$16 sps:$4 sm:$0xff]   ;;  %v6165_v28 = vld [vmem:[#allocation2 + $0x40c] ss:$16 sps:$4 sm:$0xff]  }
  0x51   :  { %1299 = vmatpush1.bf16.msra.mxu0 %v6038_v22  ;;  %1462 = vmatprep.subr.bf16.mxu1 %v6102_v49  ;;  %v6095_v22 = vld [vmem:[#allocation2 + $0x284] ss:$16 sps:$4 sm:$0xff]   ;;  %v6171_v35 = vld [vmem:[#allocation2 + $0x42c] ss:$16 sps:$4 sm:$0xff]   ;;  %v6111_v40 = vld [vmem:[#allocation2 + $0x2e0] ss:$16 sps:$4 sm:$0xff]  }
  0x52   :  { %1300 = vmatprep.subr.bf16.mxu0 %v6039_v25  ;;  %v6093_v25 = vld [vmem:[#allocation2 + $0x280] ss:$16 sps:$4 sm:$0xff]   ;;  %v6107_v32 = vld [vmem:[#allocation2 + $0x2c4] ss:$16 sps:$4 sm:$0xff]   ;;  %v6175_v29 = vld [vmem:[#allocation2 + $0x448] ss:$16 sps:$4 sm:$0xff]  }
  0x53   :  { %v6113_v37 = vld [vmem:[#allocation2 + $0x2e4] ss:$16 sps:$4 sm:$0xff]   ;;  %v6181_v45 = vld [vmem:[#allocation2 + $0x468] ss:$16 sps:$4 sm:$0xff]   ;;  %vm2172_vm6 = vcmask 130048   ;;  %s6908_s5 = smov 112  }
  0x54   :  { %1463 = vmatpush1.bf16.msra.mxu1 %v6104_v52  ;;  %v6119_v41 = vld [vmem:[#allocation2 + $0x304] ss:$16 sps:$4 sm:$0xff]   ;;  %v6187_v49 = vld [vmem:[#allocation2 + $0x488] ss:$16 sps:$4 sm:$0xff]   ;;  %vm3492_vm11 = vcmask 64512  }
  0x55   :  { %1301 = vmatpush1.bf16.msra.mxu0 %v6041_v30  ;;  %1464 = vmatprep.subr.bf16.mxu1 %v6108_v53  ;;  %v6099_v30 = vld [vmem:[#allocation2 + $0x2a0] ss:$16 sps:$4 sm:$0xff]   ;;  %v6125_v44 = vld [vmem:[#allocation2 + $0x324] ss:$16 sps:$4 sm:$0xff]   ;;  %v6193_v53 = vld [vmem:[#allocation2 + $0x4a8] ss:$16 sps:$4 sm:$0xff]  }
  0x56   :  { %1302 = vmatprep.subr.bf16.mxu0 %v6042_v34  ;;  %v6163_v34 = vld [vmem:[#allocation2 + $0x408] ss:$16 sps:$4 sm:$0xff]   ;;  %v6131_v48 = vld [vmem:[#allocation2 + $0x344] ss:$16 sps:$4 sm:$0xff]  }
  0x57   :  { %v6137_v52 = vld [vmem:[#allocation2 + $0x364] ss:$16 sps:$4 sm:$0xff]  }
  0x58   :  { %1465 = vmatpush1.bf16.msra.mxu1 %v6110_v56  ;;  %v7053_v56 = vld.sshfl [vmem:[%s8045_s0 + $0x8] sm:$0x33 pattern:$0x76325410] }
  0x59   :  { %1303 = vmatpush1.bf16.msra.mxu0 %v6044_v38  ;;  %1466 = vmatprep.subr.bf16.mxu1 %v6114_v57  ;;  %v6169_v38 = vld [vmem:[#allocation2 + $0x428] ss:$16 sps:$4 sm:$0xff]   ;;  %v6143_v57 = vld [vmem:[#allocation2 + $0x384] ss:$16 sps:$4 sm:$0xff]  }
  0x5a   :  { %1304 = vmatprep.subr.bf16.mxu0 %v6045_v39  ;;  %v6177_v39 = vld [vmem:[#allocation2 + $0x44c] ss:$16 sps:$4 sm:$0xff]  }
  0x5c   :  { %1467 = vmatpush1.bf16.msra.mxu1 %v6116_v60  ;;  %v6207_v60 = vld [vmem:[#allocation2 + $0x4ec] ss:$16 sps:$4 sm:$0xff]  }
  0x5d   :  { %1305 = vmatpush1.bf16.msra.mxu0 %v6047_v42  ;;  %1468 = vmatprep.subr.bf16.mxu1 %v6120_v61  ;;  %v6183_v42 = vld [vmem:[#allocation2 + $0x46c] ss:$16 sps:$4 sm:$0xff]  }
  0x5e   :  { %1306 = vmatprep.subr.bf16.mxu0 %v6048_v43  ;;  %v6117_v43 = vld [vmem:[#allocation2 + $0x300] ss:$16 sps:$4 sm:$0xff]  }
  0x60   :  { %1469 = vmatpush1.bf16.msra.mxu1 %v6122_v0  ;;  %v6205_v0 = vld [vmem:[#allocation2 + $0x4e8] ss:$16 sps:$4 sm:$0xff]  }
  0x61   :  { %1307 = vmatpush1.bf16.msra.mxu0 %v6050_v46  ;;  %1470 = vmatprep.subr.bf16.mxu1 %v6126_v1  ;;  %v6189_v46 = vld [vmem:[#allocation2 + $0x48c] ss:$16 sps:$4 sm:$0xff]  }
  0x62   :  { %1308 = vmatprep.subr.bf16.mxu0 %v6051_v47  ;;  %v6123_v47 = vld [vmem:[#allocation2 + $0x320] ss:$16 sps:$4 sm:$0xff]   ;;  %v6213_v1 = vld [vmem:[#allocation2 + $0x50c] ss:$16 sps:$4 sm:$0xff]  }
  0x64   :  { %1471 = vmatpush1.bf16.msra.mxu1 %v6128_v4  ;;  %v6211_v4 = vld [vmem:[#allocation2 + $0x508] ss:$16 sps:$4 sm:$0xff]  }
  0x65   :  { %1309 = vmatpush1.bf16.msra.mxu0 %v6053_v50  ;;  %1472 = vmatprep.subr.bf16.mxu1 %v6132_v6  ;;  %v6195_v50 = vld [vmem:[#allocation2 + $0x4ac] ss:$16 sps:$4 sm:$0xff]  }
  0x66   :  { %1310 = vmatprep.subr.bf16.mxu0 %v6054_v51  ;;  %v6129_v51 = vld [vmem:[#allocation2 + $0x340] ss:$16 sps:$4 sm:$0xff]   ;;  %v6219_v6 = vld [vmem:[#allocation2 + $0x52c] ss:$16 sps:$4 sm:$0xff]  }
  0x68   :  { %1473 = vmatpush1.bf16.msra.mxu1 %v6134_v9  ;;  %v6217_v9 = vld [vmem:[#allocation2 + $0x528] ss:$16 sps:$4 sm:$0xff]  }
  0x69   :  { %1311 = vmatpush1.bf16.msra.mxu0 %v6056_v54  ;;  %1474 = vmatprep.subr.bf16.mxu1 %v6138_v10  ;;  %v6135_v54 = vld [vmem:[#allocation2 + $0x360] ss:$16 sps:$4 sm:$0xff]   ;;  %v6225_v10 = vld [vmem:[#allocation2 + $0x54c] ss:$16 sps:$4 sm:$0xff]  }
  0x6a   :  { %1312 = vmatprep.subr.bf16.mxu0 %v6057_v55  ;;  %v6201_v55 = vld [vmem:[#allocation2 + $0x4cc] ss:$16 sps:$4 sm:$0xff]  }
  0x6c   :  { %1475 = vmatpush1.bf16.msra.mxu1 %v6140_v13  ;;  %v6223_v13 = vld [vmem:[#allocation2 + $0x548] ss:$16 sps:$4 sm:$0xff]  }
  0x6d   :  { %1313 = vmatpush1.bf16.msra.mxu0 %v6059_v58  ;;  %1476 = vmatprep.subr.bf16.mxu1 %v6144_v15  ;;  %v121_v58 = vcombine.high %v7053_v56, %v7053_v56  ;;  %v6231_v15 = vld [vmem:[#allocation2 + $0x56c] ss:$16 sps:$4 sm:$0xff]  }
  0x6e   :  { %1314 = vmatprep.subr.bf16.mxu0 %v6060_v59  ;;  %v6199_v59 = vld [vmem:[#allocation2 + $0x4c8] ss:$16 sps:$4 sm:$0xff]  }
  0x6f   :  { %v133_v61 = vpack.c.bf16 %v121_v58, %v121_v58  ;;  %v6256_v58 = vld [vmem:[#allocation2 + $0x5e0] ss:$16 sps:$4 sm:$0xff]  }
  0x70   :  { %1477 = vmatpush1.bf16.msra.mxu1 %v6146_v19  ;;  %v6229_v19 = vld [vmem:[#allocation2 + $0x568] ss:$16 sps:$4 sm:$0xff]  }
  0x71   :  { %1315 = vmatpush1.bf16.msra.mxu0 %v6062_v62  ;;  %1478 = vmatprep.subr.bf16.mxu1 %v6150_v20  ;;  %v6141_v62 = vld [vmem:[#allocation2 + $0x380] ss:$16 sps:$4 sm:$0xff]  }
  0x72   :  { %1316 = vmatprep.subr.bf16.mxu0 %v6063_v63  ;;  %v6149_v63 = vld [vmem:[#allocation2 + $0x3a4] ss:$16 sps:$4 sm:$0xff]   ;;  %v6172_v20 = vld [vmem:[#allocation2 + $0x420] ss:$16 sps:$4 sm:$0xff]  }
  0x74   :  { %1479 = vmatpush1.bf16.msra.mxu1 %v6152_v23  ;;  %v6235_v23 = vld [vmem:[#allocation2 + $0x588] ss:$16 sps:$4 sm:$0xff]  }
  0x75   :  { %1317 = vmatpush1.bf16.msra.mxu0 %v6065_v2  ;;  %1480 = vmatprep.subr.bf16.mxu1 %v6156_v24  ;;  %v6147_v2 = vld [vmem:[#allocation2 + $0x3a0] ss:$16 sps:$4 sm:$0xff]   ;;  %v6243_v24 = vld [vmem:[#allocation2 + $0x5ac] ss:$16 sps:$4 sm:$0xff]  }
  0x76   :  { %1327 = vmatprep.subr.bf16.mxu0 %v6071_v3  ;;  %v6155_v3 = vld [vmem:[#allocation2 + $0x3c4] ss:$16 sps:$4 sm:$0xff]  }
  0x78   :  { %1319 = vmatmul.mubr.bf16.vlgmr.msra.gmra.mrb[0].mxu0 %v7041_v5  ;;  %1481 = vmatpush1.bf16.msra.mxu1 %v6158_v27  ;;  %v6241_v27 = vld [vmem:[#allocation2 + $0x5a8] ss:$16 sps:$4 sm:$0xff]  }
  0x79   :  { %1328 = vmatpush1.bf16.msra.mxu0 %v6069_v7  ;;  %1359 = vmatprep.mubr.bf16.mxu0 %v7036_v36  ;;  %v6105_v36 = vld [vmem:[#allocation2 + $0x2c0] ss:$16 sps:$4 sm:$0xff]  }
  0x7a   :  { %1329 = vmatprep.subr.bf16.mxu0 %v6077_v8  ;;  %1491 = vmatprep.subr.bf16.mxu1 %v6165_v28  ;;  %v6153_v7 = vld [vmem:[#allocation2 + $0x3c0] ss:$16 sps:$4 sm:$0xff]   ;;  %v6161_v8 = vld [vmem:[#allocation2 + $0x3e4] ss:$16 sps:$4 sm:$0xff]   ;;  %v6249_v28 = vld [vmem:[#allocation2 + $0x5cc] ss:$16 sps:$4 sm:$0xff]  }
  0x7b   :  { %1483 = vmatmul.mubr.bf16.vlgmr.msra.gmra.mrb[0].mxu1 %v7047_v33 }
  0x7c   :  { %1492 = vmatpush1.bf16.msra.mxu1 %v6163_v34  ;;  %1523 = vmatprep.mubr.bf16.mxu1 %v133_v61  ;;  %v6255_v34 = vld [vmem:[#allocation2 + $0x5ec] ss:$16 sps:$4 sm:$0xff]  }
  0x7d   :  { %1330 = vmatpush1.bf16.msra.mxu0 %v6075_v11  ;;  %1493 = vmatprep.subr.bf16.mxu1 %v6171_v35  ;;  %v6159_v11 = vld [vmem:[#allocation2 + $0x3e0] ss:$16 sps:$4 sm:$0xff]  }
  0x7e   :  { %1331 = vmatprep.subr.bf16.mxu0 %v6083_v12  ;;  %v6168_v12 = vld [vmem:[#allocation2 + $0x404] ss:$16 sps:$4 sm:$0xff]   ;;  %v6190_v35 = vld [vmem:[#allocation2 + $0x480] ss:$16 sps:$4 sm:$0xff]  }
  0x80   :  { %1494 = vmatpush1.bf16.msra.mxu1 %v6169_v38  ;;  %v6196_v38 = vld [vmem:[#allocation2 + $0x4a0] ss:$16 sps:$4 sm:$0xff]  }
  0x81   :  { %1332 = vmatpush1.bf16.msra.mxu0 %v6081_v16  ;;  %1495 = vmatprep.subr.bf16.mxu1 %v6177_v39  ;;  %v6166_v16 = vld [vmem:[#allocation2 + $0x400] ss:$16 sps:$4 sm:$0xff]   ;;  %v6204_v39 = vld [vmem:[#allocation2 + $0x4c4] ss:$16 sps:$4 sm:$0xff]  }
  0x82   :  { %1333 = vmatprep.subr.bf16.mxu0 %v6089_v18  ;;  %v6174_v18 = vld [vmem:[#allocation2 + $0x424] ss:$16 sps:$4 sm:$0xff]  }
  0x84   :  { %1496 = vmatpush1.bf16.msra.mxu1 %v6175_v29  ;;  %v6210_v29 = vld [vmem:[#allocation2 + $0x4e4] ss:$16 sps:$4 sm:$0xff]  }
  0x85   :  { %1334 = vmatpush1.bf16.msra.mxu0 %v6087_v21  ;;  %1497 = vmatprep.subr.bf16.mxu1 %v6183_v42  ;;  %v6237_v21 = vld [vmem:[#allocation2 + $0x58c] ss:$16 sps:$4 sm:$0xff]   ;;  %v6208_v42 = vld [vmem:[#allocation2 + $0x4e0] ss:$16 sps:$4 sm:$0xff]  }
  0x86   :  { %1335 = vmatprep.subr.bf16.mxu0 %v6095_v22  ;;  %v6180_v22 = vld [vmem:[#allocation2 + $0x444] ss:$16 sps:$4 sm:$0xff]  }
  0x88   :  { %1498 = vmatpush1.bf16.msra.mxu1 %v6181_v45  ;;  %v6222_v45 = vld [vmem:[#allocation2 + $0x524] ss:$16 sps:$4 sm:$0xff]  }
  0x89   :  { %1336 = vmatpush1.bf16.msra.mxu0 %v6093_v25  ;;  %1499 = vmatprep.subr.bf16.mxu1 %v6189_v46  ;;  %v6178_v25 = vld [vmem:[#allocation2 + $0x440] ss:$16 sps:$4 sm:$0xff]  }
  0x8a   :  { %1337 = vmatprep.subr.bf16.mxu0 %v6101_v26  ;;  %v6186_v26 = vld [vmem:[#allocation2 + $0x464] ss:$16 sps:$4 sm:$0xff]   ;;  %v6220_v46 = vld [vmem:[#allocation2 + $0x520] ss:$16 sps:$4 sm:$0xff]  }
  0x8c   :  { %1500 = vmatpush1.bf16.msra.mxu1 %v6187_v49  ;;  %v6234_v49 = vld [vmem:[#allocation2 + $0x564] ss:$16 sps:$4 sm:$0xff]  }
  0x8d   :  { %1338 = vmatpush1.bf16.msra.mxu0 %v6099_v30  ;;  %1501 = vmatprep.subr.bf16.mxu1 %v6195_v50  ;;  %v6184_v30 = vld [vmem:[#allocation2 + $0x460] ss:$16 sps:$4 sm:$0xff]  }
  0x8e   :  { %1339 = vmatprep.subr.bf16.mxu0 %v6107_v32  ;;  %v6192_v32 = vld [vmem:[#allocation2 + $0x484] ss:$16 sps:$4 sm:$0xff]   ;;  %v6232_v50 = vld [vmem:[#allocation2 + $0x560] ss:$16 sps:$4 sm:$0xff]  }
  0x90   :  { %1502 = vmatpush1.bf16.msra.mxu1 %v6193_v53  ;;  %v6246_v53 = vld [vmem:[#allocation2 + $0x5a4] ss:$16 sps:$4 sm:$0xff]  }
  0x91   :  { %1340 = vmatpush1.bf16.msra.mxu0 %v6105_v36  ;;  %1503 = vmatprep.subr.bf16.mxu1 %v6201_v55  ;;  %v6198_v36 = vld [vmem:[#allocation2 + $0x4a4] ss:$16 sps:$4 sm:$0xff]  }
  0x92   :  { %1341 = vmatprep.subr.bf16.mxu0 %v6113_v37  ;;  %v6253_v37 = vld [vmem:[#allocation2 + $0x5e8] ss:$16 sps:$4 sm:$0xff]   ;;  %v6252_v55 = vld [vmem:[#allocation2 + $0x5c4] ss:$16 sps:$4 sm:$0xff]  }
  0x94   :  { %1504 = vmatpush1.bf16.msra.mxu1 %v6199_v59  ;;  %v6261_v59 = vld [vmem:[#allocation2 + $0xc] ss:$16 sps:$4 sm:$0xff]  }
  0x95   :  { %1342 = vmatpush1.bf16.msra.mxu0 %v6111_v40  ;;  %1505 = vmatprep.subr.bf16.mxu1 %v6207_v60  ;;  %v132_v40 = vpack.c.bf16 %v7053_v56, %v7053_v56  ;;  %v6250_v56 = vld [vmem:[#allocation2 + $0x5c0] ss:$16 sps:$4 sm:$0xff]   ;;  %v6259_v60 = vld [vmem:[#allocation2 + $0x8] ss:$16 sps:$4 sm:$0xff]  }
  0x96   :  { %1343 = vmatprep.subr.bf16.mxu0 %v6119_v41  ;;  %v6202_v41 = vld [vmem:[#allocation2 + $0x4c0] ss:$16 sps:$4 sm:$0xff]  }
  0x98   :  { %1506 = vmatpush1.bf16.msra.mxu1 %v6205_v0  ;;  %v6265_v0 = vld [vmem:[#allocation2 + $0x48] ss:$16 sps:$4 sm:$0xff]  }
  0x99   :  { %1344 = vmatpush1.bf16.msra.mxu0 %v6117_v43  ;;  %1507 = vmatprep.subr.bf16.mxu1 %v6213_v1  ;;  %v6216_v43 = vld [vmem:[#allocation2 + $0x504] ss:$16 sps:$4 sm:$0xff]   ;;  %v6270_v1 = vld [vmem:[#allocation2 + $0x6c] ss:$16 sps:$4 sm:$0xff]  }
  0x9a   :  { %1345 = vmatprep.subr.bf16.mxu0 %v6125_v44  ;;  %v6214_v44 = vld [vmem:[#allocation2 + $0x500] ss:$16 sps:$4 sm:$0xff]  }
  0x9c   :  { %1508 = vmatpush1.bf16.msra.mxu1 %v6211_v4  ;;  %v6271_v4 = vld [vmem:[#allocation2 + $0x88] ss:$16 sps:$4 sm:$0xff]  }
  0x9d   :  { %1346 = vmatpush1.bf16.msra.mxu0 %v6123_v47  ;;  %1509 = vmatprep.subr.bf16.mxu1 %v6219_v6  ;;  %v6228_v47 = vld [vmem:[#allocation2 + $0x544] ss:$16 sps:$4 sm:$0xff]   ;;  %v6276_v6 = vld [vmem:[#allocation2 + $0xac] ss:$16 sps:$4 sm:$0xff]  }
  0x9e   :  { %1347 = vmatprep.subr.bf16.mxu0 %v6131_v48  ;;  %v6226_v48 = vld [vmem:[#allocation2 + $0x540] ss:$16 sps:$4 sm:$0xff]  }
  0xa0   :  { %1510 = vmatpush1.bf16.msra.mxu1 %v6217_v9  ;;  %v6277_v9 = vld [vmem:[#allocation2 + $0xc8] ss:$16 sps:$4 sm:$0xff]  }
  0xa1   :  { %1348 = vmatpush1.bf16.msra.mxu0 %v6129_v51  ;;  %1511 = vmatprep.subr.bf16.mxu1 %v6225_v10  ;;  %v6240_v51 = vld [vmem:[#allocation2 + $0x584] ss:$16 sps:$4 sm:$0xff]   ;;  %v6282_v10 = vld [vmem:[#allocation2 + $0xec] ss:$16 sps:$4 sm:$0xff]  }
  0xa2   :  { %1349 = vmatprep.subr.bf16.mxu0 %v6137_v52  ;;  %v6238_v52 = vld [vmem:[#allocation2 + $0x580] ss:$16 sps:$4 sm:$0xff]  }
  0xa4   :  { %1512 = vmatpush1.bf16.msra.mxu1 %v6223_v13  ;;  %v6288_v13 = vld [vmem:[#allocation2 + $0x12c] ss:$16 sps:$4 sm:$0xff]  }
  0xa5   :  { %1350 = vmatpush1.bf16.msra.mxu0 %v6135_v54  ;;  %1513 = vmatprep.subr.bf16.mxu1 %v6231_v15  ;;  %v6244_v54 = vld [vmem:[#allocation2 + $0x5a0] ss:$16 sps:$4 sm:$0xff]   ;;  %v6286_v15 = vld [vmem:[#allocation2 + $0x128] ss:$16 sps:$4 sm:$0xff]  }
  0xa6   :  { %1351 = vmatprep.subr.bf16.mxu0 %v6143_v57  ;;  %v6258_v57 = vld [vmem:[#allocation2 + $0x5e4] ss:$16 sps:$4 sm:$0xff]  }
  0xa8   :  { %1514 = vmatpush1.bf16.msra.mxu1 %v6229_v19  ;;  %v6294_v19 = vld [vmem:[#allocation2 + $0x16c] ss:$16 sps:$4 sm:$0xff]  }
  0xa9   :  { %1352 = vmatpush1.bf16.msra.mxu0 %v6141_v62  ;;  %1515 = vmatprep.subr.bf16.mxu1 %v6237_v21  ;;  %v6262_v62 = vld [vmem:[#allocation2 + $0x28] ss:$16 sps:$4 sm:$0xff]   ;;  %v6297_v21 = vld [vmem:[#allocation2 + $0x18c] ss:$16 sps:$4 sm:$0xff]  }
  0xaa   :  { %1353 = vmatprep.subr.bf16.mxu0 %v6149_v63  ;;  %v6267_v63 = vld [vmem:[#allocation2 + $0x4c] ss:$16 sps:$4 sm:$0xff]  }
  0xac   :  { %1516 = vmatpush1.bf16.msra.mxu1 %v6235_v23  ;;  %v6300_v23 = vld [vmem:[#allocation2 + $0x1ac] ss:$16 sps:$4 sm:$0xff]  }
  0xad   :  { %1354 = vmatpush1.bf16.msra.mxu0 %v6147_v2  ;;  %1517 = vmatprep.subr.bf16.mxu1 %v6243_v24  ;;  %v6268_v2 = vld [vmem:[#allocation2 + $0x68] ss:$16 sps:$4 sm:$0xff]  }
  0xae   :  { %1355 = vmatprep.subr.bf16.mxu0 %v6155_v3  ;;  %v6273_v3 = vld [vmem:[#allocation2 + $0x8c] ss:$16 sps:$4 sm:$0xff]   ;;  %v6298_v24 = vld [vmem:[#allocation2 + $0x1a8] ss:$16 sps:$4 sm:$0xff]  }
  0xb0   :  { %1518 = vmatpush1.bf16.msra.mxu1 %v6241_v27  ;;  %v6306_v27 = vld [vmem:[#allocation2 + $0x1ec] ss:$16 sps:$4 sm:$0xff]  }
  0xb1   :  { %1356 = vmatpush1.bf16.msra.mxu0 %v6153_v7  ;;  %1519 = vmatprep.subr.bf16.mxu1 %v6249_v28  ;;  %v6274_v7 = vld [vmem:[#allocation2 + $0xa8] ss:$16 sps:$4 sm:$0xff]  }
  0xb2   :  { %1357 = vmatprep.subr.bf16.mxu0 %v6161_v8  ;;  %v6279_v8 = vld [vmem:[#allocation2 + $0xcc] ss:$16 sps:$4 sm:$0xff]   ;;  %v6304_v28 = vld [vmem:[#allocation2 + $0x1e8] ss:$16 sps:$4 sm:$0xff]  }
  0xb5   :  { %1358 = vmatpush1.bf16.msra.mxu0 %v6159_v11  ;;  %v6285_v11 = vld [vmem:[#allocation2 + $0x10c] ss:$16 sps:$4 sm:$0xff]  }
  0xb6   :  { %1368 = vmatprep.subr.bf16.mxu0 %v6168_v12  ;;  %v6283_v12 = vld [vmem:[#allocation2 + $0x108] ss:$16 sps:$4 sm:$0xff]  }
  0xb8   :  { %1360 = vmatmul.mubr.bf16.vlgmr.msra.gmra.mrb[0].mxu0 %v7047_v33  ;;  %v6247_v33 = vld [vmem:[#allocation2 + $0x5c8] ss:$16 sps:$4 sm:$0xff]  }
  0xb9   :  { %1369 = vmatpush1.bf16.msra.mxu0 %v6166_v16  ;;  %1400 = vmatprep.mubr.bf16.mxu0 %v133_v61  ;;  %v6264_v61 = vld [vmem:[#allocation2 + $0x2c] ss:$16 sps:$4 sm:$0xff]  }
  0xba   :  { %1370 = vmatprep.subr.bf16.mxu0 %v6174_v18  ;;  %1520 = vmatpush1.bf16.msra.mxu1 %v6247_v33  ;;  %v6291_v16 = vld [vmem:[#allocation2 + $0x14c] ss:$16 sps:$4 sm:$0xff]   ;;  %v6289_v18 = vld [vmem:[#allocation2 + $0x148] ss:$16 sps:$4 sm:$0xff]  }
  0xbb   :  { %1521 = vmatprep.subr.bf16.mxu1 %v6255_v34  ;;  %v6312_v33 = vld [vmem:[%s8048_s3 + $0x14] ss:$8 sps:$4 sm:$0xff]   ;;  %v6310_v34 = vld [vmem:[%s8048_s3 + $0x10] ss:$8 sps:$4 sm:$0xff]  }
  0xbd   :  { %1371 = vmatpush1.bf16.msra.mxu0 %v6172_v20  ;;  %v6292_v20 = vld [vmem:[#allocation2 + $0x168] ss:$16 sps:$4 sm:$0xff]  }
  0xbe   :  { %1372 = vmatprep.subr.bf16.mxu0 %v6180_v22  ;;  %1522 = vmatpush1.bf16.msra.mxu1 %v6253_v37  ;;  %v6295_v22 = vld [vmem:[#allocation2 + $0x188] ss:$16 sps:$4 sm:$0xff]  }
  0xbf   :  { %v6316_v37 = vld [vmem:[%s8048_s3 + $0x30] ss:$8 sps:$4 sm:$0xff]  }
  0xc1   :  { %1373 = vmatpush1.bf16.msra.mxu0 %v6178_v25  ;;  %1524 = vmatmul.mubr.bf16.vlgmr.msra.gmra.mrb[0].mxu1 %v132_v40  ;;  %v6303_v25 = vld [vmem:[#allocation2 + $0x1cc] ss:$16 sps:$4 sm:$0xff]  }
  0xc2   :  { %1374 = vmatprep.subr.bf16.mxu0 %v6186_v26  ;;  %v6301_v26 = vld [vmem:[#allocation2 + $0x1c8] ss:$16 sps:$4 sm:$0xff]  }
  0xc5   :  { %1375 = vmatpush1.bf16.msra.mxu0 %v6184_v30  ;;  %v6309_v30 = vld [vmem:[%s8048_s3 + $0x4] ss:$8 sps:$4 sm:$0xff]  }
  0xc6   :  { %1376 = vmatprep.subr.bf16.mxu0 %v6192_v32  ;;  %v6307_v32 = vld [vmem:[%s8048_s3] ss:$8 sps:$4 sm:$0xff]  }
  0xc9   :  { %1377 = vmatpush1.bf16.msra.mxu0 %v6190_v35  ;;  %v6315_v35 = vld [vmem:[%s8048_s3 + $0x24] ss:$8 sps:$4 sm:$0xff]  }
  0xca   :  { %1378 = vmatprep.subr.bf16.mxu0 %v6198_v36  ;;  %v6313_v36 = vld [vmem:[%s8048_s3 + $0x20] ss:$8 sps:$4 sm:$0xff]  }
  0xcd   :  { %1379 = vmatpush1.bf16.msra.mxu0 %v6196_v38  ;;  %v6321_v38 = vld [vmem:[%s8048_s3 + $0x44] ss:$8 sps:$4 sm:$0xff]  }
  0xce   :  { %1380 = vmatprep.subr.bf16.mxu0 %v6204_v39  ;;  %v6319_v39 = vld [vmem:[%s8048_s3 + $0x40] ss:$8 sps:$4 sm:$0xff]  }
  0xd1   :  { %1381 = vmatpush1.bf16.msra.mxu0 %v6202_v41  ;;  %v6322_v41 = vld [vmem:[%s8048_s3 + $0x50] ss:$8 sps:$4 sm:$0xff]  }
  0xd2   :  { %1382 = vmatprep.subr.bf16.mxu0 %v6210_v29  ;;  %v6327_v29 = vld [vmem:[%s8048_s3 + $0x64] ss:$8 sps:$4 sm:$0xff]  }
  0xd5   :  { %1383 = vmatpush1.bf16.msra.mxu0 %v6208_v42  ;;  %v6325_v42 = vld [vmem:[%s8048_s3 + $0x60] ss:$8 sps:$4 sm:$0xff]  }
  0xd6   :  { %1384 = vmatprep.subr.bf16.mxu0 %v6216_v43  ;;  %v6330_v43 = vld [vmem:[%s8048_s3 + $0x74] ss:$8 sps:$4 sm:$0xff]  }
  0xd9   :  { %1385 = vmatpush1.bf16.msra.mxu0 %v6214_v44  ;;  %v6328_v44 = vld [vmem:[%s8048_s3 + $0x70] ss:$8 sps:$4 sm:$0xff]  }
  0xda   :  { %1386 = vmatprep.subr.bf16.mxu0 %v6222_v45  ;;  %v6333_v45 = vld [vmem:[%s8048_s3 + $0x84] ss:$8 sps:$4 sm:$0xff]  }
  0xdd   :  { %1387 = vmatpush1.bf16.msra.mxu0 %v6220_v46  ;;  %v6331_v46 = vld [vmem:[%s8048_s3 + $0x80] ss:$8 sps:$4 sm:$0xff]  }
  0xde   :  { %1388 = vmatprep.subr.bf16.mxu0 %v6228_v47  ;;  %v6336_v47 = vld [vmem:[%s8048_s3 + $0x94] ss:$8 sps:$4 sm:$0xff]  }
  0xe1   :  { %1389 = vmatpush1.bf16.msra.mxu0 %v6226_v48  ;;  %v6334_v48 = vld [vmem:[%s8048_s3 + $0x90] ss:$8 sps:$4 sm:$0xff]  }
  0xe2   :  { %1390 = vmatprep.subr.bf16.mxu0 %v6234_v49  ;;  %v6339_v49 = vld [vmem:[%s8048_s3 + $0xa4] ss:$8 sps:$4 sm:$0xff]  }
  0xe5   :  { %1391 = vmatpush1.bf16.msra.mxu0 %v6232_v50  ;;  %v6337_v50 = vld [vmem:[%s8048_s3 + $0xa0] ss:$8 sps:$4 sm:$0xff]  }
  0xe6   :  { %1392 = vmatprep.subr.bf16.mxu0 %v6240_v51  ;;  %v6342_v51 = vld [vmem:[%s8048_s3 + $0xb4] ss:$8 sps:$4 sm:$0xff]  }
  0xe9   :  { %1393 = vmatpush1.bf16.msra.mxu0 %v6238_v52  ;;  %v6340_v52 = vld [vmem:[%s8048_s3 + $0xb0] ss:$8 sps:$4 sm:$0xff]  }
  0xea   :  { %1394 = vmatprep.subr.bf16.mxu0 %v6246_v53  ;;  %v6345_v53 = vld [vmem:[%s8048_s3 + $0xc4] ss:$8 sps:$4 sm:$0xff]  }
  0xed   :  { %1395 = vmatpush1.bf16.msra.mxu0 %v6244_v54  ;;  %v6343_v54 = vld [vmem:[%s8048_s3 + $0xc0] ss:$8 sps:$4 sm:$0xff]  }
  0xee   :  { %1396 = vmatprep.subr.bf16.mxu0 %v6252_v55  ;;  %v6348_v55 = vld [vmem:[%s8048_s3 + $0xd4] ss:$8 sps:$4 sm:$0xff]  }
  0xf1   :  { %1397 = vmatpush1.bf16.msra.mxu0 %v6250_v56  ;;  %v6346_v56 = vld [vmem:[%s8048_s3 + $0xd0] ss:$8 sps:$4 sm:$0xff]  }
  0xf2   :  { %1398 = vmatprep.subr.bf16.mxu0 %v6258_v57  ;;  %v6351_v57 = vld [vmem:[%s8048_s3 + $0xe4] ss:$8 sps:$4 sm:$0xff]  }
  0xf5   :  { %1399 = vmatpush1.bf16.msra.mxu0 %v6256_v58  ;;  %v6349_v58 = vld [vmem:[%s8048_s3 + $0xe0] ss:$8 sps:$4 sm:$0xff]  }
  0xf6   :  { %1409 = vmatprep.subr.bf16.mxu0 %v6261_v59  ;;  %v6354_v59 = vld [vmem:[%s8048_s3 + $0xf4] ss:$8 sps:$4 sm:$0xff]  }
  0xf8   :  { %1401 = vmatmul.mubr.bf16.vlgmr.msra.gmra.mrb[0].mxu0 %v132_v40  ;;  %v6324_v40 = vld [vmem:[%s8048_s3 + $0x54] ss:$8 sps:$4 sm:$0xff]  }
  0xf9   :  { %1410 = vmatpush1.bf16.msra.mxu0 %v6259_v60  ;;  %1441 = vmatprep.mubr.bf16.mxu0 %v7031_v31  ;;  %v6280_v31 = vld [vmem:[#allocation2 + $0xe8] ss:$16 sps:$4 sm:$0xff]  }
  0xfa   :  { %1411 = vmatprep.subr.bf16.mxu0 %v6264_v61  ;;  %v6352_v60 = vld [vmem:[%s8048_s3 + $0xf0] ss:$8 sps:$4 sm:$0xff]   ;;  %v6357_v61 = vld [vmem:[%s8048_s3 + $0x104] ss:$8 sps:$4 sm:$0xff]  }
  0xfd   :  { %1412 = vmatpush1.bf16.msra.mxu0 %v6262_v62  ;;  %v2064_v62 = vld [vmem:[%s8053_s8 + $0x80] sm:$0xff] }
  0xfe   :  { %1413 = vmatprep.subr.bf16.mxu0 %v6267_v63  ;;  %v2065_v63 = vld [vmem:[%s8053_s8 + $0x88] sm:$0xff] }
 0x101   :  { %1414 = vmatpush1.bf16.msra.mxu0 %v6265_v0  ;;  %v2048_v0 = vld [vmem:[%s8053_s8] sm:$0xff] }
 0x102   :  { %1415 = vmatprep.subr.bf16.mxu0 %v6270_v1  ;;  %v7170_v1 = vpack.c.bf16 %v2065_v63, %v2064_v62  ;;  %v6399_v62 = vld [vmem:[%s8048_s3 + $0x1e4] ss:$8 sps:$4 sm:$0xff]   ;;  %v6397_v63 = vld [vmem:[%s8048_s3 + $0x1e0] ss:$8 sps:$4 sm:$0xff]  }
 0x104   :  { %5840 = vmatprep.subr.bf16.mxu1 %v7170_v1 }
 0x105   :  { %1416 = vmatpush1.bf16.msra.mxu0 %v6268_v2  ;;  %v2049_v2 = vld [vmem:[%s8053_s8 + $0x8] sm:$0xff] }
 0x106   :  { %1417 = vmatprep.subr.bf16.mxu0 %v6273_v3  ;;  %v2066_v3 = vld [vmem:[%s8053_s8 + $0x90] sm:$0xff] }
 0x109   :  { %1418 = vmatpush1.bf16.msra.mxu0 %v6271_v4  ;;  %v2067_v4 = vld [vmem:[%s8053_s8 + $0x98] sm:$0xff] }
 0x10a   :  { %1419 = vmatprep.subr.bf16.mxu0 %v6276_v6  ;;  %v7181_v6 = vpack.c.bf16 %v2049_v2, %v2048_v0  ;;  %v6402_v0 = vld [vmem:[%s8048_s3 + $0x1f4] ss:$8 sps:$4 sm:$0xff]  }
 0x10c   :  { %5842 = vmatpush3.bf16.msra.mxu1 %v7181_v6 }
 0x10d   :  { %1420 = vmatpush1.bf16.msra.mxu0 %v6274_v7  ;;  %v7183_v7 = vpack.c.bf16 %v2067_v4, %v2066_v3 }
 0x10e   :  { %1421 = vmatprep.subr.bf16.mxu0 %v6279_v8  ;;  %v2050_v8 = vld [vmem:[%s8053_s8 + $0x10] sm:$0xff] }
 0x10f   :  { %5844 = vmatprep.subr.bf16.mxu1 %v7183_v7 }
 0x111   :  { %1422 = vmatpush1.bf16.msra.mxu0 %v6277_v9  ;;  %v2051_v9 = vld [vmem:[%s8053_s8 + $0x18] sm:$0xff] }
 0x112   :  { %1423 = vmatprep.subr.bf16.mxu0 %v6282_v10  ;;  %v2068_v10 = vld [vmem:[%s8053_s8 + $0xa0] sm:$0xff] }
 0x115   :  { %1424 = vmatpush1.bf16.msra.mxu0 %v6280_v31  ;;  %v2069_v31 = vld [vmem:[%s8053_s8 + $0xa8] sm:$0xff] }
 0x116   :  { %1425 = vmatprep.subr.bf16.mxu0 %v6285_v11  ;;  %v7199_v11 = vpack.c.bf16 %v2051_v9, %v2050_v8  ;;  %v6400_v8 = vld [vmem:[%s8048_s3 + $0x1f0] ss:$8 sps:$4 sm:$0xff]  }
 0x118   :  { %5846 = vmatpush3.bf16.msra.mxu1 %v7199_v11 }
 0x119   :  { %1426 = vmatpush1.bf16.msra.mxu0 %v6283_v12  ;;  %v7202_v12 = vpack.c.bf16 %v2069_v31, %v2068_v10 }
 0x11a   :  { %1427 = vmatprep.subr.bf16.mxu0 %v6288_v13  ;;  %v2052_v13 = vld [vmem:[%s8053_s8 + $0x20] sm:$0xff] }
 0x11b   :  { %5848 = vmatprep.subr.bf16.mxu1 %v7202_v12 }
 0x11d   :  { %1428 = vmatpush1.bf16.msra.mxu0 %v6286_v15  ;;  %v2053_v15 = vld [vmem:[%s8053_s8 + $0x28] sm:$0xff] }
 0x11e   :  { %1429 = vmatprep.subr.bf16.mxu0 %v6291_v16  ;;  %v2070_v16 = vld [vmem:[%s8053_s8 + $0xb0] sm:$0xff] }
 0x121   :  { %1430 = vmatpush1.bf16.msra.mxu0 %v6289_v18  ;;  %v2071_v18 = vld [vmem:[%s8053_s8 + $0xb8] sm:$0xff] }
 0x122   :  { %1431 = vmatprep.subr.bf16.mxu0 %v6294_v19  ;;  %v7217_v19 = vpack.c.bf16 %v2053_v15, %v2052_v13 }
 0x124   :  { %5850 = vmatpush3.bf16.msra.mxu1 %v7217_v19 }
 0x125   :  { %1432 = vmatpush1.bf16.msra.mxu0 %v6292_v20  ;;  %v7220_v20 = vpack.c.bf16 %v2071_v18, %v2070_v16 }
 0x126   :  { %1433 = vmatprep.subr.bf16.mxu0 %v6297_v21 }
 0x127   :  { %5852 = vmatprep.subr.bf16.mxu1 %v7220_v20 }
 0x129   :  { %1434 = vmatpush1.bf16.msra.mxu0 %v6295_v22 }
 0x12a   :  { %1435 = vmatprep.subr.bf16.mxu0 %v6300_v23 }
 0x12d   :  { %1436 = vmatpush1.bf16.msra.mxu0 %v6298_v24 }
 0x12e   :  { %1437 = vmatprep.subr.bf16.mxu0 %v6303_v25 }
 0x131   :  { %1438 = vmatpush1.bf16.msra.mxu0 %v6301_v26 }
 0x132   :  { %1439 = vmatprep.subr.bf16.mxu0 %v6306_v27 }
 0x135   :  { %1440 = vmatpush1.bf16.msra.mxu0 %v6304_v28 }
 0x136   :  { %1932 = vmatprep.subr.bf16.mxu0 %v6309_v30 }
 0x138   :  { %1442 = vmatmul.mubr.bf16.vlgmr.msra.gmra.mrb[4].mxu0 %v7041_v5  ;;  %v6318_v5 = vld [vmem:[%s8048_s3 + $0x34] ss:$8 sps:$4 sm:$0xff]  }
 0x139   :  { %1933 = vmatpush1.bf16.msra.mxu0 %v6307_v32 }
 0x13a   :  { %1934 = vmatprep.subr.bf16.mxu0 %v6312_v33 }
 0x13d   :  { %1935 = vmatpush1.bf16.msra.mxu0 %v6310_v34 }
 0x13e   :  { %1936 = vmatprep.subr.bf16.mxu0 %v6315_v35 }
 0x141   :  { %1937 = vmatpush1.bf16.msra.mxu0 %v6313_v36  ;;  %v6355_v36 = vld [vmem:[%s8048_s3 + $0x100] ss:$8 sps:$4 sm:$0xff]  }
 0x142   :  { %1938 = vmatprep.subr.bf16.mxu0 %v6318_v5 }
 0x145   :  { %1939 = vmatpush1.bf16.msra.mxu0 %v6316_v37  ;;  %v6360_v37 = vld [vmem:[%s8048_s3 + $0x114] ss:$8 sps:$4 sm:$0xff]  }
 0x146   :  { %1940 = vmatprep.subr.bf16.mxu0 %v6321_v38  ;;  %v6358_v38 = vld [vmem:[%s8048_s3 + $0x110] ss:$8 sps:$4 sm:$0xff]  }
 0x149   :  { %1941 = vmatpush1.bf16.msra.mxu0 %v6319_v39  ;;  %v6363_v39 = vld [vmem:[%s8048_s3 + $0x124] ss:$8 sps:$4 sm:$0xff]  }
 0x14a   :  { %1942 = vmatprep.subr.bf16.mxu0 %v6324_v40  ;;  %v6361_v40 = vld [vmem:[%s8048_s3 + $0x120] ss:$8 sps:$4 sm:$0xff]  }
 0x14d   :  { %1943 = vmatpush1.bf16.msra.mxu0 %v6322_v41  ;;  %v6366_v41 = vld [vmem:[%s8048_s3 + $0x134] ss:$8 sps:$4 sm:$0xff]  }
 0x14e   :  { %1944 = vmatprep.subr.bf16.mxu0 %v6327_v29  ;;  %v6364_v29 = vld [vmem:[%s8048_s3 + $0x130] ss:$8 sps:$4 sm:$0xff]  }
 0x151   :  { %1945 = vmatpush1.bf16.msra.mxu0 %v6325_v42  ;;  %v6369_v42 = vld [vmem:[%s8048_s3 + $0x144] ss:$8 sps:$4 sm:$0xff]  }
 0x152   :  { %1946 = vmatprep.subr.bf16.mxu0 %v6330_v43  ;;  %v6367_v43 = vld [vmem:[%s8048_s3 + $0x140] ss:$8 sps:$4 sm:$0xff]  }
 0x155   :  { %1947 = vmatpush1.bf16.msra.mxu0 %v6328_v44  ;;  %v6372_v44 = vld [vmem:[%s8048_s3 + $0x154] ss:$8 sps:$4 sm:$0xff]  }
 0x156   :  { %1948 = vmatprep.subr.bf16.mxu0 %v6333_v45  ;;  %v6370_v45 = vld [vmem:[%s8048_s3 + $0x150] ss:$8 sps:$4 sm:$0xff]  }
 0x159   :  { %1949 = vmatpush1.bf16.msra.mxu0 %v6331_v46  ;;  %v6375_v46 = vld [vmem:[%s8048_s3 + $0x164] ss:$8 sps:$4 sm:$0xff]  }
 0x15a   :  { %1950 = vmatprep.subr.bf16.mxu0 %v6336_v47  ;;  %v6373_v47 = vld [vmem:[%s8048_s3 + $0x160] ss:$8 sps:$4 sm:$0xff]  }
 0x15d   :  { %1951 = vmatpush1.bf16.msra.mxu0 %v6334_v48  ;;  %v6378_v48 = vld [vmem:[%s8048_s3 + $0x174] ss:$8 sps:$4 sm:$0xff]  }
 0x15e   :  { %1952 = vmatprep.subr.bf16.mxu0 %v6339_v49  ;;  %v6376_v49 = vld [vmem:[%s8048_s3 + $0x170] ss:$8 sps:$4 sm:$0xff]  }
 0x161   :  { %1953 = vmatpush1.bf16.msra.mxu0 %v6337_v50  ;;  %v6381_v50 = vld [vmem:[%s8048_s3 + $0x184] ss:$8 sps:$4 sm:$0xff]  }
 0x162   :  { %1954 = vmatprep.subr.bf16.mxu0 %v6342_v51  ;;  %v6379_v51 = vld [vmem:[%s8048_s3 + $0x180] ss:$8 sps:$4 sm:$0xff]  }
 0x165   :  { %1955 = vmatpush1.bf16.msra.mxu0 %v6340_v52  ;;  %v6384_v52 = vld [vmem:[%s8048_s3 + $0x194] ss:$8 sps:$4 sm:$0xff]  }
 0x166   :  { %1956 = vmatprep.subr.bf16.mxu0 %v6345_v53  ;;  %v6382_v53 = vld [vmem:[%s8048_s3 + $0x190] ss:$8 sps:$4 sm:$0xff]  }
 0x169   :  { %1957 = vmatpush1.bf16.msra.mxu0 %v6343_v54  ;;  %v6387_v54 = vld [vmem:[%s8048_s3 + $0x1a4] ss:$8 sps:$4 sm:$0xff]  }
 0x16a   :  { %1958 = vmatprep.subr.bf16.mxu0 %v6348_v55  ;;  %v6385_v55 = vld [vmem:[%s8048_s3 + $0x1a0] ss:$8 sps:$4 sm:$0xff]  }
 0x16d   :  { %1959 = vmatpush1.bf16.msra.mxu0 %v6346_v56  ;;  %v6390_v56 = vld [vmem:[%s8048_s3 + $0x1b4] ss:$8 sps:$4 sm:$0xff]  }
 0x16e   :  { %1960 = vmatprep.subr.bf16.mxu0 %v6351_v57  ;;  %v6388_v57 = vld [vmem:[%s8048_s3 + $0x1b0] ss:$8 sps:$4 sm:$0xff]  }
 0x171   :  { %1961 = vmatpush1.bf16.msra.mxu0 %v6349_v58  ;;  %v6393_v58 = vld [vmem:[%s8048_s3 + $0x1c4] ss:$8 sps:$4 sm:$0xff]  }
 0x172   :  { %1962 = vmatprep.subr.bf16.mxu0 %v6354_v59  ;;  %v6391_v59 = vld [vmem:[%s8048_s3 + $0x1c0] ss:$8 sps:$4 sm:$0xff]  }
 0x175   :  { %1963 = vmatpush1.bf16.msra.mxu0 %v6352_v60  ;;  %v6396_v60 = vld [vmem:[%s8048_s3 + $0x1d4] ss:$8 sps:$4 sm:$0xff]  }
 0x176   :  { %1973 = vmatprep.subr.bf16.mxu0 %v6357_v61  ;;  %v6394_v61 = vld [vmem:[%s8048_s3 + $0x1d0] ss:$8 sps:$4 sm:$0xff]  }
 0x194   :  { %v7222_v21 = vpop.f32.mrb[0].mxu1 }
 0x195   :  { %v7225_v22 = vpop.f32.mrb[1].mxu1 }
 0x196   :  { %v1529_v23 = vpop.f32.mrb[2].mxu1 }
 0x197   :  { %v1530_v24 = vpop.f32.mrb[3].mxu1 }
 0x198   :  { %v2054_v24 = vld [vmem:[%s8053_s8 + $0x30] sm:$0xff] }
 0x1cb   :  { %v1402_v25 = vpop.f32.mrb[0].mxu0 }
 0x1cc   :  { %vm1532_vm0 = vcmp.ge.f32.partialorder %v1402_v25, 0.0  ;;  %v1536_v26 = vmul.f32 0.2, %v1402_v25  ;;  %v1404_v27 = vpop.f32.mrb[1].mxu0 }
 0x1cd   :  { %vm1533_vm1 = vcmp.ge.f32.partialorder %v1404_v27, 0.0  ;;  %v1537_v28 = vmul.f32 0.2, %v1404_v27  ;;  %v1406_v30 = vpop.f32.mrb[2].mxu0 }
 0x1ce   :  { %v1540_v32 = vsel %vm1532_vm0, %v1402_v25, %v1536_v26  ;;  %v1407_v33 = vpop.f32.mrb[3].mxu0  ;;  %v2072_v26 = vld [vmem:[%s8053_s8 + $0xc0] sm:$0xff] }
 0x1cf   :  { %v1541_v34 = vsel %vm1533_vm1, %v1404_v27, %v1537_v28  ;;  %v1544_v5 = vpack.c.bf16 %v1540_v32, %v1540_v32  ;;  %v2073_v27 = vld [vmem:[%s8053_s8 + $0xc8] sm:$0xff]  ;;  %v2056_v30 = vld [vmem:[%s8053_s8 + $0x40] sm:$0xff] }
 0x1d0   :  { %v1545_v35 = vpack.c.bf16 %v1541_v34, %v1541_v34  ;;  %v7338_v28 = vpack.c.bf16 %v2073_v27, %v2072_v26  ;;  %v2057_v32 = vld [vmem:[%s8053_s8 + $0x48] sm:$0xff]  ;;  %v2074_v34 = vld [vmem:[%s8053_s8 + $0xd0] sm:$0xff] }
 0x1d1   :  { %v7346_v33 = vpack.c.bf16 %v2057_v32, %v2056_v30 }
 0x1d2   :  { %1964 = vmatprep.mubr.bf16.mxu0 %v1545_v35  ;;  %v2075_v35 = vld [vmem:[%s8053_s8 + $0xd8] sm:$0xff] }
 0x1d3   :  { %1965 = vmatmul.mubr.bf16.vlgmr.msra.gmra.mrb[8].mxu0 %v1544_v5  ;;  %v2058_v5 = vld [vmem:[%s8053_s8 + $0x50] sm:$0xff] }
 0x1d4   :  { %1974 = vmatpush1.bf16.msra.mxu0 %v6355_v36  ;;  %v7356_v36 = vpack.c.bf16 %v2075_v35, %v2074_v34 }
 0x1d5   :  { %1975 = vmatprep.subr.bf16.mxu0 %v6360_v37  ;;  %v2059_v37 = vld [vmem:[%s8053_s8 + $0x58] sm:$0xff] }
 0x1d8   :  { %1976 = vmatpush1.bf16.msra.mxu0 %v6358_v38  ;;  %v7364_v38 = vpack.c.bf16 %v2059_v37, %v2058_v5  ;;  %v2169_v5 = vld [vmem:[%s8054_s9 + $0x8] sm:$0xff]  ;;  %v2171_v37 = vld [vmem:[%s8054_s9 + $0x18] sm:$0xff] }
 0x1d9   :  { %1977 = vmatprep.subr.bf16.mxu0 %v6363_v39  ;;  %v2076_v39 = vld [vmem:[%s8053_s8 + $0xe0] sm:$0xff] }
 0x1dc   :  { %1978 = vmatpush1.bf16.msra.mxu0 %v6361_v40  ;;  %v2077_v40 = vld [vmem:[%s8053_s8 + $0xe8] sm:$0xff] }
 0x1dd   :  { %1979 = vmatprep.subr.bf16.mxu0 %v6366_v41  ;;  %v7374_v41 = vpack.c.bf16 %v2077_v40, %v2076_v39  ;;  %v7426_v39 = vpack.c.bf16 %v2171_v37, %v2169_v5  ;;  %v2168_v40 = vld [vmem:[%s8054_s9] sm:$0xff] }
 0x1e0   :  { %1980 = vmatpush1.bf16.msra.mxu0 %v6364_v29  ;;  %v2060_v29 = vld [vmem:[%s8053_s8 + $0x60] sm:$0xff] }
 0x1e1   :  { %1981 = vmatprep.subr.bf16.mxu0 %v6369_v42  ;;  %v2061_v42 = vld [vmem:[%s8053_s8 + $0x68] sm:$0xff] }
 0x1e4   :  { %1982 = vmatpush1.bf16.msra.mxu0 %v6367_v43  ;;  %v7382_v43 = vpack.c.bf16 %v2061_v42, %v2060_v29  ;;  %v2170_v29 = vld [vmem:[%s8054_s9 + $0x10] sm:$0xff] }
 0x1e5   :  { %1983 = vmatprep.subr.bf16.mxu0 %v6372_v44  ;;  %v2078_v44 = vld [vmem:[%s8053_s8 + $0xf0] sm:$0xff]  ;;  %v7434_v42 = vpack.c.bf16 %v2170_v29, %v2168_v40 }
 0x1e8   :  { %1984 = vmatpush1.bf16.msra.mxu0 %v6370_v45  ;;  %v2079_v45 = vld [vmem:[%s8053_s8 + $0xf8] sm:$0xff] }
 0x1e9   :  { %1985 = vmatprep.subr.bf16.mxu0 %v6375_v46  ;;  %v2062_v46 = vld [vmem:[%s8053_s8 + $0x70] sm:$0xff] }
 0x1ec   :  { %1986 = vmatpush1.bf16.msra.mxu0 %v6373_v47  ;;  %v7394_v47 = vpack.c.bf16 %v2079_v45, %v2078_v44  ;;  %v6906_v44 = vmov 0.0   ;;  %v6403_v45 = vld [vmem:[%s8049_s4 + $0x40] sm:$0xff]  }
 0x1ed   :  { %1987 = vmatprep.subr.bf16.mxu0 %v6378_v48  ;;  %v2063_v48 = vld [vmem:[%s8053_s8 + $0x78] sm:$0xff] }
 0x1f0   :  { %1988 = vmatpush1.bf16.msra.mxu0 %v6376_v49  ;;  %v7400_v49 = vpack.c.bf16 %v2063_v48, %v2062_v46 }
 0x1f1   :  { %1989 = vmatprep.subr.bf16.mxu0 %v6381_v50 }
 0x1f4   :  { %1990 = vmatpush1.bf16.msra.mxu0 %v6379_v51 }
 0x1f5   :  { %1991 = vmatprep.subr.bf16.mxu0 %v6384_v52 }
 0x1f8   :  { %1992 = vmatpush1.bf16.msra.mxu0 %v6382_v53 }
 0x1f9   :  { %1993 = vmatprep.subr.bf16.mxu0 %v6387_v54 }
 0x1fc   :  { %1994 = vmatpush1.bf16.msra.mxu0 %v6385_v55 }
 0x1fd   :  { %1995 = vmatprep.subr.bf16.mxu0 %v6390_v56 }
 0x200   :  { %1996 = vmatpush1.bf16.msra.mxu0 %v6388_v57 }
 0x201   :  { %1997 = vmatprep.subr.bf16.mxu0 %v6393_v58 }
 0x204   :  { %1998 = vmatpush1.bf16.msra.mxu0 %v6391_v59 }
 0x205   :  { %1999 = vmatprep.subr.bf16.mxu0 %v6396_v60 }
 0x208   :  { %2000 = vmatpush1.bf16.msra.mxu0 %v6394_v61 }
 0x209   :  { %2001 = vmatprep.subr.bf16.mxu0 %v6399_v62 }
 0x20b   :  { %v1443_v2 = vpop.f32.mrb[4].mxu0 }
 0x20c   :  { %v5975_v3 = vadd.f32 %v7222_v21, %v1443_v2  ;;  %v1445_v4 = vpop.f32.mrb[5].mxu0  ;;  %2002 = vmatpush1.bf16.msra.mxu0 %v6397_v63 }
 0x20d   :  { %v5976_v9 = vadd.f32 %v7225_v22, %v1445_v4  ;;  %v1447_v10 = vpop.f32.mrb[6].mxu0  ;;  %2003 = vmatprep.subr.bf16.mxu0 %v6402_v0  ;;  %v2055_v22 = vld [vmem:[%s8053_s8 + $0x38] sm:$0xff] }
 0x20e   :  { %vm1534_vm2 = vcmp.ge.f32.partialorder %v5975_v3, 0.0  ;;  %v1538_v31 = vmul.f32 0.2, %v5975_v3  ;;  %v1448_v13 = vpop.f32.mrb[7].mxu0  ;;  %v7329_v25 = vpack.c.bf16 %v2055_v22, %v2054_v24 }
 0x20f   :  { %vm1535_vm3 = vcmp.ge.f32.partialorder %v5976_v9, 0.0  ;;  %v1539_v15 = vmul.f32 0.2, %v5976_v9 }
 0x210   :  { %v1542_v16 = vsel %vm1534_vm2, %v5975_v3, %v1538_v31  ;;  %2004 = vmatpush1.bf16.msra.mxu0 %v6400_v8  ;;  %5854 = vmatpush3.bf16.msra.mxu1 %v7329_v25 }
 0x211   :  { %v1543_v18 = vsel %vm1535_vm3, %v5976_v9, %v1539_v15  ;;  %v1546_v21 = vpack.c.bf16 %v1542_v16, %v1542_v16  ;;  %5856 = vmatprep.subr.bf16.mxu1 %v7338_v28 }
 0x212   :  { %v1547_v23 = vpack.c.bf16 %v1543_v18, %v1543_v18 }
 0x214   :  { %2005 = vmatprep.mubr.bf16.mxu0 %v1547_v23  ;;  %5858 = vmatpush3.bf16.msra.mxu1 %v7346_v33 }
 0x215   :  { %2006 = vmatmul.mubr.bf16.vlgmr.msra.gmra.mrb[8].mxu0 %v1546_v21  ;;  %5860 = vmatprep.subr.bf16.mxu1 %v7356_v36 }
 0x218   :  { %5862 = vmatpush3.bf16.msra.mxu1 %v7364_v38 }
 0x219   :  { %5864 = vmatprep.subr.bf16.mxu1 %v7374_v41 }
 0x21c   :  { %5866 = vmatpush3.bf16.msra.mxu1 %v7382_v43 }
 0x21d   :  { %5868 = vmatprep.subr.bf16.mxu1 %v7394_v47 }
 0x220   :  { %5870 = vmatpush3.bf16.msra.mxu1 %v7400_v49 }
 0x221   :  { %5872 = vmatprep.subr.bf16.mxu1 %v7426_v39 }
 0x2e8   :  { %v7404_v50 = vpop.f32.mrb[8].mxu0 }
 0x2e9   :  { %v2015_v51 = vsel %vm2014_vm4, %v7404_v50, 0.0  ;;  %v2029_v52 = vmul.f32 %v7404_v50, %v7404_v50  ;;  %v7410_v53 = vpop.f32.mrb[9].mxu0 }
 0x2ea   :  { %v2016_v54 = vrot.slane %v2015_v51, 4  ;;  %v2022_v55 = vsel %vm2014_vm4, %v7410_v53, 0.0  ;;  %v2030_v56 = vmul.f32 %v7410_v53, %v7410_v53  ;;  %v2011_v57 = vpop.f32.mrb[10].mxu0 }
 0x2eb   :  { %v2031_v58 = vsel %vm2014_vm4, %v2029_v52, 0.0  ;;  %v2023_v59 = vrot.slane %v2022_v55, 4  ;;  %v2012_v60 = vpop.f32.mrb[11].mxu0 }
 0x2ec   :  { %v2017_v61 = vadd.f32 %v2016_v54, %v2015_v51  ;;  %v2032_v62 = vrot.slane %v2031_v58, 4  ;;  %v2038_v63 = vsel %vm2014_vm4, %v2030_v56, 0.0 }
 0x2ed   :  { %v2024_v0 = vadd.f32 %v2023_v59, %v2022_v55  ;;  %v2039_v2 = vrot.slane %v2038_v63, 4  ;;  %v86_v59 = vld [vmem:[%s8057_s12] sm:$0x1] }
 0x2ee   :  { %v2018_v3 = vrot.slane %v2017_v61, 2  ;;  %v2033_v4 = vadd.f32 %v2032_v62, %v2031_v58  ;;  %v87_v62 = vld [vmem:[%s8057_s12 + $0x1] sm:$0x1] }
 0x2ef   :  { %v2025_v8 = vrot.slane %v2024_v0, 2  ;;  %v2040_v9 = vadd.f32 %v2039_v2, %v2038_v63 }
 0x2f0   :  { %v2019_v10 = vadd.f32 %v2018_v3, %v2017_v61  ;;  %v2034_v31 = vrot.slane %v2033_v4, 2  ;;  %v6404_v3 = vld [vmem:[%s8049_s4] sm:$0xff]  }
 0x2f1   :  { %v2026_v13 = vadd.f32 %v2025_v8, %v2024_v0  ;;  %v2041_v15 = vrot.slane %v2040_v9, 2 }
 0x2f2   :  { %v2035_v16 = vadd.f32 %v2034_v31, %v2033_v4  ;;  %v2020_v21 = vrot.slane %v2019_v10, 1  ;;  %v6405_v4 = vld [vmem:[%s8049_s4 + $0x48] sm:$0xff]   ;;  %v6408_v31 = vld [vmem:[%s8049_s4 + $0x10] sm:$0xff]  }
 0x2f3   :  { %v2027_v18 = vrot.slane %v2026_v13, 1  ;;  %v2042_v23 = vadd.f32 %v2041_v15, %v2040_v9  ;;  %v6406_v9 = vld [vmem:[%s8049_s4 + $0x8] sm:$0xff]   ;;  %v6410_v15 = vld [vmem:[%s8049_s4 + $0x18] sm:$0xff]  }
 0x2f4   :  { %v2036_v24 = vrot.slane %v2035_v16, 1  ;;  %v2021_v32 = vadd.f32 %v2020_v21, %v2019_v10  ;;  %v6407_v10 = vld [vmem:[%s8049_s4 + $0x50] sm:$0xff]   ;;  %v6414_v21 = vld [vmem:[%s8049_s4 + $0x28] sm:$0xff]  }
 0x2f5   :  { %v2043_v22 = vrot.slane %v2042_v23, 1  ;;  %v2028_v27 = vadd.f32 %v2027_v18, %v2026_v13  ;;  %v6409_v13 = vld [vmem:[%s8049_s4 + $0x58] sm:$0xff]   ;;  %v6412_v18 = vld [vmem:[%s8049_s4 + $0x20] sm:$0xff]  }
 0x2f6   :  { %v2037_v26 = vadd.f32 %v2036_v24, %v2035_v16  ;;  %v6411_v16 = vld [vmem:[%s8049_s4 + $0x60] sm:$0xff]   ;;  %v6415_v24 = vld [vmem:[%s8049_s4 + $0x70] sm:$0xff]  }
 0x2f7   :  { %v2044_v30 = vadd.f32 %v2043_v22, %v2042_v23  ;;  %v6413_v23 = vld [vmem:[%s8049_s4 + $0x68] sm:$0xff]   ;;  %v6416_v22 = vld [vmem:[%s8049_s4 + $0x30] sm:$0xff]  }
 0x2f8   :  { %v2046_v35 = vsel %vm2045_vm5, %v2021_v32, %v2037_v26  ;;  %v6417_v26 = vld [vmem:[%s8049_s4 + $0x78] sm:$0xff]   ;;  %v7499_v32 = vsub.s32 1, %v7015_v14 }
 0x2f9   :  { %v2047_v34 = vsel %vm2045_vm5, %v2028_v27, %v2044_v30  ;;  %v6418_v27 = vld [vmem:[%s8049_s4 + $0x38] sm:$0xff]   ;;  %v7496_v30 = vsub.s32 0, %v7015_v14 }
 0x2fa   :  { %2144 = vmatprep.mubr.f32.mxu1 %v2047_v34 }
 0x2fb   :  { %2145 = vmatmul.mubr.f32.vlgmr.msra.gmra.mrb[4].mxu1 %v2046_v35 }
 0x2fc   :  { %5874 = vmatpush1.bf16.msra.mxu1 %v7434_v42  ;;  %2240 = vmatprep.mubr.f32.mxu1 %v6906_v44 }
 0x2fd   :  { %5712 = vmatprep.subr.bf16.mxu1 %v6403_v45 }
 0x3ce   :  { %v5709_v46 = vpop.f32.mrb[4].mxu1 }
 0x3cf   :  { %v5710_v48 = vpop.f32.mrb[5].mxu1 }
 0x3d0   :  { %v5711_v51 = vadd.f32 %v5710_v48, %v5709_v46 }
 0x3d2   :  { %v2150_v52 = vmul.f32 0.03125, %v5711_v51 }
 0x3d4   :  { %v2151_v54 = vmul.f32 %v2150_v52, %v2150_v52 }
 0x3d6   :  { %v2153_v55 = vrot.slane %v2151_v54, 7 }
 0x3d8   :  { %v2155_v56 = vsub.f32 %v2150_v52, %v2153_v55 }
 0x3da   :  { %v2156_v57 = vadd.f32 1e-05, %v2155_v56 }
 0x3dc   :  { %6806 = vrsqrt.f32 %v2156_v57 }
 0x3e6   :  { %v6807_v58 = vpop.eup %6806 }
 0x3e7   :  { %v2159_v60 = vrot.slane %v6807_v58, 1  ;;  %v6419_v58 = vld [vmem:[#allocation4] ss:$8 sps:$4 sm:$0xff]  }
 0x3e9   :  { %v2161_v61 = vmul.f32 %v2159_v60, %v86_v59  ;;  %v5397_v59 = vld [vmem:[%s8057_s12 + $0x6] ss:$0 sm:$0xff] }
 0x3eb   :  { %v2162_v63 = vmul.f32 %v2161_v61, %v2150_v52 }
 0x3ed   :  { %v2163_v0 = vsub.f32 %v87_v62, %v2162_v63 }
 0x3ef   :  { %v2165_v2 = vrot.slane %v2163_v0, 7 }
 0x3f1   :  { %v2167_v8 = vsel %vm2045_vm5, %v2161_v61, %v2165_v2 }
 0x3f2   :  { %5396 = vmatmul.mubr.msk.f32.vlgmr.msra.gmra.mrb[6].mxu1 %vm2172_vm6, %v2167_v8 }
 0x3f3   :  { %5713 = vmatpush3.bf16.msra.mxu1 %v6404_v3 }
 0x3f4   :  { %5714 = vmatprep.subr.bf16.mxu1 %v6405_v4  ;;  %v6907_v4 = vmov 0  }
 0x3f7   :  { %5715 = vmatpush3.bf16.msra.mxu1 %v6406_v9 }
 0x3f8   :  { %5716 = vmatprep.subr.bf16.mxu1 %v6407_v10 }
 0x3fb   :  { %5717 = vmatpush3.bf16.msra.mxu1 %v6408_v31 }
 0x3fc   :  { %5718 = vmatprep.subr.bf16.mxu1 %v6409_v13 }
 0x3ff   :  { %5719 = vmatpush3.bf16.msra.mxu1 %v6410_v15 }
 0x400   :  { %5720 = vmatprep.subr.bf16.mxu1 %v6411_v16 }
 0x403   :  { %5721 = vmatpush3.bf16.msra.mxu1 %v6412_v18 }
 0x404   :  { %5722 = vmatprep.subr.bf16.mxu1 %v6413_v23 }
 0x407   :  { %5723 = vmatpush3.bf16.msra.mxu1 %v6414_v21 }
 0x408   :  { %5724 = vmatprep.subr.bf16.mxu1 %v6415_v24 }
 0x40b   :  { %5725 = vmatpush3.bf16.msra.mxu1 %v6416_v22 }
 0x40c   :  { %5726 = vmatprep.subr.bf16.mxu1 %v6417_v26 }
 0x40f   :  { %5727 = vmatpush3.bf16.msra.mxu1 %v6418_v27 }
 0x4c5   :  { %v2242_v34 = vpop.f32.mrb[6].mxu1 }
 0x4c6   :  { %v2250_v35 = vrot.slane %v2242_v34, %v7496_v30  ;;  %v2244_v5 = vpop.f32.mrb[7].mxu1  ;;  %v2260_v29 = vrot.slane %v2242_v34, %v7499_v32 }
 0x4c7   :  { %v2254_v37 = vrot.slane %v2244_v5, %v7496_v30  ;;  %v2264_v46 = vrot.slane %v2244_v5, %v7499_v32 }
 0x4c8   :  { %v2255_v40 = vmul.f32 %v2250_v35, %v7404_v50  ;;  %v6421_v50 = vld [vmem:[#allocation4 + $0x4] ss:$8 sps:$4 sm:$0xff]  }
 0x4c9   :  { %v2256_v45 = vmul.f32 %v2254_v37, %v7410_v53  ;;  %2473 = vmatprep.subr.bf16.mxu1 %v6421_v50  ;;  %v6445_v50 = vld [vmem:[%s8051_s6 + $0x6c] ss:$16 sps:$4 sm:$0xff]  }
 0x4ca   :  { %v2265_v48 = vadd.f32 %v2260_v29, %v2255_v40 }
 0x4cb   :  { %v2266_v51 = vadd.f32 %v2264_v46, %v2256_v45 }
 0x4cc   :  { %vm2267_vm7 = vcmp.ge.f32.partialorder %v2265_v48, 0.0  ;;  %v2269_v52 = vmul.f32 0.2, %v2265_v48 }
 0x4cd   :  { %v2270_v14 = vmul.f32 0.2, %v2266_v51  ;;  %vm2268_vm8 = vcmp.ge.f32.partialorder %v2266_v51, 0.0 }
 0x4ce   :  { %v2271_v54 = vsel %vm2267_vm7, %v2265_v48, %v2269_v52 }
 0x4cf   :  { %v2272_v55 = vsel %vm2268_vm8, %v2266_v51, %v2270_v14  ;;  %v2273_v57 = vpack.c.bf16 %v2271_v54, %v2271_v54  ;;  %v6424_v14 = vld [vmem:[%s8051_s6 + $0x4] ss:$16 sps:$4 sm:$0xff]   ;;  %v6425_v54 = vld [vmem:[%s8051_s6 + $0x8] ss:$16 sps:$4 sm:$0xff]  }
 0x4d0   :  { %v2274_v56 = vpack.c.bf16 %v2272_v55, %v2272_v55  ;;  %v6427_v55 = vld [vmem:[%s8051_s6 + $0xc] ss:$16 sps:$4 sm:$0xff]  }
 0x4d1   :  { %3161 = vmatprep.subr.bf16.mxu0 %v6427_v55  ;;  %v6470_v55 = vld [vmem:[%s8051_s6 + $0x100] ss:$16 sps:$4 sm:$0xff]  }
 0x4d2   :  { %2439 = vmatprep.mubr.bf16.mxu1 %v2274_v56  ;;  %v6433_v56 = vld [vmem:[%s8051_s6 + $0x2c] ss:$16 sps:$4 sm:$0xff]   ;;  %3162 = vmatpush1.bf16.msra.mxu0 %v6425_v54  ;;  %v6472_v54 = vld [vmem:[%s8051_s6 + $0x104] ss:$16 sps:$4 sm:$0xff]  }
 0x4d3   :  { %2440 = vmatmul.mubr.bf16.vlgmr.msra.gmra.mrb[8].mxu1 %v2273_v57  ;;  %3163 = vmatprep.subr.bf16.mxu0 %v6433_v56  ;;  %v6439_v57 = vld [vmem:[%s8051_s6 + $0x4c] ss:$16 sps:$4 sm:$0xff]   ;;  %v6478_v56 = vld [vmem:[%s8051_s6 + $0x124] ss:$16 sps:$4 sm:$0xff]  }
 0x4d4   :  { %2474 = vmatpush1.bf16.msra.mxu1 %v6419_v58  ;;  %2505 = vmatprep.mubr.bf16.mxu1 %v6907_v4  ;;  %v6437_v58 = vld [vmem:[%s8051_s6 + $0x48] ss:$16 sps:$4 sm:$0xff]   ;;  %v6475_v4 = vld [vmem:[%s8051_s6 + $0x10c] ss:$16 sps:$4 sm:$0xff]  }
 0x4d5   :  { %5876 = vmatprep.subr.bf16.mxu1 %v7170_v1  ;;  %v2447_v1 = vld [vmem:[%s8046_s1] sm:$0x3] }
 0x5a6   :  { %v5728_v53 = vpop.f32.mrb[8].mxu1 }
 0x5a7   :  { %v5729_v60 = vpop.f32.mrb[9].mxu1 }
 0x5a8   :  { %v5730_v61 = vadd.f32 %v5729_v60, %v5728_v53  ;;  %v5731_v62 = vpop.f32.mrb[10].mxu1  ;;  %v6443_v53 = vld [vmem:[%s8051_s6 + $0x68] ss:$16 sps:$4 sm:$0xff]  }
 0x5a9   :  { %v5732_v63 = vpop.f32.mrb[11].mxu1  ;;  %v6449_v60 = vld [vmem:[%s8051_s6 + $0x88] ss:$16 sps:$4 sm:$0xff]  }
 0x5aa   :  { %v2442_v0 = vadd.f32 %v5730_v61, %v5397_v59  ;;  %v6451_v59 = vld [vmem:[%s8051_s6 + $0x8c] ss:$16 sps:$4 sm:$0xff]   ;;  %v6455_v62 = vld [vmem:[%s8051_s6 + $0xa8] ss:$16 sps:$4 sm:$0xff]  }
 0x5ab   :  { %v6457_v61 = vld [vmem:[%s8051_s6 + $0xac] ss:$16 sps:$4 sm:$0xff]  }
 0x5ac   :  { %v2448_v2 = vmul.f32 0.5, %v2442_v0  ;;  %v6463_v63 = vld [vmem:[%s8051_s6 + $0xcc] ss:$16 sps:$4 sm:$0xff]  }
 0x5ae   :  { %v2449_v3 = vmul.f32 1.442695, %v2448_v2  ;;  %v6469_v2 = vld [vmem:[%s8051_s6 + $0xec] ss:$16 sps:$4 sm:$0xff]  }
 0x5b0   :  { %6808 = vpow2.f32 %v2449_v3  ;;  %v6467_v3 = vld [vmem:[%s8051_s6 + $0xe8] ss:$16 sps:$4 sm:$0xff]  }
 0x5ba   :  { %v6809_v8 = vpop.eup %6808 }
 0x5bb   :  { %2452 = vrot.lane.b32.xlu0 %v6809_v8, %s6908_s5  ;;  %v6473_v8 = vld [vmem:[%s8051_s6 + $0x108] ss:$16 sps:$4 sm:$0xff]  }
 0x62d   :  { %v2453_v9 = vpop.permute.xlu0 %2452 }
 0x62e   :  { %v2455_v10 = vmul.f32 %v2453_v9, %v2447_v1  ;;  %v6481_v1 = vld [vmem:[%s8051_s6 + $0x12c] ss:$16 sps:$4 sm:$0xff]   ;;  %v6479_v9 = vld [vmem:[%s8051_s6 + $0x128] ss:$16 sps:$4 sm:$0xff]  }
 0x630   :  { %v2456_v31 = vadd.f32 %v2455_v10, %v2442_v0  ;;  %v6461_v0 = vld [vmem:[%s8051_s6 + $0xc8] ss:$16 sps:$4 sm:$0xff]   ;;  %v6487_v10 = vld [vmem:[%s8051_s6 + $0x14c] ss:$16 sps:$4 sm:$0xff]  }
 0x632   :  { %v2457_v13 = vpack.c.bf16 %v2456_v31, %v2456_v31  ;;  %v6485_v31 = vld [vmem:[%s8051_s6 + $0x148] ss:$16 sps:$4 sm:$0xff]  }
 0x634   :  { %5416 = vmatmul.mubr.msk.bf16.vlgmr.msra.gmra.mrb[12].mxu1 %vm2172_vm6, %v2457_v13  ;;  %v6493_v13 = vld [vmem:[%s8051_s6 + $0x16c] ss:$16 sps:$4 sm:$0xff]  }
 0x635   :  { %5878 = vmatpush3.bf16.msra.mxu1 %v7181_v6 }
 0x636   :  { %5880 = vmatprep.subr.bf16.mxu1 %v7183_v7 }
 0x639   :  { %5882 = vmatpush3.bf16.msra.mxu1 %v7199_v11 }
 0x63a   :  { %5884 = vmatprep.subr.bf16.mxu1 %v7202_v12 }
 0x63d   :  { %5886 = vmatpush3.bf16.msra.mxu1 %v7217_v19 }
 0x63e   :  { %5888 = vmatprep.subr.bf16.mxu1 %v7220_v20 }
 0x641   :  { %5890 = vmatpush3.bf16.msra.mxu1 %v7329_v25 }
 0x642   :  { %5892 = vmatprep.subr.bf16.mxu1 %v7338_v28 }
 0x645   :  { %5894 = vmatpush3.bf16.msra.mxu1 %v7346_v33 }
 0x646   :  { %5896 = vmatprep.subr.bf16.mxu1 %v7356_v36 }
 0x649   :  { %5898 = vmatpush3.bf16.msra.mxu1 %v7364_v38 }
 0x64a   :  { %5900 = vmatprep.subr.bf16.mxu1 %v7374_v41 }
 0x64d   :  { %5902 = vmatpush3.bf16.msra.mxu1 %v7382_v43 }
 0x64e   :  { %5904 = vmatprep.subr.bf16.mxu1 %v7394_v47 }
 0x651   :  { %5906 = vmatpush3.bf16.msra.mxu1 %v7400_v49 }
 0x652   :  { %5908 = vmatprep.subr.bf16.mxu1 %v7426_v39 }
 0x707   :  { %v7531_v6 = vpop.f32.mrb[12].mxu1 }
 0x708   :  { %v2514_v7 = vsel %vm2014_vm4, %v7531_v6, 0.0  ;;  %v2528_v11 = vmul.f32 %v7531_v6, %v7531_v6  ;;  %v7537_v12 = vpop.f32.mrb[13].mxu1 }
 0x709   :  { %v2515_v19 = vrot.slane %v2514_v7, 4  ;;  %v2521_v20 = vsel %vm2014_vm4, %v7537_v12, 0.0  ;;  %v2529_v25 = vmul.f32 %v7537_v12, %v7537_v12  ;;  %v2511_v28 = vpop.f32.mrb[14].mxu1 }
 0x70a   :  { %v2530_v33 = vsel %vm2014_vm4, %v2528_v11, 0.0  ;;  %v2522_v36 = vrot.slane %v2521_v20, 4  ;;  %v2512_v38 = vpop.f32.mrb[15].mxu1  ;;  %v6499_v11 = vld [vmem:[%s8051_s6 + $0x18c] ss:$16 sps:$4 sm:$0xff]  }
 0x70b   :  { %v2516_v41 = vadd.f32 %v2515_v19, %v2514_v7  ;;  %v2531_v43 = vrot.slane %v2530_v33, 4  ;;  %v2537_v47 = vsel %vm2014_vm4, %v2529_v25, 0.0  ;;  %v6491_v7 = vld [vmem:[%s8051_s6 + $0x168] ss:$16 sps:$4 sm:$0xff]  }
 0x70c   :  { %v2523_v49 = vadd.f32 %v2522_v36, %v2521_v20  ;;  %v2538_v39 = vrot.slane %v2537_v47, 4  ;;  %v6497_v19 = vld [vmem:[%s8051_s6 + $0x188] ss:$16 sps:$4 sm:$0xff]  }
 0x70d   :  { %v2517_v15 = vrot.slane %v2516_v41, 2  ;;  %v2532_v16 = vadd.f32 %v2531_v43, %v2530_v33 }
 0x70e   :  { %v2524_v18 = vrot.slane %v2523_v49, 2  ;;  %v2539_v23 = vadd.f32 %v2538_v39, %v2537_v47 }
 0x70f   :  { %v2518_v21 = vadd.f32 %v2517_v15, %v2516_v41  ;;  %v2533_v24 = vrot.slane %v2532_v16, 2 }
 0x710   :  { %v2525_v22 = vadd.f32 %v2524_v18, %v2523_v49  ;;  %v2540_v26 = vrot.slane %v2539_v23, 2  ;;  %v88_v49 = vld [vmem:[%s8057_s12 + $0x2] sm:$0x1] }
 0x711   :  { %v2534_v27 = vadd.f32 %v2533_v24, %v2532_v16  ;;  %v2519_v5 = vrot.slane %v2518_v21, 1  ;;  %v89_v16 = vld [vmem:[%s8057_s12 + $0x3] sm:$0x1] }
 0x712   :  { %v2526_v34 = vrot.slane %v2525_v22, 1  ;;  %v2541_v35 = vadd.f32 %v2540_v26, %v2539_v23  ;;  %v6422_v24 = vld [vmem:[%s8051_s6] ss:$16 sps:$4 sm:$0xff]  }
 0x713   :  { %v2535_v37 = vrot.slane %v2534_v27, 1  ;;  %v2520_v48 = vadd.f32 %v2519_v5, %v2518_v21  ;;  %v6442_v5 = vld [vmem:[%s8051_s6 + $0x64] ss:$16 sps:$4 sm:$0xff]  }
 0x714   :  { %v2542_v40 = vrot.slane %v2541_v35, 1  ;;  %v2527_v45 = vadd.f32 %v2526_v34, %v2525_v22  ;;  %v6430_v22 = vld [vmem:[%s8051_s6 + $0x24] ss:$16 sps:$4 sm:$0xff]  }
 0x715   :  { %v2536_v29 = vadd.f32 %v2535_v37, %v2534_v27  ;;  %v6428_v27 = vld [vmem:[%s8051_s6 + $0x20] ss:$16 sps:$4 sm:$0xff]   ;;  %v6436_v34 = vld [vmem:[%s8051_s6 + $0x44] ss:$16 sps:$4 sm:$0xff]  }
 0x716   :  { %v2543_v46 = vadd.f32 %v2542_v40, %v2541_v35  ;;  %v6434_v35 = vld [vmem:[%s8051_s6 + $0x40] ss:$16 sps:$4 sm:$0xff]   ;;  %v6448_v40 = vld [vmem:[%s8051_s6 + $0x84] ss:$16 sps:$4 sm:$0xff]  }
 0x717   :  { %v2544_v52 = vsel %vm2045_vm5, %v2520_v48, %v2536_v29  ;;  %v6440_v37 = vld [vmem:[%s8051_s6 + $0x60] ss:$16 sps:$4 sm:$0xff]   ;;  %v6460_v48 = vld [vmem:[%s8051_s6 + $0xc4] ss:$16 sps:$4 sm:$0xff]  }
 0x718   :  { %v2545_v51 = vsel %vm2045_vm5, %v2527_v45, %v2543_v46  ;;  %v6446_v29 = vld [vmem:[%s8051_s6 + $0x80] ss:$16 sps:$4 sm:$0xff]   ;;  %v6454_v45 = vld [vmem:[%s8051_s6 + $0xa4] ss:$16 sps:$4 sm:$0xff]  }
 0x719   :  { %2610 = vmatprep.mubr.f32.mxu1 %v2545_v51  ;;  %v6452_v46 = vld [vmem:[%s8051_s6 + $0xa0] ss:$16 sps:$4 sm:$0xff]  }
 0x71a   :  { %2611 = vmatmul.mubr.f32.vlgmr.msra.gmra.mrb[16].mxu1 %v2544_v52  ;;  %v6458_v51 = vld [vmem:[%s8051_s6 + $0xc0] ss:$16 sps:$4 sm:$0xff]   ;;  %v6466_v52 = vld [vmem:[%s8051_s6 + $0xe4] ss:$16 sps:$4 sm:$0xff]  }
 0x71b   :  { %5910 = vmatpush1.bf16.msra.mxu1 %v7434_v42  ;;  %2701 = vmatprep.mubr.f32.mxu1 %v6906_v44  ;;  %v6431_v42 = vld [vmem:[%s8051_s6 + $0x28] ss:$16 sps:$4 sm:$0xff]  }
 0x71c   :  { %3120 = vmatprep.subr.bf16.mxu1 %v6424_v14  ;;  %3164 = vmatpush1.bf16.msra.mxu0 %v6431_v42  ;;  %v6464_v14 = vld [vmem:[%s8051_s6 + $0xe0] ss:$16 sps:$4 sm:$0xff]  }
 0x71d   :  { %3165 = vmatprep.subr.bf16.mxu0 %v6439_v57  ;;  %v6476_v42 = vld [vmem:[%s8051_s6 + $0x120] ss:$16 sps:$4 sm:$0xff]   ;;  %v6484_v57 = vld [vmem:[%s8051_s6 + $0x144] ss:$16 sps:$4 sm:$0xff]  }
 0x720   :  { %3166 = vmatpush1.bf16.msra.mxu0 %v6437_v58  ;;  %v6482_v58 = vld [vmem:[%s8051_s6 + $0x140] ss:$16 sps:$4 sm:$0xff]  }
 0x721   :  { %3167 = vmatprep.subr.bf16.mxu0 %v6445_v50  ;;  %v6490_v50 = vld [vmem:[%s8051_s6 + $0x164] ss:$16 sps:$4 sm:$0xff]  }
 0x724   :  { %3168 = vmatpush1.bf16.msra.mxu0 %v6443_v53  ;;  %v6488_v53 = vld [vmem:[%s8051_s6 + $0x160] ss:$16 sps:$4 sm:$0xff]  }
 0x725   :  { %3169 = vmatprep.subr.bf16.mxu0 %v6451_v59  ;;  %v6496_v59 = vld [vmem:[%s8051_s6 + $0x184] ss:$16 sps:$4 sm:$0xff]  }
 0x728   :  { %3170 = vmatpush1.bf16.msra.mxu0 %v6449_v60  ;;  %v6494_v60 = vld [vmem:[%s8051_s6 + $0x180] ss:$16 sps:$4 sm:$0xff]  }
 0x729   :  { %3171 = vmatprep.subr.bf16.mxu0 %v6457_v61  ;;  %v6502_v61 = vld [vmem:[%s8051_s6 + $0x1a4] ss:$16 sps:$4 sm:$0xff]  }
 0x72c   :  { %3172 = vmatpush1.bf16.msra.mxu0 %v6455_v62  ;;  %v6505_v62 = vld [vmem:[%s8051_s6 + $0x1ac] ss:$16 sps:$4 sm:$0xff]  }
 0x72d   :  { %3173 = vmatprep.subr.bf16.mxu0 %v6463_v63  ;;  %v6500_v63 = vld [vmem:[%s8051_s6 + $0x1a0] ss:$16 sps:$4 sm:$0xff]  }
 0x730   :  { %3174 = vmatpush1.bf16.msra.mxu0 %v6461_v0  ;;  %v6503_v0 = vld [vmem:[%s8051_s6 + $0x1a8] ss:$16 sps:$4 sm:$0xff]  }
 0x731   :  { %3175 = vmatprep.subr.bf16.mxu0 %v6469_v2  ;;  %v6508_v2 = vld [vmem:[%s8051_s6 + $0x1c4] ss:$16 sps:$4 sm:$0xff]  }
 0x734   :  { %3176 = vmatpush1.bf16.msra.mxu0 %v6467_v3  ;;  %v6511_v3 = vld [vmem:[%s8051_s6 + $0x1cc] ss:$16 sps:$4 sm:$0xff]  }
 0x735   :  { %3177 = vmatprep.subr.bf16.mxu0 %v6475_v4  ;;  %v6506_v4 = vld [vmem:[%s8051_s6 + $0x1c0] ss:$16 sps:$4 sm:$0xff]  }
 0x738   :  { %3178 = vmatpush1.bf16.msra.mxu0 %v6473_v8  ;;  %v6509_v8 = vld [vmem:[%s8051_s6 + $0x1c8] ss:$16 sps:$4 sm:$0xff]  }
 0x739   :  { %3179 = vmatprep.subr.bf16.mxu0 %v6481_v1  ;;  %v6512_v1 = vld [vmem:[%s8051_s6 + $0x1e0] ss:$16 sps:$4 sm:$0xff]  }
 0x73c   :  { %3180 = vmatpush1.bf16.msra.mxu0 %v6479_v9  ;;  %v6514_v9 = vld [vmem:[%s8051_s6 + $0x1e4] ss:$16 sps:$4 sm:$0xff]  }
 0x73d   :  { %3181 = vmatprep.subr.bf16.mxu0 %v6487_v10  ;;  %v6515_v10 = vld [vmem:[%s8051_s6 + $0x1e8] ss:$16 sps:$4 sm:$0xff]  }
 0x740   :  { %3182 = vmatpush1.bf16.msra.mxu0 %v6485_v31  ;;  %v6517_v31 = vld [vmem:[%s8051_s6 + $0x1ec] ss:$16 sps:$4 sm:$0xff]  }
 0x741   :  { %3183 = vmatprep.subr.bf16.mxu0 %v6493_v13  ;;  %v3282_v13 = vld [vmem:[%s8055_s10 + $0x80] sm:$0xff] }
 0x744   :  { %3184 = vmatpush1.bf16.msra.mxu0 %v6491_v7  ;;  %v3283_v7 = vld [vmem:[%s8055_s10 + $0x88] sm:$0xff] }
 0x745   :  { %3185 = vmatprep.subr.bf16.mxu0 %v6499_v11  ;;  %v3314_v11 = vld [vmem:[%s8055_s10 + $0x180] sm:$0xff] }
 0x748   :  { %3186 = vmatpush1.bf16.msra.mxu0 %v6497_v19  ;;  %v5911_v19 = vpack.c.bf16 %v3283_v7, %v3282_v13  ;;  %v3304_v13 = vld [vmem:[%s8055_s10 + $0x130] sm:$0xff] }
 0x749   :  { %3187 = vmatprep.subr.bf16.mxu0 %v6505_v62  ;;  %v3303_v62 = vld [vmem:[%s8055_s10 + $0x128] sm:$0xff] }
 0x74c   :  { %3188 = vmatpush1.bf16.msra.mxu0 %v6503_v0  ;;  %v3289_v0 = vld [vmem:[%s8055_s10 + $0xb8] sm:$0xff] }
 0x74d   :  { %3189 = vmatprep.subr.bf16.mxu0 %v6511_v3  ;;  %v3321_v3 = vld [vmem:[%s8055_s10 + $0x1b8] sm:$0xff] }
 0x750   :  { %3190 = vmatpush1.bf16.msra.mxu0 %v6509_v8 }
 0x751   :  { %3191 = vmatprep.subr.bf16.mxu0 %v6517_v31  ;;  %v3273_v31 = vld [vmem:[%s8055_s10 + $0x38] sm:$0xff] }
 0x754   :  { %3192 = vmatpush1.bf16.msra.mxu0 %v6515_v10  ;;  %v3272_v10 = vld [vmem:[%s8055_s10 + $0x30] sm:$0xff] }
 0x755   :  { %v5925_v7 = vpack.c.bf16 %v3273_v31, %v3272_v10 }
 0x7ed   :  { %v5766_v20 = vpop.f32.mrb[16].mxu1 }
 0x7ee   :  { %v5767_v25 = vpop.f32.mrb[17].mxu1 }
 0x7ef   :  { %v5768_v28 = vadd.f32 %v5767_v25, %v5766_v20  ;;  %v3315_v20 = vld [vmem:[%s8055_s10 + $0x188] sm:$0xff] }
 0x7f0   :  { %v5943_v25 = vpack.c.bf16 %v3315_v20, %v3314_v11  ;;  %v3305_v11 = vld [vmem:[%s8055_s10 + $0x138] sm:$0xff]  ;;  %v3290_v20 = vld [vmem:[%s8055_s10 + $0xc0] sm:$0xff] }
 0x7f1   :  { %v2616_v33 = vmul.f32 0.03125, %v5768_v28 }
 0x7f2   :  { %5944 = vmatprep.subr.bf16.mxu0 %v5943_v25  ;;  %v3291_v25 = vld [vmem:[%s8055_s10 + $0xc8] sm:$0xff] }
 0x7f3   :  { %v2617_v36 = vmul.f32 %v2616_v33, %v2616_v33 }
 0x7f5   :  { %v2619_v38 = vrot.slane %v2617_v36, 7 }
 0x7f7   :  { %v2621_v41 = vsub.f32 %v2616_v33, %v2619_v38 }
 0x7f9   :  { %v2622_v43 = vadd.f32 1e-05, %v2621_v41 }
 0x7fb   :  { %6810 = vrsqrt.f32 %v2622_v43 }
 0x805   :  { %v6811_v47 = vpop.eup %6810 }
 0x806   :  { %v2625_v39 = vrot.slane %v6811_v47, 1 }
 0x808   :  { %v2627_v15 = vmul.f32 %v2625_v39, %v88_v49 }
 0x80a   :  { %v2628_v18 = vmul.f32 %v2627_v15, %v2616_v33 }
 0x80c   :  { %v2629_v23 = vsub.f32 %v89_v16, %v2628_v18  ;;  %v3266_v18 = vld [vmem:[%s8055_s10] sm:$0xff] }
 0x80e   :  { %v2631_v21 = vrot.slane %v2629_v23, 7  ;;  %v3267_v23 = vld [vmem:[%s8055_s10 + $0x8] sm:$0xff] }
 0x810   :  { %v2633_v26 = vsel %vm2045_vm5, %v2627_v15, %v2631_v21 }
 0x811   :  { %5417 = vmatmul.mubr.msk.f32.vlgmr.msra.gmra.mrb[18].mxu1 %vm2172_vm6, %v2633_v26  ;;  %v3285_v26 = vld [vmem:[%s8055_s10 + $0x98] sm:$0xff] }
 0x812   :  { %3121 = vmatpush1.bf16.msra.mxu1 %v6422_v24  ;;  %v3284_v24 = vld [vmem:[%s8055_s10 + $0x90] sm:$0xff] }
 0x813   :  { %3122 = vmatprep.subr.bf16.mxu1 %v6430_v22 }
 0x816   :  { %3123 = vmatpush1.bf16.msra.mxu1 %v6428_v27  ;;  %v3316_v27 = vld [vmem:[%s8055_s10 + $0x190] sm:$0xff] }
 0x817   :  { %3124 = vmatprep.subr.bf16.mxu1 %v6436_v34  ;;  %v3317_v34 = vld [vmem:[%s8055_s10 + $0x198] sm:$0xff] }
 0x81a   :  { %3125 = vmatpush1.bf16.msra.mxu1 %v6434_v35 }
 0x81b   :  { %3126 = vmatprep.subr.bf16.mxu1 %v6442_v5 }
 0x81e   :  { %3127 = vmatpush1.bf16.msra.mxu1 %v6440_v37  ;;  %v5913_v37 = vpack.c.bf16 %v3267_v23, %v3266_v18  ;;  %v3293_v18 = vld [vmem:[%s8055_s10 + $0xd8] sm:$0xff]  ;;  %v3324_v23 = vld [vmem:[%s8055_s10 + $0x1d0] sm:$0xff] }
 0x81f   :  { %3128 = vmatprep.subr.bf16.mxu1 %v6448_v40 }
 0x822   :  { %3129 = vmatpush1.bf16.msra.mxu1 %v6446_v29  ;;  %v3268_v29 = vld [vmem:[%s8055_s10 + $0x10] sm:$0xff] }
 0x823   :  { %3130 = vmatprep.subr.bf16.mxu1 %v6454_v45  ;;  %v3269_v45 = vld [vmem:[%s8055_s10 + $0x18] sm:$0xff] }
 0x826   :  { %3131 = vmatpush1.bf16.msra.mxu1 %v6452_v46 }
 0x827   :  { %3132 = vmatprep.subr.bf16.mxu1 %v6460_v48  ;;  %v5915_v48 = vpack.c.bf16 %v3285_v26, %v3284_v24  ;;  %v3277_v24 = vld [vmem:[%s8055_s10 + $0x58] sm:$0xff] }
 0x82a   :  { %3133 = vmatpush1.bf16.msra.mxu1 %v6458_v51  ;;  %v5947_v51 = vpack.c.bf16 %v3317_v34, %v3316_v27  ;;  %v3308_v27 = vld [vmem:[%s8055_s10 + $0x150] sm:$0xff]  ;;  %v3309_v34 = vld [vmem:[%s8055_s10 + $0x158] sm:$0xff] }
 0x82b   :  { %3134 = vmatprep.subr.bf16.mxu1 %v6466_v52  ;;  %v3300_v52 = vld [vmem:[%s8055_s10 + $0x110] sm:$0xff] }
 0x82e   :  { %3135 = vmatpush1.bf16.msra.mxu1 %v6464_v14  ;;  %v3301_v14 = vld [vmem:[%s8055_s10 + $0x118] sm:$0xff] }
 0x82f   :  { %3136 = vmatprep.subr.bf16.mxu1 %v6472_v54  ;;  %v3286_v54 = vld [vmem:[%s8055_s10 + $0xa0] sm:$0xff] }
 0x832   :  { %3137 = vmatpush1.bf16.msra.mxu1 %v6470_v55  ;;  %v3287_v55 = vld [vmem:[%s8055_s10 + $0xa8] sm:$0xff] }
 0x833   :  { %3138 = vmatprep.subr.bf16.mxu1 %v6478_v56  ;;  %v3318_v56 = vld [vmem:[%s8055_s10 + $0x1a0] sm:$0xff] }
 0x836   :  { %3139 = vmatpush1.bf16.msra.mxu1 %v6476_v42  ;;  %v3319_v42 = vld [vmem:[%s8055_s10 + $0x1a8] sm:$0xff] }
 0x837   :  { %3140 = vmatprep.subr.bf16.mxu1 %v6484_v57  ;;  %v5917_v57 = vpack.c.bf16 %v3269_v45, %v3268_v29  ;;  %v3327_v45 = vld [vmem:[%s8055_s10 + $0x1e8] sm:$0xff] }
 0x83a   :  { %3141 = vmatpush1.bf16.msra.mxu1 %v6482_v58  ;;  %v5949_v58 = vpack.c.bf16 %v3301_v14, %v3300_v52  ;;  %v3310_v14 = vld [vmem:[%s8055_s10 + $0x160] sm:$0xff] }
 0x83b   :  { %3142 = vmatprep.subr.bf16.mxu1 %v6490_v50  ;;  %v3270_v50 = vld [vmem:[%s8055_s10 + $0x20] sm:$0xff] }
 0x83e   :  { %3143 = vmatpush1.bf16.msra.mxu1 %v6488_v53  ;;  %v3271_v53 = vld [vmem:[%s8055_s10 + $0x28] sm:$0xff] }
 0x83f   :  { %3144 = vmatprep.subr.bf16.mxu1 %v6496_v59  ;;  %v5919_v59 = vpack.c.bf16 %v3287_v55, %v3286_v54  ;;  %v3311_v54 = vld [vmem:[%s8055_s10 + $0x168] sm:$0xff]  ;;  %v3296_v55 = vld [vmem:[%s8055_s10 + $0xf0] sm:$0xff] }
 0x842   :  { %3145 = vmatpush1.bf16.msra.mxu1 %v6494_v60  ;;  %v5951_v60 = vpack.c.bf16 %v3319_v42, %v3318_v56  ;;  %v5969_v56 = vpack.c.bf16 %v3311_v54, %v3310_v14  ;;  %v3297_v42 = vld [vmem:[%s8055_s10 + $0xf8] sm:$0xff] }
 0x843   :  { %3146 = vmatprep.subr.bf16.mxu1 %v6502_v61  ;;  %v3302_v61 = vld [vmem:[%s8055_s10 + $0x120] sm:$0xff] }
 0x844   :  { %v5953_v8 = vpack.c.bf16 %v3303_v62, %v3302_v61  ;;  %v3312_v61 = vld [vmem:[%s8055_s10 + $0x170] sm:$0xff] }
 0x846   :  { %3147 = vmatpush1.bf16.msra.mxu1 %v6500_v63  ;;  %v3288_v63 = vld [vmem:[%s8055_s10 + $0xb0] sm:$0xff] }
 0x847   :  { %3148 = vmatprep.subr.bf16.mxu1 %v6508_v2  ;;  %v3320_v2 = vld [vmem:[%s8055_s10 + $0x1b0] sm:$0xff] }
 0x84a   :  { %3149 = vmatpush1.bf16.msra.mxu1 %v6506_v4  ;;  %v5921_v4 = vpack.c.bf16 %v3271_v53, %v3270_v50  ;;  %v5939_v50 = vpack.c.bf16 %v3297_v42, %v3296_v55 }
 0x84b   :  { %3150 = vmatprep.subr.bf16.mxu1 %v6514_v9  ;;  %v5955_v9 = vpack.c.bf16 %v3321_v3, %v3320_v2 }
 0x84e   :  { %3151 = vmatpush1.bf16.msra.mxu1 %v6512_v1  ;;  %v5923_v1 = vpack.c.bf16 %v3289_v0, %v3288_v63  ;;  %v3313_v63 = vld [vmem:[%s8055_s10 + $0x178] sm:$0xff] }
 0x84f   :  { %5912 = vmatprep.subr.bf16.mxu1 %v5911_v19  ;;  %v5957_v19 = vpack.c.bf16 %v3305_v11, %v3304_v13  ;;  %v5973_v0 = vpack.c.bf16 %v3313_v63, %v3312_v61 }
 0x8e4   :  { %v2703_v28 = vpop.f32.mrb[18].mxu1 }
 0x8e5   :  { %v2711_v33 = vrot.slane %v2703_v28, %v7496_v30  ;;  %v2705_v36 = vpop.f32.mrb[19].mxu1  ;;  %v2721_v43 = vrot.slane %v2703_v28, %v7499_v32  ;;  %v3322_v28 = vld [vmem:[%s8055_s10 + $0x1c0] sm:$0xff] }
 0x8e6   :  { %v2715_v38 = vrot.slane %v2705_v36, %v7496_v30  ;;  %v2725_v49 = vrot.slane %v2705_v36, %v7499_v32  ;;  %v3323_v36 = vld [vmem:[%s8055_s10 + $0x1c8] sm:$0xff] }
 0x8e7   :  { %v2716_v41 = vmul.f32 %v2711_v33, %v7531_v6  ;;  %v3298_v6 = vld [vmem:[%s8055_s10 + $0x100] sm:$0xff]  ;;  %v5927_v33 = vpack.c.bf16 %v3291_v25, %v3290_v20 }
 0x8e8   :  { %v2717_v47 = vmul.f32 %v2715_v38, %v7537_v12  ;;  %v3299_v12 = vld [vmem:[%s8055_s10 + $0x108] sm:$0xff]  ;;  %v3274_v38 = vld [vmem:[%s8055_s10 + $0x40] sm:$0xff] }
 0x8e9   :  { %v2726_v39 = vadd.f32 %v2721_v43, %v2716_v41  ;;  %v5945_v40 = vpack.c.bf16 %v3299_v12, %v3298_v6  ;;  %v3275_v41 = vld [vmem:[%s8055_s10 + $0x48] sm:$0xff]  ;;  %v5959_v43 = vpack.c.bf16 %v3323_v36, %v3322_v28  ;;  %v3325_v6 = vld [vmem:[%s8055_s10 + $0x1d8] sm:$0xff]  ;;  %v3276_v12 = vld [vmem:[%s8055_s10 + $0x50] sm:$0xff] }
 0x8ea   :  { %v2727_v15 = vadd.f32 %v2725_v49, %v2717_v47  ;;  %v5929_v47 = vpack.c.bf16 %v3275_v41, %v3274_v38  ;;  %v3306_v49 = vld [vmem:[%s8055_s10 + $0x140] sm:$0xff]  ;;  %v5933_v26 = vpack.c.bf16 %v3277_v24, %v3276_v12 }
 0x8eb   :  { %vm2728_vm9 = vcmp.ge.f32.partialorder %v2726_v39, 0.0  ;;  %v2730_v16 = vmul.f32 0.2, %v2726_v39 }
 0x8ec   :  { %v2731_v21 = vmul.f32 0.2, %v2727_v15  ;;  %vm2729_vm10 = vcmp.ge.f32.partialorder %v2727_v15, 0.0 }
 0x8ed   :  { %v2732_v22 = vsel %vm2728_vm9, %v2726_v39, %v2730_v16  ;;  %v3307_v39 = vld [vmem:[%s8055_s10 + $0x148] sm:$0xff]  ;;  %v3292_v16 = vld [vmem:[%s8055_s10 + $0xd0] sm:$0xff] }
 0x8ee   :  { %v2733_v35 = vsel %vm2729_vm10, %v2727_v15, %v2731_v21  ;;  %v2734_v46 = vpack.c.bf16 %v2732_v22, %v2732_v22  ;;  %v5961_v15 = vpack.c.bf16 %v3307_v39, %v3306_v49  ;;  %v5931_v21 = vpack.c.bf16 %v3293_v18, %v3292_v16 }
 0x8ef   :  { %v2735_v5 = vpack.c.bf16 %v2733_v35, %v2733_v35  ;;  %v5963_v22 = vpack.c.bf16 %v3325_v6, %v3324_v23  ;;  %v5965_v35 = vpack.c.bf16 %v3309_v34, %v3308_v27 }
 0x8f1   :  { %3152 = vmatprep.mubr.bf16.mxu1 %v2735_v5  ;;  %3193 = vmatprep.mubr.bf16.mxu0 %v2735_v5  ;;  %v3294_v5 = vld [vmem:[%s8055_s10 + $0xe0] sm:$0xff] }
 0x8f2   :  { %3153 = vmatmul.mubr.bf16.vlgmr.msra.gmra.mrb[20].mxu1 %v2734_v46  ;;  %3194 = vmatmul.mubr.bf16.vlgmr.msra.gmra.mrb[12].mxu0 %v2734_v46  ;;  %v3278_v46 = vld [vmem:[%s8055_s10 + $0x60] sm:$0xff] }
 0x8f3   :  { %5914 = vmatpush3.bf16.msra.mxu1 %v5913_v37  ;;  %5946 = vmatpush3.bf16.msra.mxu0 %v5945_v40  ;;  %v3295_v37 = vld [vmem:[%s8055_s10 + $0xe8] sm:$0xff]  ;;  %v3326_v40 = vld [vmem:[%s8055_s10 + $0x1e0] sm:$0xff] }
 0x8f4   :  { %5916 = vmatprep.subr.bf16.mxu1 %v5915_v48  ;;  %5948 = vmatprep.subr.bf16.mxu0 %v5947_v51  ;;  %v5935_v29 = vpack.c.bf16 %v3295_v37, %v3294_v5  ;;  %v3279_v48 = vld [vmem:[%s8055_s10 + $0x68] sm:$0xff]  ;;  %v5967_v51 = vpack.c.bf16 %v3327_v45, %v3326_v40 }
 0x8f5   :  { %v5937_v52 = vpack.c.bf16 %v3279_v48, %v3278_v46 }
 0x8f7   :  { %5918 = vmatpush3.bf16.msra.mxu1 %v5917_v57  ;;  %5950 = vmatpush3.bf16.msra.mxu0 %v5949_v58  ;;  %v3328_v57 = vld [vmem:[%s8055_s10 + $0x1f0] sm:$0xff]  ;;  %v3329_v58 = vld [vmem:[%s8055_s10 + $0x1f8] sm:$0xff] }
 0x8f8   :  { %5920 = vmatprep.subr.bf16.mxu1 %v5919_v59  ;;  %5952 = vmatprep.subr.bf16.mxu0 %v5951_v60  ;;  %v5971_v53 = vpack.c.bf16 %v3329_v58, %v3328_v57  ;;  %v3280_v59 = vld [vmem:[%s8055_s10 + $0x70] sm:$0xff]  ;;  %v3281_v60 = vld [vmem:[%s8055_s10 + $0x78] sm:$0xff] }
 0x8f9   :  { %v5941_v62 = vpack.c.bf16 %v3281_v60, %v3280_v59 }
 0x8fb   :  { %5922 = vmatpush3.bf16.msra.mxu1 %v5921_v4  ;;  %5954 = vmatpush3.bf16.msra.mxu0 %v5953_v8 }
 0x8fc   :  { %5924 = vmatprep.subr.bf16.mxu1 %v5923_v1  ;;  %5956 = vmatprep.subr.bf16.mxu0 %v5955_v9 }
 0x8ff   :  { %5926 = vmatpush3.bf16.msra.mxu1 %v5925_v7  ;;  %5958 = vmatpush3.bf16.msra.mxu0 %v5957_v19 }
 0x900   :  { %5928 = vmatprep.subr.bf16.mxu1 %v5927_v33  ;;  %5960 = vmatprep.subr.bf16.mxu0 %v5959_v43 }
 0x903   :  { %5930 = vmatpush3.bf16.msra.mxu1 %v5929_v47  ;;  %5962 = vmatpush3.bf16.msra.mxu0 %v5961_v15 }
 0x904   :  { %5932 = vmatprep.subr.bf16.mxu1 %v5931_v21  ;;  %5964 = vmatprep.subr.bf16.mxu0 %v5963_v22 }
 0x907   :  { %5934 = vmatpush3.bf16.msra.mxu1 %v5933_v26  ;;  %5966 = vmatpush3.bf16.msra.mxu0 %v5965_v35 }
 0x908   :  { %5936 = vmatprep.subr.bf16.mxu1 %v5935_v29  ;;  %5968 = vmatprep.subr.bf16.mxu0 %v5967_v51 }
 0x90b   :  { %5938 = vmatpush3.bf16.msra.mxu1 %v5937_v52  ;;  %5970 = vmatpush3.bf16.msra.mxu0 %v5969_v56 }
 0x90c   :  { %5940 = vmatprep.subr.bf16.mxu1 %v5939_v50  ;;  %5972 = vmatprep.subr.bf16.mxu0 %v5971_v53 }
 0x90f   :  { %5942 = vmatpush3.bf16.msra.mxu1 %v5941_v62  ;;  %5974 = vmatpush3.bf16.msra.mxu0 %v5973_v0 }
 0x9c5   :  { %v7947_v2 = vpop.f32.mrb[20].mxu1  ;;  %v7949_v3 = vpop.f32.mrb[12].mxu0 }
 0x9c6   :  { %v3202_v4 = vsel %vm2014_vm4, %v7947_v2, 0.0  ;;  %v3230_v8 = vmul.f32 %v7947_v2, %v7947_v2  ;;  %v3216_v1 = vsel %vm2014_vm4, %v7949_v3, 0.0  ;;  %v3232_v9 = vmul.f32 %v7949_v3, %v7949_v3  ;;  %v7959_v10 = vpop.f32.mrb[21].mxu1  ;;  %v7961_v31 = vpop.f32.mrb[13].mxu0 }
 0x9c7   :  { %v3203_v13 = vrot.slane %v3202_v4, 4  ;;  %v3217_v7 = vrot.slane %v3216_v1, 4  ;;  %v3209_v11 = vsel %vm2014_vm4, %v7959_v10, 0.0  ;;  %v3231_v19 = vmul.f32 %v7959_v10, %v7959_v10  ;;  %v3158_v20 = vpop.f32.mrb[22].mxu1  ;;  %v3199_v25 = vpop.f32.mrb[14].mxu0 }
 0x9c8   :  { %v3234_v28 = vsel %vm2014_vm4, %v3230_v8, 0.0  ;;  %v3248_v33 = vsel %vm2014_vm4, %v3232_v9, 0.0  ;;  %v3210_v36 = vrot.slane %v3209_v11, 4  ;;  %v3223_v38 = vsel %vm2014_vm4, %v7961_v31, 0.0  ;;  %v3159_v41 = vpop.f32.mrb[23].mxu1  ;;  %v3200_v43 = vpop.f32.mrb[15].mxu0 }
 0x9c9   :  { %v3204_v47 = vadd.f32 %v3203_v13, %v3202_v4  ;;  %v3235_v49 = vrot.slane %v3234_v28, 4  ;;  %v3218_v39 = vadd.f32 %v3217_v7, %v3216_v1  ;;  %v3249_v15 = vrot.slane %v3248_v33, 4  ;;  %v3491_v41 = vld [vmem:[%s8056_s11 + $0x18] sm:$0xff] }
 0x9ca   :  { %v3211_v16 = vadd.f32 %v3210_v36, %v3209_v11  ;;  %v3241_v18 = vsel %vm2014_vm4, %v3231_v19, 0.0  ;;  %v3224_v23 = vrot.slane %v3223_v38, 4  ;;  %v3233_v21 = vmul.f32 %v7961_v31, %v7961_v31  ;;  %v3489_v36 = vld [vmem:[%s8056_s11 + $0x8] sm:$0xff]  ;;  %v6521_v43 = vld [vmem:[#allocation6 + $0x8] ss:$24 sps:$4 sm:$0xff]  }
 0x9cb   :  { %v3205_v6 = vrot.slane %v3204_v47, 2  ;;  %v3236_v12 = vadd.f32 %v3235_v49, %v3234_v28  ;;  %v3250_v24 = vadd.f32 %v3249_v15, %v3248_v33  ;;  %v3242_v26 = vrot.slane %v3241_v18, 4  ;;  %3496 = vmatprep.subr.mxu1 %v3489_v36  ;;  %v6529_v49 = vld [vmem:[#allocation6 + $0x3c] ss:$24 sps:$4 sm:$0xff]   ;;  %v6535_v15 = vld [vmem:[#allocation6 + $0x6c] ss:$24 sps:$4 sm:$0xff]  }
 0x9cc   :  { %v3212_v22 = vrot.slane %v3211_v16, 2  ;;  %v3225_v27 = vadd.f32 %v3224_v23, %v3223_v38  ;;  %v3255_v34 = vsel %vm2014_vm4, %v3233_v21, 0.0  ;;  %v3219_v5 = vrot.slane %v3218_v39, 2  ;;  %v3488_v38 = vld [vmem:[%s8056_s11] sm:$0xff]  ;;  %v6547_v21 = vld [vmem:[#allocation6 + $0xcc] ss:$24 sps:$4 sm:$0xff]  }
 0x9cd   :  { %v3237_v35 = vrot.slane %v3236_v12, 2  ;;  %v3251_v37 = vrot.slane %v3250_v24, 2  ;;  %v3243_v29 = vadd.f32 %v3242_v26, %v3241_v18  ;;  %v3256_v46 = vrot.slane %v3255_v34, 4  ;;  %v6541_v18 = vld [vmem:[#allocation6 + $0x9c] ss:$24 sps:$4 sm:$0xff]  }
 0x9ce   :  { %v3213_v40 = vadd.f32 %v3212_v22, %v3211_v16  ;;  %v3226_v45 = vrot.slane %v3225_v27, 2  ;;  %v3206_v48 = vadd.f32 %v3205_v6, %v3204_v47  ;;  %v3220_v56 = vadd.f32 %v3219_v5, %v3218_v39  ;;  %v6523_v47 = vld [vmem:[#allocation6 + $0xc] ss:$24 sps:$4 sm:$0xff]   ;;  %v6527_v39 = vld [vmem:[#allocation6 + $0x38] ss:$24 sps:$4 sm:$0xff]  }
 0x9cf   :  { %v3238_v51 = vadd.f32 %v3237_v35, %v3236_v12  ;;  %v3252_v52 = vadd.f32 %v3251_v37, %v3250_v24  ;;  %v3244_v14 = vrot.slane %v3243_v29, 2  ;;  %v3257_v55 = vadd.f32 %v3256_v46, %v3255_v34  ;;  %4928 = vmatprep.subr.bf16.mxu0 %v6523_v47  ;;  %v6533_v16 = vld [vmem:[#allocation6 + $0x68] ss:$24 sps:$4 sm:$0xff]   ;;  %v6539_v23 = vld [vmem:[#allocation6 + $0x98] ss:$24 sps:$4 sm:$0xff]  }
 0x9d0   :  { %v3227_v54 = vadd.f32 %v3226_v45, %v3225_v27  ;;  %v3214_v58 = vrot.slane %v3213_v40, 1  ;;  %v3207_v53 = vrot.slane %v3206_v48, 1  ;;  %v3221_v63 = vrot.slane %v3220_v56, 1  ;;  %v6545_v6 = vld [vmem:[#allocation6 + $0xc8] ss:$24 sps:$4 sm:$0xff]  }
 0x9d1   :  { %v3239_v42 = vrot.slane %v3238_v51, 1  ;;  %v3258_v57 = vrot.slane %v3257_v55, 2  ;;  %v3245_v50 = vadd.f32 %v3244_v14, %v3243_v29  ;;  %v3253_v59 = vrot.slane %v3252_v52, 1  ;;  %v6553_v12 = vld [vmem:[#allocation6 + $0xfc] ss:$24 sps:$4 sm:$0xff]  }
 0x9d2   :  { %v3228_v61 = vrot.slane %v3227_v54, 1  ;;  %v3215_v4 = vadd.f32 %v3214_v58, %v3213_v40  ;;  %v3208_v9 = vadd.f32 %v3207_v53, %v3206_v48  ;;  %v3222_v25 = vadd.f32 %v3221_v63, %v3220_v56  ;;  %v6551_v24 = vld [vmem:[#allocation6 + $0xf8] ss:$24 sps:$4 sm:$0xff]   ;;  %v6559_v22 = vld [vmem:[#allocation6 + $0x12c] ss:$24 sps:$4 sm:$0xff]  }
 0x9d3   :  { %v3246_v60 = vrot.slane %v3245_v50, 1  ;;  %v3259_v62 = vadd.f32 %v3258_v57, %v3257_v55  ;;  %v3240_v0 = vadd.f32 %v3239_v42, %v3238_v51  ;;  %v3254_v13 = vadd.f32 %v3253_v59, %v3252_v52  ;;  %v6557_v26 = vld [vmem:[#allocation6 + $0x128] ss:$24 sps:$4 sm:$0xff]   ;;  %v6565_v27 = vld [vmem:[#allocation6 + $0x15c] ss:$24 sps:$4 sm:$0xff]  }
 0x9d4   :  { %v3229_v11 = vadd.f32 %v3228_v61, %v3227_v54  ;;  %v6563_v34 = vld [vmem:[#allocation6 + $0x158] ss:$24 sps:$4 sm:$0xff]   ;;  %v6571_v35 = vld [vmem:[#allocation6 + $0x18c] ss:$24 sps:$4 sm:$0xff]   ;;  %v6569_v5 = vld [vmem:[#allocation6 + $0x188] ss:$24 sps:$4 sm:$0xff]  }
 0x9d5   :  { %v3247_v8 = vadd.f32 %v3246_v60, %v3245_v50  ;;  %v3260_v1 = vrot.slane %v3259_v62, 1  ;;  %v3262_v20 = vsel %vm2045_vm5, %v3208_v9, %v3240_v0  ;;  %v3264_v33 = vsel %vm2045_vm5, %v3222_v25, %v3254_v13  ;;  %v6577_v37 = vld [vmem:[#allocation6 + $0x1bc] ss:$24 sps:$4 sm:$0xff]   ;;  %v6575_v40 = vld [vmem:[#allocation6 + $0x1b8] ss:$24 sps:$4 sm:$0xff]  }
 0x9d6   :  { %v6583_v29 = vld [vmem:[#allocation6 + $0x1ec] ss:$24 sps:$4 sm:$0xff]   ;;  %v6581_v45 = vld [vmem:[#allocation6 + $0x1e8] ss:$24 sps:$4 sm:$0xff]   ;;  %v6589_v46 = vld [vmem:[#allocation6 + $0x21c] ss:$24 sps:$4 sm:$0xff]  }
 0x9d7   :  { %v3263_v7 = vsel %vm2045_vm5, %v3215_v4, %v3247_v8  ;;  %v3261_v19 = vadd.f32 %v3260_v1, %v3259_v62  ;;  %v6587_v48 = vld [vmem:[#allocation6 + $0x218] ss:$24 sps:$4 sm:$0xff]   ;;  %v6595_v51 = vld [vmem:[#allocation6 + $0x24c] ss:$24 sps:$4 sm:$0xff]   ;;  %v6593_v52 = vld [vmem:[#allocation6 + $0x248] ss:$24 sps:$4 sm:$0xff]  }
 0x9d8   :  { %3394 = vmatprep.mubr.f32.mxu1 %v3263_v7  ;;  %v90_v63 = vld [vmem:[%s8057_s12 + $0x4] sm:$0x1]  ;;  %v91_v8 = vld [vmem:[%s8057_s12 + $0x5] sm:$0x1]  ;;  %v3490_v7 = vld [vmem:[%s8056_s11 + $0x10] sm:$0xff] }
 0x9d9   :  { %v3265_v28 = vsel %vm2045_vm5, %v3229_v11, %v3261_v19  ;;  %3395 = vmatmul.mubr.f32.vlgmr.msra.gmra.mrb[24].mxu1 %v3262_v20  ;;  %v6520_v11 = vld [vmem:[#allocation6 + $0x4] ss:$24 sps:$4 sm:$0xff]   ;;  %v6518_v20 = vld [vmem:[#allocation6] ss:$24 sps:$4 sm:$0xff]   ;;  %v6526_v25 = vld [vmem:[#allocation6 + $0x34] ss:$24 sps:$4 sm:$0xff]  }
 0x9da   :  { %3464 = vmatprep.mubr.f32.mxu0 %v3265_v28  ;;  %3560 = vmatprep.mubr.f32.mxu1 %v6906_v44  ;;  %v6524_v28 = vld [vmem:[#allocation6 + $0x30] ss:$24 sps:$4 sm:$0xff]   ;;  %v6530_v36 = vld [vmem:[#allocation6 + $0x60] ss:$24 sps:$4 sm:$0xff]  }
 0x9db   :  { %3465 = vmatmul.mubr.f32.vlgmr.msra.gmra.mrb[16].mxu0 %v3264_v33  ;;  %3497 = vmatpush1.msra.mxu1 %v3488_v38  ;;  %v6532_v33 = vld [vmem:[#allocation6 + $0x64] ss:$24 sps:$4 sm:$0xff]   ;;  %v6538_v38 = vld [vmem:[#allocation6 + $0x94] ss:$24 sps:$4 sm:$0xff]   ;;  %v6542_v47 = vld [vmem:[#allocation6 + $0xc0] ss:$24 sps:$4 sm:$0xff]  }
 0x9dc   :  { %3567 = vmatprep.subr.mxu1 %v3491_v41  ;;  %4929 = vmatpush1.bf16.msra.mxu0 %v6521_v43  ;;  %v6536_v41 = vld [vmem:[#allocation6 + $0x90] ss:$24 sps:$4 sm:$0xff]   ;;  %v6544_v43 = vld [vmem:[#allocation6 + $0xc4] ss:$24 sps:$4 sm:$0xff]  }
 0x9dd   :  { %4930 = vmatprep.subr.bf16.mxu0 %v6529_v49  ;;  %v6548_v49 = vld [vmem:[#allocation6 + $0xf0] ss:$24 sps:$4 sm:$0xff]  }
 0x9e0   :  { %4931 = vmatpush1.bf16.msra.mxu0 %v6527_v39  ;;  %v6556_v39 = vld [vmem:[#allocation6 + $0x124] ss:$24 sps:$4 sm:$0xff]  }
 0x9e1   :  { %4932 = vmatprep.subr.bf16.mxu0 %v6535_v15  ;;  %v6554_v15 = vld [vmem:[#allocation6 + $0x120] ss:$24 sps:$4 sm:$0xff]  }
 0x9e4   :  { %4933 = vmatpush1.bf16.msra.mxu0 %v6533_v16  ;;  %v6562_v16 = vld [vmem:[#allocation6 + $0x154] ss:$24 sps:$4 sm:$0xff]  }
 0x9e5   :  { %4934 = vmatprep.subr.bf16.mxu0 %v6541_v18  ;;  %v6560_v18 = vld [vmem:[#allocation6 + $0x150] ss:$24 sps:$4 sm:$0xff]  }
 0x9e8   :  { %4935 = vmatpush1.bf16.msra.mxu0 %v6539_v23  ;;  %v6568_v23 = vld [vmem:[#allocation6 + $0x184] ss:$24 sps:$4 sm:$0xff]  }
 0x9e9   :  { %4936 = vmatprep.subr.bf16.mxu0 %v6547_v21  ;;  %v6566_v21 = vld [vmem:[#allocation6 + $0x180] ss:$24 sps:$4 sm:$0xff]  }
 0x9ec   :  { %4937 = vmatpush1.bf16.msra.mxu0 %v6545_v6  ;;  %v6574_v6 = vld [vmem:[#allocation6 + $0x1b4] ss:$24 sps:$4 sm:$0xff]  }
 0x9ed   :  { %4938 = vmatprep.subr.bf16.mxu0 %v6553_v12  ;;  %v6572_v12 = vld [vmem:[#allocation6 + $0x1b0] ss:$24 sps:$4 sm:$0xff]  }
 0x9f0   :  { %4939 = vmatpush1.bf16.msra.mxu0 %v6551_v24  ;;  %v6580_v24 = vld [vmem:[#allocation6 + $0x1e4] ss:$24 sps:$4 sm:$0xff]  }
 0x9f1   :  { %4940 = vmatprep.subr.bf16.mxu0 %v6559_v22  ;;  %v6578_v22 = vld [vmem:[#allocation6 + $0x1e0] ss:$24 sps:$4 sm:$0xff]  }
 0x9f4   :  { %4941 = vmatpush1.bf16.msra.mxu0 %v6557_v26  ;;  %v6586_v26 = vld [vmem:[#allocation6 + $0x214] ss:$24 sps:$4 sm:$0xff]  }
 0x9f5   :  { %4942 = vmatprep.subr.bf16.mxu0 %v6565_v27  ;;  %v6584_v27 = vld [vmem:[#allocation6 + $0x210] ss:$24 sps:$4 sm:$0xff]  }
 0x9f8   :  { %4943 = vmatpush1.bf16.msra.mxu0 %v6563_v34  ;;  %v6592_v34 = vld [vmem:[#allocation6 + $0x244] ss:$24 sps:$4 sm:$0xff]  }
 0x9f9   :  { %4944 = vmatprep.subr.bf16.mxu0 %v6571_v35  ;;  %v6590_v35 = vld [vmem:[#allocation6 + $0x240] ss:$24 sps:$4 sm:$0xff]  }
 0x9fc   :  { %4945 = vmatpush1.bf16.msra.mxu0 %v6569_v5  ;;  %v6598_v5 = vld [vmem:[#allocation6 + $0x274] ss:$24 sps:$4 sm:$0xff]  }
 0x9fd   :  { %4946 = vmatprep.subr.bf16.mxu0 %v6577_v37  ;;  %v6601_v37 = vld [vmem:[#allocation6 + $0x27c] ss:$24 sps:$4 sm:$0xff]  }
 0xa00   :  { %4947 = vmatpush1.bf16.msra.mxu0 %v6575_v40  ;;  %v6596_v40 = vld [vmem:[#allocation6 + $0x270] ss:$24 sps:$4 sm:$0xff]  }
 0xa01   :  { %4948 = vmatprep.subr.bf16.mxu0 %v6583_v29  ;;  %v6599_v29 = vld [vmem:[#allocation6 + $0x278] ss:$24 sps:$4 sm:$0xff]  }
 0xa04   :  { %4949 = vmatpush1.bf16.msra.mxu0 %v6581_v45  ;;  %v6604_v45 = vld [vmem:[#allocation6 + $0x2a4] ss:$24 sps:$4 sm:$0xff]  }
 0xa05   :  { %4950 = vmatprep.subr.bf16.mxu0 %v6589_v46  ;;  %v6607_v46 = vld [vmem:[#allocation6 + $0x2ac] ss:$24 sps:$4 sm:$0xff]  }
 0xa08   :  { %4951 = vmatpush1.bf16.msra.mxu0 %v6587_v48  ;;  %v6602_v48 = vld [vmem:[#allocation6 + $0x2a0] ss:$24 sps:$4 sm:$0xff]  }
 0xa09   :  { %4952 = vmatprep.subr.bf16.mxu0 %v6595_v51  ;;  %v6605_v51 = vld [vmem:[#allocation6 + $0x2a8] ss:$24 sps:$4 sm:$0xff]  }
 0xa0c   :  { %4953 = vmatpush1.bf16.msra.mxu0 %v6593_v52  ;;  %v6610_v52 = vld [vmem:[#allocation6 + $0x2d4] ss:$24 sps:$4 sm:$0xff]  }
 0xa0d   :  { %4954 = vmatprep.subr.bf16.mxu0 %v6601_v37  ;;  %v6647_v37 = vld [vmem:[#allocation6 + $0x3f8] ss:$24 sps:$4 sm:$0xff]  }
 0xa10   :  { %4955 = vmatpush1.bf16.msra.mxu0 %v6599_v29  ;;  %v6655_v29 = vld [vmem:[#allocation6 + $0x42c] ss:$24 sps:$4 sm:$0xff]  }
 0xa11   :  { %4956 = vmatprep.subr.bf16.mxu0 %v6607_v46  ;;  %v6653_v46 = vld [vmem:[#allocation6 + $0x428] ss:$24 sps:$4 sm:$0xff]  }
 0xa14   :  { %4957 = vmatpush1.bf16.msra.mxu0 %v6605_v51  ;;  %v6661_v51 = vld [vmem:[#allocation6 + $0x45c] ss:$24 sps:$4 sm:$0xff]  }
 0xaac   :  { %v5801_v14 = vpop.f32.mrb[24].mxu1 }
 0xaad   :  { %v5802_v54 = vpop.f32.mrb[25].mxu1 }
 0xaae   :  { %v5836_v55 = vpop.f32.mrb[16].mxu0  ;;  %v5803_v56 = vadd.f32 %v5802_v54, %v5801_v14  ;;  %v6613_v14 = vld [vmem:[#allocation6 + $0x2dc] ss:$24 sps:$4 sm:$0xff]   ;;  %v6608_v54 = vld [vmem:[#allocation6 + $0x2d0] ss:$24 sps:$4 sm:$0xff]  }
 0xaaf   :  { %v5837_v42 = vpop.f32.mrb[17].mxu0  ;;  %4958 = vmatprep.subr.bf16.mxu0 %v6613_v14  ;;  %v6659_v14 = vld [vmem:[#allocation6 + $0x458] ss:$24 sps:$4 sm:$0xff]  }
 0xab0   :  { %v5838_v57 = vadd.f32 %v5837_v42, %v5836_v55  ;;  %v6611_v55 = vld [vmem:[#allocation6 + $0x2d8] ss:$24 sps:$4 sm:$0xff]   ;;  %v6619_v42 = vld [vmem:[#allocation6 + $0x30c] ss:$24 sps:$4 sm:$0xff]  }
 0xab1   :  { %4959 = vmatpush1.bf16.msra.mxu0 %v6611_v55  ;;  %v6667_v55 = vld [vmem:[#allocation6 + $0x48c] ss:$24 sps:$4 sm:$0xff]  }
 0xab2   :  { %v3467_v58 = vadd.f32 %v5838_v57, %v5803_v56  ;;  %v6616_v56 = vld [vmem:[#allocation6 + $0x304] ss:$24 sps:$4 sm:$0xff]   ;;  %4969 = vmatprep.subr.bf16.mxu0 %v6619_v42  ;;  %v6665_v42 = vld [vmem:[#allocation6 + $0x488] ss:$24 sps:$4 sm:$0xff]  }
 0xab4   :  { %v3470_v50 = vmul.f32 0.0078125, %v3467_v58 }
 0xab6   :  { %v3471_v53 = vmul.f32 %v3470_v50, %v3470_v50 }
 0xab8   :  { %v3473_v59 = vrot.slane %v3471_v53, 7 }
 0xaba   :  { %v3475_v60 = vsub.f32 %v3470_v50, %v3473_v59 }
 0xabc   :  { %v3476_v61 = vadd.f32 1e-05, %v3475_v60 }
 0xabe   :  { %6812 = vrsqrt.f32 %v3476_v61 }
 0xac8   :  { %v6813_v62 = vpop.eup %6812 }
 0xac9   :  { %v3479_v0 = vrot.slane %v6813_v62, 1 }
 0xacb   :  { %v3481_v4 = vmul.f32 %v3479_v0, %v90_v63 }
 0xacd   :  { %v3482_v1 = vmul.f32 %v3481_v4, %v3470_v50 }
 0xacf   :  { %v3483_v9 = vsub.f32 %v91_v8, %v3482_v1 }
 0xad1   :  { %v3485_v13 = vrot.slane %v3483_v9, 7 }
 0xad3   :  { %v3487_v19 = vsel %vm2045_vm5, %v3481_v4, %v3485_v13 }
 0xad4   :  { %5482 = vmatmul.mubr.msk.f32.vlgmr.msra.gmra.mrb[26].mxu1 %vm3492_vm11, %v3487_v19 }
 0xad5   :  { %3568 = vmatpush1.msra.mxu1 %v3490_v7  ;;  %3631 = vmatprep.mubr.f32.mxu1 %v6906_v44  ;;  %v6550_v44 = vld [vmem:[#allocation6 + $0xf4] ss:$24 sps:$4 sm:$0xff]  }
 0xad6   :  { %4846 = vmatprep.subr.bf16.mxu1 %v6520_v11 }
 0xad8   :  { %5483 = vmatmul.mubr.msk.f32.vlgmr.msra.gmra.mrb[28].mxu1 %vm3492_vm11, %v3487_v19 }
 0xad9   :  { %4847 = vmatpush1.bf16.msra.mxu1 %v6518_v20 }
 0xada   :  { %4848 = vmatprep.subr.bf16.mxu1 %v6526_v25 }
 0xadd   :  { %4849 = vmatpush1.bf16.msra.mxu1 %v6524_v28 }
 0xade   :  { %4850 = vmatprep.subr.bf16.mxu1 %v6532_v33 }
 0xae1   :  { %4851 = vmatpush1.bf16.msra.mxu1 %v6530_v36 }
 0xae2   :  { %4852 = vmatprep.subr.bf16.mxu1 %v6538_v38  ;;  %v6617_v38 = vld [vmem:[#allocation6 + $0x308] ss:$24 sps:$4 sm:$0xff]  }
 0xae5   :  { %4853 = vmatpush1.bf16.msra.mxu1 %v6536_v41  ;;  %v6622_v41 = vld [vmem:[#allocation6 + $0x334] ss:$24 sps:$4 sm:$0xff]  }
 0xae6   :  { %4854 = vmatprep.subr.bf16.mxu1 %v6544_v43 }
 0xae9   :  { %4855 = vmatpush1.bf16.msra.mxu1 %v6542_v47  ;;  %v6625_v47 = vld [vmem:[#allocation6 + $0x33c] ss:$24 sps:$4 sm:$0xff]  }
 0xaea   :  { %4856 = vmatprep.subr.bf16.mxu1 %v6550_v44 }
 0xaed   :  { %4857 = vmatpush1.bf16.msra.mxu1 %v6548_v49  ;;  %v6623_v49 = vld [vmem:[#allocation6 + $0x338] ss:$24 sps:$4 sm:$0xff]  }
 0xaee   :  { %4858 = vmatprep.subr.bf16.mxu1 %v6556_v39  ;;  %v6628_v39 = vld [vmem:[#allocation6 + $0x364] ss:$24 sps:$4 sm:$0xff]  }
 0xaf1   :  { %4859 = vmatpush1.bf16.msra.mxu1 %v6554_v15  ;;  %v6631_v15 = vld [vmem:[#allocation6 + $0x36c] ss:$24 sps:$4 sm:$0xff]  }
 0xaf2   :  { %4860 = vmatprep.subr.bf16.mxu1 %v6562_v16  ;;  %v6626_v16 = vld [vmem:[#allocation6 + $0x360] ss:$24 sps:$4 sm:$0xff]  }
 0xaf5   :  { %4861 = vmatpush1.bf16.msra.mxu1 %v6560_v18  ;;  %v6629_v18 = vld [vmem:[#allocation6 + $0x368] ss:$24 sps:$4 sm:$0xff]  }
 0xaf6   :  { %4862 = vmatprep.subr.bf16.mxu1 %v6568_v23  ;;  %v6634_v23 = vld [vmem:[#allocation6 + $0x394] ss:$24 sps:$4 sm:$0xff]  }
 0xaf9   :  { %4863 = vmatpush1.bf16.msra.mxu1 %v6566_v21  ;;  %v6637_v21 = vld [vmem:[#allocation6 + $0x39c] ss:$24 sps:$4 sm:$0xff]  }
 0xafa   :  { %4864 = vmatprep.subr.bf16.mxu1 %v6574_v6  ;;  %v6632_v6 = vld [vmem:[#allocation6 + $0x390] ss:$24 sps:$4 sm:$0xff]  }
 0xafd   :  { %4865 = vmatpush1.bf16.msra.mxu1 %v6572_v12  ;;  %v6635_v12 = vld [vmem:[#allocation6 + $0x398] ss:$24 sps:$4 sm:$0xff]  }
 0xafe   :  { %4866 = vmatprep.subr.bf16.mxu1 %v6580_v24  ;;  %v6640_v24 = vld [vmem:[#allocation6 + $0x3c4] ss:$24 sps:$4 sm:$0xff]  }
 0xb01   :  { %4867 = vmatpush1.bf16.msra.mxu1 %v6578_v22  ;;  %v6643_v22 = vld [vmem:[#allocation6 + $0x3cc] ss:$24 sps:$4 sm:$0xff]  }
 0xb02   :  { %4868 = vmatprep.subr.bf16.mxu1 %v6586_v26  ;;  %v6638_v26 = vld [vmem:[#allocation6 + $0x3c0] ss:$24 sps:$4 sm:$0xff]  }
 0xb05   :  { %4869 = vmatpush1.bf16.msra.mxu1 %v6584_v27  ;;  %v6641_v27 = vld [vmem:[#allocation6 + $0x3c8] ss:$24 sps:$4 sm:$0xff]  }
 0xb06   :  { %4870 = vmatprep.subr.bf16.mxu1 %v6592_v34  ;;  %v6646_v34 = vld [vmem:[#allocation6 + $0x3f4] ss:$24 sps:$4 sm:$0xff]  }
 0xb09   :  { %4871 = vmatpush1.bf16.msra.mxu1 %v6590_v35  ;;  %v6649_v35 = vld [vmem:[#allocation6 + $0x3fc] ss:$24 sps:$4 sm:$0xff]  }
 0xb0a   :  { %4872 = vmatprep.subr.bf16.mxu1 %v6598_v5  ;;  %v6644_v5 = vld [vmem:[#allocation6 + $0x3f0] ss:$24 sps:$4 sm:$0xff]  }
 0xb0d   :  { %4873 = vmatpush1.bf16.msra.mxu1 %v6596_v40  ;;  %v6652_v40 = vld [vmem:[#allocation6 + $0x424] ss:$24 sps:$4 sm:$0xff]  }
 0xb0e   :  { %4874 = vmatprep.subr.bf16.mxu1 %v6604_v45  ;;  %v6650_v45 = vld [vmem:[#allocation6 + $0x420] ss:$24 sps:$4 sm:$0xff]  }
 0xb11   :  { %4875 = vmatpush1.bf16.msra.mxu1 %v6602_v48  ;;  %v6658_v48 = vld [vmem:[#allocation6 + $0x454] ss:$24 sps:$4 sm:$0xff]  }
 0xb12   :  { %4876 = vmatprep.subr.bf16.mxu1 %v6610_v52  ;;  %v6656_v52 = vld [vmem:[#allocation6 + $0x450] ss:$24 sps:$4 sm:$0xff]  }
 0xb15   :  { %4877 = vmatpush1.bf16.msra.mxu1 %v6608_v54  ;;  %v6664_v54 = vld [vmem:[#allocation6 + $0x484] ss:$24 sps:$4 sm:$0xff]  }
 0xb16   :  { %4887 = vmatprep.subr.bf16.mxu1 %v6616_v56  ;;  %v6662_v56 = vld [vmem:[#allocation6 + $0x480] ss:$24 sps:$4 sm:$0xff]  }
 0xba7   :  { %v3562_v57 = vpop.f32.mrb[26].mxu1 }
 0xba8   :  { %v3641_v58 = vrot.slane %v3562_v57, %v7496_v30  ;;  %v3564_v50 = vpop.f32.mrb[27].mxu1  ;;  %v3661_v60 = vrot.slane %v3562_v57, %v7499_v32  ;;  %v6670_v57 = vld [vmem:[#allocation6 + $0x4b4] ss:$24 sps:$4 sm:$0xff]  }
 0xba9   :  { %v3645_v53 = vrot.slane %v3564_v50, %v7496_v30  ;;  %v3665_v62 = vrot.slane %v3564_v50, %v7499_v32  ;;  %v6668_v50 = vld [vmem:[#allocation6 + $0x4b0] ss:$24 sps:$4 sm:$0xff]  }
 0xbaa   :  { %v3654_v59 = vmul.f32 %v3641_v58, %v7947_v2  ;;  %v6673_v58 = vld [vmem:[#allocation6 + $0x4bc] ss:$24 sps:$4 sm:$0xff]  }
 0xbab   :  { %v3655_v61 = vmul.f32 %v3645_v53, %v7959_v10  ;;  %v3633_v63 = vpop.f32.mrb[28].mxu1  ;;  %v6671_v53 = vld [vmem:[#allocation6 + $0x4b8] ss:$24 sps:$4 sm:$0xff]  }
 0xbac   :  { %v3674_v0 = vadd.f32 %v3661_v60, %v3654_v59  ;;  %v3649_v4 = vrot.slane %v3633_v63, %v7496_v30  ;;  %v3635_v8 = vpop.f32.mrb[29].mxu1  ;;  %v3669_v2 = vrot.slane %v3633_v63, %v7499_v32  ;;  %v6676_v59 = vld [vmem:[#allocation6 + $0x4e4] ss:$24 sps:$4 sm:$0xff]   ;;  %v6682_v63 = vld [vmem:[#allocation6 + $0x514] ss:$24 sps:$4 sm:$0xff]  }
 0xbad   :  { %v3675_v1 = vadd.f32 %v3665_v62, %v3655_v61  ;;  %v3653_v9 = vrot.slane %v3635_v8, %v7496_v30  ;;  %v3673_v10 = vrot.slane %v3635_v8, %v7499_v32  ;;  %v6614_v30 = vld [vmem:[#allocation6 + $0x300] ss:$24 sps:$4 sm:$0xff]   ;;  %v6679_v60 = vld [vmem:[#allocation6 + $0x4ec] ss:$24 sps:$4 sm:$0xff]  }
 0xbae   :  { %vm3678_vm12 = vcmp.ge.f32.partialorder %v3674_v0, 0.0  ;;  %v3682_v13 = vmul.f32 0.2, %v3674_v0  ;;  %v3656_v7 = vmul.f32 %v3649_v4, %v7949_v3  ;;  %v6674_v61 = vld [vmem:[#allocation6 + $0x4e0] ss:$24 sps:$4 sm:$0xff]  }
 0xbaf   :  { %v3683_v11 = vmul.f32 0.2, %v3675_v1  ;;  %v3657_v19 = vmul.f32 %v3653_v9, %v7961_v31  ;;  %vm3679_vm13 = vcmp.ge.f32.partialorder %v3675_v1, 0.0  ;;  %v6620_v31 = vld [vmem:[#allocation6 + $0x330] ss:$24 sps:$4 sm:$0xff]  }
 0xbb0   :  { %v8012_v20 = vadd.f32 %v3669_v2, %v3656_v7  ;;  %v3686_v25 = vsel %vm3678_vm12, %v3674_v0, %v3682_v13  ;;  %v6677_v62 = vld [vmem:[#allocation6 + $0x4e8] ss:$24 sps:$4 sm:$0xff]   ;;  %v6685_v0 = vld [vmem:[#allocation6 + $0x51c] ss:$24 sps:$4 sm:$0xff]   ;;  %v6683_v8 = vld [vmem:[#allocation6 + $0x518] ss:$24 sps:$4 sm:$0xff]  }
 0xbb1   :  { %v3677_v28 = vadd.f32 %v3673_v10, %v3657_v19  ;;  %v3687_v33 = vsel %vm3679_vm13, %v3675_v1, %v3683_v11  ;;  %v8016_v3 = vpack.c.bf16 %v3686_v25, %v3686_v25  ;;  %v6680_v4 = vld [vmem:[#allocation6 + $0x510] ss:$24 sps:$4 sm:$0xff]   ;;  %v6688_v1 = vld [vmem:[#allocation6 + $0x544] ss:$24 sps:$4 sm:$0xff]   ;;  %v6686_v13 = vld [vmem:[#allocation6 + $0x540] ss:$24 sps:$4 sm:$0xff]  }
 0xbb2   :  { %v8014_v36 = vpack.c.bf16 %v3687_v33, %v3687_v33  ;;  %v6691_v9 = vld [vmem:[#allocation6 + $0x54c] ss:$24 sps:$4 sm:$0xff]   ;;  %v6689_v7 = vld [vmem:[#allocation6 + $0x548] ss:$24 sps:$4 sm:$0xff]   ;;  %v6697_v11 = vld [vmem:[#allocation6 + $0x57c] ss:$24 sps:$4 sm:$0xff]  }
 0xbb3   :  { %v3685_v43 = vmul.f32 0.2, %v3677_v28  ;;  %vm3681_vm14 = vcmp.ge.f32.partialorder %v3677_v28, 0.0  ;;  %v6694_v2 = vld [vmem:[#allocation6 + $0x574] ss:$24 sps:$4 sm:$0xff]   ;;  %vm3680_vm15 = vcmp.ge.f32.partialorder %v8012_v20, 0.0 }
 0xbb4   :  { %4878 = vmatprep.mubr.bf16.mxu1 %v8014_v36  ;;  %4960 = vmatprep.mubr.bf16.mxu0 %v8014_v36  ;;  %v6692_v19 = vld [vmem:[#allocation6 + $0x570] ss:$24 sps:$4 sm:$0xff]   ;;  %v6700_v25 = vld [vmem:[#allocation6 + $0x5a4] ss:$24 sps:$4 sm:$0xff]   ;;  %v6698_v33 = vld [vmem:[#allocation6 + $0x5a0] ss:$24 sps:$4 sm:$0xff]  }
 0xbb5   :  { %4879 = vmatmul.mubr.bf16.vlgmr.msra.gmra.mrb[32].mxu1 %v8016_v3  ;;  %4961 = vmatmul.mubr.bf16.vlgmr.msra.gmra.mrb[20].mxu0 %v8016_v3  ;;  %v3689_v32 = vsel %vm3681_vm14, %v3677_v28, %v3685_v43  ;;  %v6695_v10 = vld [vmem:[#allocation6 + $0x578] ss:$24 sps:$4 sm:$0xff]   ;;  %v6703_v28 = vld [vmem:[#allocation6 + $0x5ac] ss:$24 sps:$4 sm:$0xff]   ;;  %v3684_v43 = vmul.f32 0.2, %v8012_v20 }
 0xbb6   :  { %4888 = vmatpush1.bf16.msra.mxu1 %v6614_v30  ;;  %4970 = vmatpush1.bf16.msra.mxu0 %v6617_v38  ;;  %v8022_v44 = vpack.c.bf16 %v3689_v32, %v3689_v32  ;;  %v6701_v30 = vld [vmem:[#allocation6 + $0x5a8] ss:$24 sps:$4 sm:$0xff]   ;;  %v6706_v38 = vld [vmem:[#allocation6 + $0x5d4] ss:$24 sps:$4 sm:$0xff]   ;;  %v6707_v32 = vld [vmem:[#allocation6 + $0x5d8] ss:$24 sps:$4 sm:$0xff]  }
 0xbb7   :  { %4889 = vmatprep.subr.bf16.mxu1 %v6622_v41  ;;  %4971 = vmatprep.subr.bf16.mxu0 %v6625_v47  ;;  %v6709_v41 = vld [vmem:[#allocation6 + $0x5dc] ss:$24 sps:$4 sm:$0xff]   ;;  %v6704_v47 = vld [vmem:[#allocation6 + $0x5d0] ss:$24 sps:$4 sm:$0xff]  }
 0xbb8   :  { %4919 = vmatprep.mubr.bf16.mxu1 %v8022_v44  ;;  %5001 = vmatprep.mubr.bf16.mxu0 %v8022_v44 }
 0xbba   :  { %4890 = vmatpush1.bf16.msra.mxu1 %v6620_v31  ;;  %4972 = vmatpush1.bf16.msra.mxu0 %v6623_v49  ;;  %v6712_v31 = vld [vmem:[#allocation6 + $0x14] ss:$24 sps:$4 sm:$0xff]   ;;  %v3688_v49 = vsel %vm3680_vm15, %v8012_v20, %v3684_v43  ;;  %v6721_v20 = vld [vmem:[#allocation6 + $0xa4] ss:$24 sps:$4 sm:$0xff]  }
 0xbbb   :  { %4891 = vmatprep.subr.bf16.mxu1 %v6628_v39  ;;  %4973 = vmatprep.subr.bf16.mxu0 %v6631_v15  ;;  %v6710_v39 = vld [vmem:[#allocation6 + $0x10] ss:$24 sps:$4 sm:$0xff]   ;;  %v8029_v15 = vpack.c.bf16 %v3688_v49, %v3688_v49  ;;  %v6799_v43 = vld [vmem:[#allocation6 + $0x584] ss:$24 sps:$4 sm:$0xff]  }
 0xbbc   :  { %v6805_v49 = vld [vmem:[#allocation6 + $0x5e4] ss:$24 sps:$4 sm:$0xff]  }
 0xbbe   :  { %4892 = vmatpush1.bf16.msra.mxu1 %v6626_v16  ;;  %4974 = vmatpush1.bf16.msra.mxu0 %v6629_v18  ;;  %v6715_v16 = vld [vmem:[#allocation6 + $0x44] ss:$24 sps:$4 sm:$0xff]   ;;  %v6713_v18 = vld [vmem:[#allocation6 + $0x40] ss:$24 sps:$4 sm:$0xff]  }
 0xbbf   :  { %4893 = vmatprep.subr.bf16.mxu1 %v6634_v23  ;;  %4975 = vmatprep.subr.bf16.mxu0 %v6637_v21  ;;  %v6718_v23 = vld [vmem:[#allocation6 + $0x74] ss:$24 sps:$4 sm:$0xff]   ;;  %v6716_v21 = vld [vmem:[#allocation6 + $0x70] ss:$24 sps:$4 sm:$0xff]  }
 0xbc2   :  { %4894 = vmatpush1.bf16.msra.mxu1 %v6632_v6  ;;  %4976 = vmatpush1.bf16.msra.mxu0 %v6635_v12  ;;  %v6719_v6 = vld [vmem:[#allocation6 + $0xa0] ss:$24 sps:$4 sm:$0xff]   ;;  %v6724_v12 = vld [vmem:[#allocation6 + $0xd4] ss:$24 sps:$4 sm:$0xff]  }
 0xbc3   :  { %4895 = vmatprep.subr.bf16.mxu1 %v6640_v24  ;;  %4977 = vmatprep.subr.bf16.mxu0 %v6643_v22  ;;  %v6722_v24 = vld [vmem:[#allocation6 + $0xd0] ss:$24 sps:$4 sm:$0xff]   ;;  %v6727_v22 = vld [vmem:[#allocation6 + $0x104] ss:$24 sps:$4 sm:$0xff]  }
 0xbc6   :  { %4896 = vmatpush1.bf16.msra.mxu1 %v6638_v26  ;;  %4978 = vmatpush1.bf16.msra.mxu0 %v6641_v27  ;;  %v6725_v26 = vld [vmem:[#allocation6 + $0x100] ss:$24 sps:$4 sm:$0xff]   ;;  %v6730_v27 = vld [vmem:[#allocation6 + $0x134] ss:$24 sps:$4 sm:$0xff]  }
 0xbc7   :  { %4897 = vmatprep.subr.bf16.mxu1 %v6646_v34  ;;  %4979 = vmatprep.subr.bf16.mxu0 %v6649_v35  ;;  %v6733_v34 = vld [vmem:[#allocation6 + $0x164] ss:$24 sps:$4 sm:$0xff]   ;;  %v6731_v35 = vld [vmem:[#allocation6 + $0x160] ss:$24 sps:$4 sm:$0xff]  }
 0xbca   :  { %4898 = vmatpush1.bf16.msra.mxu1 %v6644_v5  ;;  %4980 = vmatpush1.bf16.msra.mxu0 %v6647_v37  ;;  %v6736_v5 = vld [vmem:[#allocation6 + $0x194] ss:$24 sps:$4 sm:$0xff]   ;;  %v6734_v37 = vld [vmem:[#allocation6 + $0x190] ss:$24 sps:$4 sm:$0xff]  }
 0xbcb   :  { %4899 = vmatprep.subr.bf16.mxu1 %v6652_v40  ;;  %4981 = vmatprep.subr.bf16.mxu0 %v6655_v29  ;;  %v6739_v40 = vld [vmem:[#allocation6 + $0x1c4] ss:$24 sps:$4 sm:$0xff]   ;;  %v6737_v29 = vld [vmem:[#allocation6 + $0x1c0] ss:$24 sps:$4 sm:$0xff]  }
 0xbce   :  { %4900 = vmatpush1.bf16.msra.mxu1 %v6650_v45  ;;  %4982 = vmatpush1.bf16.msra.mxu0 %v6653_v46  ;;  %v6742_v45 = vld [vmem:[#allocation6 + $0x1f4] ss:$24 sps:$4 sm:$0xff]   ;;  %v6740_v46 = vld [vmem:[#allocation6 + $0x1f0] ss:$24 sps:$4 sm:$0xff]  }
 0xbcf   :  { %4901 = vmatprep.subr.bf16.mxu1 %v6658_v48  ;;  %4983 = vmatprep.subr.bf16.mxu0 %v6661_v51  ;;  %v6745_v48 = vld [vmem:[#allocation6 + $0x224] ss:$24 sps:$4 sm:$0xff]   ;;  %v6743_v51 = vld [vmem:[#allocation6 + $0x220] ss:$24 sps:$4 sm:$0xff]  }
 0xbd2   :  { %4902 = vmatpush1.bf16.msra.mxu1 %v6656_v52  ;;  %4984 = vmatpush1.bf16.msra.mxu0 %v6659_v14  ;;  %v6748_v52 = vld [vmem:[#allocation6 + $0x254] ss:$24 sps:$4 sm:$0xff]   ;;  %v6746_v14 = vld [vmem:[#allocation6 + $0x250] ss:$24 sps:$4 sm:$0xff]  }
 0xbd3   :  { %4903 = vmatprep.subr.bf16.mxu1 %v6664_v54  ;;  %4985 = vmatprep.subr.bf16.mxu0 %v6667_v55  ;;  %v6751_v54 = vld [vmem:[#allocation6 + $0x284] ss:$24 sps:$4 sm:$0xff]   ;;  %v6749_v55 = vld [vmem:[#allocation6 + $0x280] ss:$24 sps:$4 sm:$0xff]  }
 0xbd6   :  { %4904 = vmatpush1.bf16.msra.mxu1 %v6662_v56  ;;  %4986 = vmatpush1.bf16.msra.mxu0 %v6665_v42  ;;  %v6754_v56 = vld [vmem:[#allocation6 + $0x2b4] ss:$24 sps:$4 sm:$0xff]   ;;  %v6752_v42 = vld [vmem:[#allocation6 + $0x2b0] ss:$24 sps:$4 sm:$0xff]  }
 0xbd7   :  { %4905 = vmatprep.subr.bf16.mxu1 %v6670_v57  ;;  %4987 = vmatprep.subr.bf16.mxu0 %v6673_v58  ;;  %v6757_v57 = vld [vmem:[#allocation6 + $0x2e4] ss:$24 sps:$4 sm:$0xff]   ;;  %v6755_v58 = vld [vmem:[#allocation6 + $0x2e0] ss:$24 sps:$4 sm:$0xff]  }
 0xbda   :  { %4906 = vmatpush1.bf16.msra.mxu1 %v6668_v50  ;;  %4988 = vmatpush1.bf16.msra.mxu0 %v6671_v53  ;;  %v6760_v50 = vld [vmem:[#allocation6 + $0x314] ss:$24 sps:$4 sm:$0xff]   ;;  %v6758_v53 = vld [vmem:[#allocation6 + $0x310] ss:$24 sps:$4 sm:$0xff]  }
 0xbdb   :  { %4907 = vmatprep.subr.bf16.mxu1 %v6676_v59  ;;  %4989 = vmatprep.subr.bf16.mxu0 %v6679_v60  ;;  %v6763_v59 = vld [vmem:[#allocation6 + $0x344] ss:$24 sps:$4 sm:$0xff]   ;;  %v6761_v60 = vld [vmem:[#allocation6 + $0x340] ss:$24 sps:$4 sm:$0xff]  }
 0xbde   :  { %4908 = vmatpush1.bf16.msra.mxu1 %v6674_v61  ;;  %4990 = vmatpush1.bf16.msra.mxu0 %v6677_v62  ;;  %v6766_v61 = vld [vmem:[#allocation6 + $0x374] ss:$24 sps:$4 sm:$0xff]   ;;  %v6764_v62 = vld [vmem:[#allocation6 + $0x370] ss:$24 sps:$4 sm:$0xff]  }
 0xbdf   :  { %4909 = vmatprep.subr.bf16.mxu1 %v6682_v63  ;;  %4991 = vmatprep.subr.bf16.mxu0 %v6685_v0  ;;  %v6769_v63 = vld [vmem:[#allocation6 + $0x3a4] ss:$24 sps:$4 sm:$0xff]   ;;  %v6767_v0 = vld [vmem:[#allocation6 + $0x3a0] ss:$24 sps:$4 sm:$0xff]  }
 0xbe2   :  { %4910 = vmatpush1.bf16.msra.mxu1 %v6680_v4  ;;  %4992 = vmatpush1.bf16.msra.mxu0 %v6683_v8  ;;  %v6772_v4 = vld [vmem:[#allocation6 + $0x3d4] ss:$24 sps:$4 sm:$0xff]   ;;  %v6770_v8 = vld [vmem:[#allocation6 + $0x3d0] ss:$24 sps:$4 sm:$0xff]  }
 0xbe3   :  { %4911 = vmatprep.subr.bf16.mxu1 %v6688_v1  ;;  %4993 = vmatprep.subr.bf16.mxu0 %v6691_v9  ;;  %v6775_v1 = vld [vmem:[#allocation6 + $0x404] ss:$24 sps:$4 sm:$0xff]   ;;  %v6778_v9 = vld [vmem:[#allocation6 + $0x434] ss:$24 sps:$4 sm:$0xff]  }
 0xbe6   :  { %4912 = vmatpush1.bf16.msra.mxu1 %v6686_v13  ;;  %4994 = vmatpush1.bf16.msra.mxu0 %v6689_v7  ;;  %v6781_v13 = vld [vmem:[#allocation6 + $0x464] ss:$24 sps:$4 sm:$0xff]   ;;  %v6779_v7 = vld [vmem:[#allocation6 + $0x460] ss:$24 sps:$4 sm:$0xff]  }
 0xbe7   :  { %4913 = vmatprep.subr.bf16.mxu1 %v6694_v2  ;;  %4995 = vmatprep.subr.bf16.mxu0 %v6697_v11  ;;  %v6784_v2 = vld [vmem:[#allocation6 + $0x494] ss:$24 sps:$4 sm:$0xff]   ;;  %v6782_v11 = vld [vmem:[#allocation6 + $0x490] ss:$24 sps:$4 sm:$0xff]  }
 0xbea   :  { %4914 = vmatpush1.bf16.msra.mxu1 %v6692_v19  ;;  %4996 = vmatpush1.bf16.msra.mxu0 %v6695_v10  ;;  %v6787_v19 = vld [vmem:[#allocation6 + $0x4c4] ss:$24 sps:$4 sm:$0xff]   ;;  %v6785_v10 = vld [vmem:[#allocation6 + $0x4c0] ss:$24 sps:$4 sm:$0xff]  }
 0xbeb   :  { %4915 = vmatprep.subr.bf16.mxu1 %v6700_v25  ;;  %4997 = vmatprep.subr.bf16.mxu0 %v6703_v28  ;;  %v6790_v25 = vld [vmem:[#allocation6 + $0x4f4] ss:$24 sps:$4 sm:$0xff]   ;;  %v6788_v28 = vld [vmem:[#allocation6 + $0x4f0] ss:$24 sps:$4 sm:$0xff]  }
 0xbee   :  { %4916 = vmatpush1.bf16.msra.mxu1 %v6698_v33  ;;  %4998 = vmatpush1.bf16.msra.mxu0 %v6701_v30  ;;  %v6793_v33 = vld [vmem:[#allocation6 + $0x524] ss:$24 sps:$4 sm:$0xff]   ;;  %v6791_v30 = vld [vmem:[#allocation6 + $0x520] ss:$24 sps:$4 sm:$0xff]  }
 0xbef   :  { %4917 = vmatprep.subr.bf16.mxu1 %v6706_v38  ;;  %4999 = vmatprep.subr.bf16.mxu0 %v6709_v41  ;;  %v6796_v38 = vld [vmem:[#allocation6 + $0x554] ss:$24 sps:$4 sm:$0xff]   ;;  %v6794_v41 = vld [vmem:[#allocation6 + $0x550] ss:$24 sps:$4 sm:$0xff]  }
 0xbf2   :  { %4918 = vmatpush1.bf16.msra.mxu1 %v6704_v47  ;;  %5000 = vmatpush1.bf16.msra.mxu0 %v6707_v32  ;;  %v6797_v47 = vld [vmem:[#allocation6 + $0x580] ss:$24 sps:$4 sm:$0xff]   ;;  %v6802_v32 = vld [vmem:[#allocation6 + $0x5b4] ss:$24 sps:$4 sm:$0xff]  }
 0xbf3   :  { %5010 = vmatprep.subr.bf16.mxu1 %v6712_v31  ;;  %v6800_v31 = vld [vmem:[#allocation6 + $0x5b0] ss:$24 sps:$4 sm:$0xff]  }
 0xbf5   :  { %4920 = vmatmul.mubr.bf16.vlgmr.msra.gmra.mrb[32].mxu1 %v8029_v15  ;;  %5002 = vmatmul.mubr.bf16.vlgmr.msra.gmra.mrb[20].mxu0 %v8029_v15 }
 0xbf6   :  { %5011 = vmatpush1.bf16.msra.mxu1 %v6710_v39  ;;  %5042 = vmatprep.mubr.bf16.mxu1 %v8014_v36  ;;  %v6728_v36 = vld [vmem:[#allocation6 + $0x130] ss:$24 sps:$4 sm:$0xff]   ;;  %v6803_v39 = vld [vmem:[#allocation6 + $0x5e0] ss:$24 sps:$4 sm:$0xff]  }
 0xbf7   :  { %5012 = vmatprep.subr.bf16.mxu1 %v6715_v16 }
 0xbfa   :  { %5013 = vmatpush1.bf16.msra.mxu1 %v6713_v18 }
 0xbfb   :  { %5014 = vmatprep.subr.bf16.mxu1 %v6718_v23 }
 0xbfe   :  { %5015 = vmatpush1.bf16.msra.mxu1 %v6716_v21 }
 0xbff   :  { %5016 = vmatprep.subr.bf16.mxu1 %v6721_v20 }
 0xc02   :  { %5017 = vmatpush1.bf16.msra.mxu1 %v6719_v6 }
 0xc03   :  { %5018 = vmatprep.subr.bf16.mxu1 %v6724_v12 }
 0xc06   :  { %5019 = vmatpush1.bf16.msra.mxu1 %v6722_v24 }
 0xc07   :  { %5020 = vmatprep.subr.bf16.mxu1 %v6727_v22 }
 0xc0a   :  { %5021 = vmatpush1.bf16.msra.mxu1 %v6725_v26 }
 0xc0b   :  { %5022 = vmatprep.subr.bf16.mxu1 %v6730_v27 }
 0xc0e   :  { %5023 = vmatpush1.bf16.msra.mxu1 %v6728_v36 }
 0xc0f   :  { %5024 = vmatprep.subr.bf16.mxu1 %v6733_v34 }
 0xc12   :  { %5025 = vmatpush1.bf16.msra.mxu1 %v6731_v35 }
 0xc13   :  { %5026 = vmatprep.subr.bf16.mxu1 %v6736_v5 }
 0xc16   :  { %5027 = vmatpush1.bf16.msra.mxu1 %v6734_v37 }
 0xc17   :  { %5028 = vmatprep.subr.bf16.mxu1 %v6739_v40 }
 0xc1a   :  { %5029 = vmatpush1.bf16.msra.mxu1 %v6737_v29 }
 0xc1b   :  { %5030 = vmatprep.subr.bf16.mxu1 %v6742_v45 }
 0xc1e   :  { %5031 = vmatpush1.bf16.msra.mxu1 %v6740_v46 }
 0xc1f   :  { %5032 = vmatprep.subr.bf16.mxu1 %v6745_v48 }
 0xc22   :  { %5033 = vmatpush1.bf16.msra.mxu1 %v6743_v51 }
 0xc23   :  { %5034 = vmatprep.subr.bf16.mxu1 %v6748_v52 }
 0xc26   :  { %5035 = vmatpush1.bf16.msra.mxu1 %v6746_v14 }
 0xc27   :  { %5036 = vmatprep.subr.bf16.mxu1 %v6751_v54 }
 0xc2a   :  { %5037 = vmatpush1.bf16.msra.mxu1 %v6749_v55 }
 0xc2b   :  { %5038 = vmatprep.subr.bf16.mxu1 %v6754_v56 }
 0xc2e   :  { %5039 = vmatpush1.bf16.msra.mxu1 %v6752_v42 }
 0xc2f   :  { %5040 = vmatprep.subr.bf16.mxu1 %v6757_v57 }
 0xc32   :  { %5041 = vmatpush1.bf16.msra.mxu1 %v6755_v58 }
 0xc33   :  { %5051 = vmatprep.subr.bf16.mxu1 %v6760_v50 }
 0xc35   :  { %5043 = vmatmul.mubr.bf16.vlgmr.msra.gmra.mrb[36].mxu1 %v8016_v3  ;;  %v6773_v3 = vld [vmem:[#allocation6 + $0x400] ss:$24 sps:$4 sm:$0xff]  }
 0xc36   :  { %5052 = vmatpush1.bf16.msra.mxu1 %v6758_v53  ;;  %5083 = vmatprep.mubr.bf16.mxu1 %v8022_v44  ;;  %v6776_v44 = vld [vmem:[#allocation6 + $0x430] ss:$24 sps:$4 sm:$0xff]  }
 0xc37   :  { %5053 = vmatprep.subr.bf16.mxu1 %v6763_v59 }
 0xc3a   :  { %5054 = vmatpush1.bf16.msra.mxu1 %v6761_v60 }
 0xc3b   :  { %5055 = vmatprep.subr.bf16.mxu1 %v6766_v61 }
 0xc3e   :  { %5056 = vmatpush1.bf16.msra.mxu1 %v6764_v62 }
 0xc3f   :  { %5057 = vmatprep.subr.bf16.mxu1 %v6769_v63 }
 0xc42   :  { %5058 = vmatpush1.bf16.msra.mxu1 %v6767_v0 }
 0xc43   :  { %5059 = vmatprep.subr.bf16.mxu1 %v6772_v4 }
 0xc46   :  { %5060 = vmatpush1.bf16.msra.mxu1 %v6770_v8 }
 0xc47   :  { %5061 = vmatprep.subr.bf16.mxu1 %v6775_v1 }
 0xc4a   :  { %5062 = vmatpush1.bf16.msra.mxu1 %v6773_v3 }
 0xc4b   :  { %5063 = vmatprep.subr.bf16.mxu1 %v6778_v9 }
 0xc4e   :  { %5064 = vmatpush1.bf16.msra.mxu1 %v6776_v44 }
 0xc4f   :  { %5065 = vmatprep.subr.bf16.mxu1 %v6781_v13 }
 0xc52   :  { %5066 = vmatpush1.bf16.msra.mxu1 %v6779_v7 }
 0xc53   :  { %5067 = vmatprep.subr.bf16.mxu1 %v6784_v2 }
 0xc56   :  { %5068 = vmatpush1.bf16.msra.mxu1 %v6782_v11 }
 0xc57   :  { %5069 = vmatprep.subr.bf16.mxu1 %v6787_v19 }
 0xc5a   :  { %5070 = vmatpush1.bf16.msra.mxu1 %v6785_v10 }
 0xc5b   :  { %5071 = vmatprep.subr.bf16.mxu1 %v6790_v25 }
 0xc5e   :  { %5072 = vmatpush1.bf16.msra.mxu1 %v6788_v28 }
 0xc5f   :  { %5073 = vmatprep.subr.bf16.mxu1 %v6793_v33 }
 0xc62   :  { %5074 = vmatpush1.bf16.msra.mxu1 %v6791_v30 }
 0xc63   :  { %5075 = vmatprep.subr.bf16.mxu1 %v6796_v38 }
 0xc66   :  { %5076 = vmatpush1.bf16.msra.mxu1 %v6794_v41 }
 0xc67   :  { %5077 = vmatprep.subr.bf16.mxu1 %v6799_v43 }
 0xc6a   :  { %5078 = vmatpush1.bf16.msra.mxu1 %v6797_v47 }
 0xc6b   :  { %5079 = vmatprep.subr.bf16.mxu1 %v6802_v32 }
 0xc6e   :  { %5080 = vmatpush1.bf16.msra.mxu1 %v6800_v31 }
 0xc6f   :  { %5081 = vmatprep.subr.bf16.mxu1 %v6805_v49 }
 0xc72   :  { %5082 = vmatpush1.bf16.msra.mxu1 %v6803_v39 }
 0xc75   :  { %5084 = vmatmul.mubr.bf16.vlgmr.msra.gmra.mrb[36].mxu1 %v8029_v15 }
 0xcc8   :  { %v4921_v16 = vpop.f32.mrb[32].mxu1  ;;  %v5003_v18 = vpop.f32.mrb[20].mxu0 }
 0xcc9   :  { %6814 = vtanh.f32 %v4921_v16  ;;  %v4923_v23 = vpop.f32.mrb[33].mxu1  ;;  %v5005_v21 = vpop.f32.mrb[21].mxu0 }
 0xcca   :  { %6816 = vtanh.f32 %v5003_v18  ;;  %v4925_v20 = vpop.f32.mrb[34].mxu1  ;;  %v5007_v6 = vpop.f32.mrb[22].mxu0 }
 0xccb   :  { %6818 = vtanh.f32 %v4923_v23  ;;  %v4926_v12 = vpop.f32.mrb[35].mxu1  ;;  %v5008_v24 = vpop.f32.mrb[23].mxu0 }
 0xccc   :  { %6820 = vtanh.f32 %v5005_v21 }
 0xcd3   :  { %v6815_v22 = vpop.eup %6814 }
 0xcd4   :  { %v6817_v26 = vpop.eup %6816 }
 0xcd5   :  { %v6819_v27 = vpop.eup %6818 }
 0xcd6   :  { %v6821_v36 = vpop.eup %6820  ;;  %v5104_v34 = vcombine.low %v6815_v22, %v6819_v27 }
 0xcd7   :  { %v5105_v35 = vcombine.low %v6817_v26, %v6821_v36 }
 0xcd8   :  { %v5112_v15 = vrot.slane %v5104_v34, %v7018_v17 }
 0xcd9   :  { %v5119_v5 = vrot.slane %v5105_v35, %v7018_v17 }
 0xcdb   :  { %v5120_v37 = vcombine.low %v5112_v15, %v5119_v5 }
 0xcdd   :  { %5131 = vst [vmem:[%s8058_s13] sm:$0xff] %v5120_v37 }
 0xd48   :  { %v5085_v40 = vpop.f32.mrb[36].mxu1 }
 0xd49   :  { %6822 = vtanh.f32 %v5085_v40  ;;  %v5087_v29 = vpop.f32.mrb[37].mxu1 }
 0xd4a   :  { %6824 = vtanh.f32 %v5087_v29  ;;  %v5089_v45 = vpop.f32.mrb[38].mxu1 }
 0xd4b   :  { %v5090_v46 = vpop.f32.mrb[39].mxu1 }
 0xd53   :  { %v6823_v48 = vpop.eup %6822 }
 0xd54   :  { %v6825_v51 = vpop.eup %6824 }
 0xd55   :  { %v5121_v52 = vcombine.low %v6823_v48, %v6825_v51 }
 0xd57   :  { %5676 = vst.sshfl [vmem:[%s8058_s13 + $0x8] sm:$0x33 pattern:$0x76325410] %v5121_v52 }
 0xd58   :  { %5137 = vsyncpa [#allocation3], 1 }
 0xd59   :  { %5138 = vsyncpa [#allocation5], 1 }

</bundles_post_ra>
